<compile_context>
chip_gen: v5e
topology: v5e:2x2
jax: 0.10.0
libtpu: 0.0.40
codegen_flags: <defaults>
</compile_context>

<pallas_src>
import jax
import jax.numpy as jnp
from jax.experimental import pallas as pl
from jax.experimental.pallas import tpu as pltpu


_VMEM = pl.BlockSpec(memory_space=pltpu.MemorySpace.VMEM)
_SMEM = pl.BlockSpec(memory_space=pltpu.MemorySpace.SMEM)


# ------------------------------ CBR (conv + BN + ReLU) ------------------------------

def _make_cbr_kernel(T2, B, F, T_out):
    """Conv(5,3)/stride(2,1)/pad(2,1) + BN(eval, folded) + ReLU, time-major.

    x_ref : (T2, 2*B, F)   rows 0:B = even time phase, B:2B = odd phase
                           (free leading-dim regroup of the (T, B, F) time-major input).
    w_ref : (15,)  SMEM    conv kernel, row-major (5, 3).
    ab_ref: (2,)   SMEM    fused BN scale / shift (conv bias folded into shift).
    out   : (T_out, B, F)
    pe/po : (T2+2, B, F+2) VMEM scratch -- zero-padded even / odd phases.
    """
    def kernel(x_ref, w_ref, ab_ref, out_ref, pe_ref, po_ref):
        # zero-pad inside the kernel (time pad 2 -> 1 row per phase; feature pad 1)
        pe_ref[...] = jnp.zeros_like(pe_ref)
        po_ref[...] = jnp.zeros_like(po_ref)
        pe_ref[1:1 + T2, :, 1:1 + F] = x_ref[:, 0:B, :]
        po_ref[1:1 + T2, :, 1:1 + F] = x_ref[:, B:2 * B, :]

        acc = jnp.zeros((T_out, B, F), jnp.float32)
        for i in range(5):                         # time taps: stride 2 -> phase + offset
            src = pe_ref if i % 2 == 0 else po_ref
            d0 = i // 2
            for j in range(3):                     # feature taps: stride 1
                acc = acc + w_ref[i * 3 + j] * src[d0:d0 + T_out, :, j:j + F]
        out_ref[...] = jnp.maximum(acc * ab_ref[0] + ab_ref[1], 0.0)

    return kernel


def conv_bn_relu(x_tbf, cbr, eps=1e-5):
    """x_tbf: (T, B, F) time-major -> (T_out, B, F) time-major."""
    T, B, F = x_tbf.shape
    T_out = (T - 1) // 2 + 1
    if T % 2:                                      # evenize T; the appended zero row is inert
        x_tbf = jnp.pad(x_tbf, ((0, 1), (0, 0), (0, 0)))
        T += 1
    T2 = T // 2
    x_ph = x_tbf.reshape(T2, 2 * B, F)             # free leading-dim regroup (phase split)

    inv_std = 1.0 / jnp.sqrt(cbr["var"] + eps)
    scale = cbr["gamma"] * inv_std
    shift = cbr["gamma"] * (cbr["conv_b"] - cbr["mean"]) * inv_std + cbr["beta"]
    # TODO(synk): BatchNorm2d reproduced in eval mode (running stats); training-mode batch
    # statistics are not reproduced.
    ab = jnp.stack([scale, shift]).astype(jnp.float32)
    w = cbr["conv_w"].reshape(15).astype(jnp.float32)

    return pl.pallas_call(
        _make_cbr_kernel(T2, B, F, T_out),
        out_shape=jax.ShapeDtypeStruct((T_out, B, F), jnp.float32),
        in_specs=[_VMEM, _SMEM, _SMEM],
        out_specs=_VMEM,
        scratch_shapes=[pltpu.VMEM((T2 + 2, B, F + 2), jnp.float32),
                        pltpu.VMEM((T2 + 2, B, F + 2), jnp.float32)],
    )(x_ph, w, ab)


# ------------------------------ fused bidirectional LSTM ------------------------------

def _make_bilstm_kernel(T, B, H, with_fc):
    H2, H4, H8 = 2 * H, 4 * H, 8 * H

    def sigmoid(v):                                # tanh form: stable, stays on the EUP
        return 0.5 * jnp.tanh(0.5 * v) + 0.5

    def kernel(*refs):
        if with_fc:
            (x_ref, wih_ref, whh_ref, b_ref, wfc_ref, bfc_ref,
             y_ref, hbuf_ref) = refs
            out_ref = hbuf_ref
        else:
            x_ref, wih_ref, whh_ref, b_ref, out_ref = refs

        # Hoisted input projection: one (T*B, D) x (D, 8H) bf16 MXU matmul covering every
        # timestep, both directions and all four gates; biases folded in.  f32 accumulation.
        xw = jnp.dot(x_ref[...].astype(jnp.bfloat16), wih_ref[...],
                     preferred_element_type=jnp.float32) + b_ref[...]
        whh = whh_ref[...]                          # (2H, 8H) bf16, both directions

        # Constant lane mask selecting the forward-direction columns of the interleaved
        # gate layout (hoisted out of the recurrence).
        lane = jax.lax.broadcasted_iota(jnp.int32, (1, H8), 1)
        fwd_cols = (lane % H2) < H

        h = jnp.zeros((B, H2), jnp.float32)         # [h_fwd | h_bwd]
        c = jnp.zeros((B, H2), jnp.float32)

        # Statically unrolled recurrence (T is small after the stride-2 conv); forward walks
        # t while backward walks T-1-t in the same step -> one launch per layer, no reverse.
        # TODO(synk): for long sequences tile T (grid / fori_loop + BlockSpec double-buffering)
        # instead of a full static unroll, and add a parallel grid axis so v7x's 2nd core helps.
        for t in range(T):
            tb = T - 1 - t
            rec = jnp.dot(h.astype(jnp.bfloat16), whh,
                          preferred_element_type=jnp.float32)            # (B, 8H)
            gates = rec + jnp.where(fwd_cols,
                                    xw[t * B:(t + 1) * B, :],
                                    xw[tb * B:(tb + 1) * B, :])
            i_g = sigmoid(gates[:, 0:H2])
            f_g = sigmoid(gates[:, H2:H4])
            g_g = jnp.tanh(gates[:, H4:H4 + H2])
            o_g = sigmoid(gates[:, H4 + H2:H8])
            c = f_g * c + i_g * g_g
            h = o_g * jnp.tanh(c)                                         # [h_f | h_b]
            out_ref[t * B:(t + 1) * B, 0:H] = h[:, 0:H]                   # fwd output @ time t
            out_ref[tb * B:(tb + 1) * B, H:H2] = h[:, H:H2]               # bwd output @ time T-1-t

        if with_fc:
            # Final Linear fused into the epilogue: (T*B, 2H) x (2H, O), f32 accumulation.
            y_ref[...] = jnp.dot(hbuf_ref[...].astype(jnp.bfloat16), wfc_ref[...],
                                 preferred_element_type=jnp.float32) + bfc_ref[...]

    return kernel


def _pack_bilstm_weights(p_fwd, p_bwd, H):
    """Pack torch-layout per-direction weights into interleaved bf16 matrices."""
    wif, whf, bif, bhf = p_fwd
    wib, whb, bib, bhb = p_bwd
    D = wif.shape[1]

    # input projection: (D, 8H), columns [i_f,i_b | f_f,f_b | g_f,g_b | o_f,o_b]
    wi_f = jnp.transpose(wif).reshape(D, 4, H)
    wi_b = jnp.transpose(wib).reshape(D, 4, H)
    wih = jnp.stack([wi_f, wi_b], axis=2).reshape(D, 8 * H)

    # recurrent weights: (2H, 8H); rows 0:H act on h_fwd, rows H:2H on h_bwd
    wh_f = jnp.transpose(whf).reshape(H, 4, H)
    wh_b = jnp.transpose(whb).reshape(H, 4, H)
    z = jnp.zeros_like(wh_f)
    top = jnp.stack([wh_f, z], axis=2)              # (H, 4, 2, H)
    bot = jnp.stack([z, wh_b], axis=2)              # (H, 4, 2, H)
    whh = jnp.concatenate([top, bot], axis=0).reshape(2 * H, 8 * H)

    bf = (bif + bhf).reshape(4, H)
    bb = (bib + bhb).reshape(4, H)
    bias = jnp.stack([bf, bb], axis=1).reshape(1, 8 * H)

    return (wih.astype(jnp.bfloat16), whh.astype(jnp.bfloat16),
            bias.astype(jnp.float32))


def bilstm_layer(x2d, layer, H, T, B, fc=None):
    """x2d: (T*B, D) time-major rows -> (T*B, 2H)  or (T*B, O) when fc is given."""
    wih, whh, bias = _pack_bilstm_weights(layer["fwd"], layer["bwd"], H)

    if fc is None:
        return pl.pallas_call(
            _make_bilstm_kernel(T, B, H, with_fc=False),
            out_shape=jax.ShapeDtypeStruct((T * B, 2 * H), jnp.float32),
            in_specs=[_VMEM, _VMEM, _VMEM, _VMEM],
            out_specs=_VMEM,
        )(x2d, wih, whh, bias)

    fc_w, fc_b = fc
    O = fc_w.shape[0]
    wfc = jnp.transpose(fc_w).astype(jnp.bfloat16)
    bfc = fc_b.reshape(1, O).astype(jnp.float32)
    return pl.pallas_call(
        _make_bilstm_kernel(T, B, H, with_fc=True),
        out_shape=jax.ShapeDtypeStruct((T * B, O), jnp.float32),
        in_specs=[_VMEM, _VMEM, _VMEM, _VMEM, _VMEM, _VMEM],
        out_specs=_VMEM,
        scratch_shapes=[pltpu.VMEM((T * B, 2 * H), jnp.float32)],   # assembled layer output
    )(x2d, wih, whh, bias, wfc, bfc)


# ------------------------------ full forward ------------------------------

def mfcc_encoder_forward(x, params):
    if x.ndim < 3:                                  # unsqueeze(0) in torch
        x = x[None]
    B = x.shape[0]
    H = params["hidden_dim"]

    x = jnp.transpose(x, (1, 0, 2))                 # one-time switch to time-major (T, B, F)

    # CNNFeatureExtractor: depth CBR blocks (CBR's .squeeze() only drops the channel dim here)
    for cbr in params["cbr"]:
        x = conv_bn_relu(x, cbr)                    # (T', B, F)

    T_cur, _, F = x.shape
    h = x.reshape(T_cur * B, F)                     # free leading-dim merge -> token rows

    # stacked bidirectional LSTM; final Linear fused into the last layer's kernel
    n_layers = len(params["lstm"])
    for li, layer in enumerate(params["lstm"]):
        if li < n_layers - 1:
            h = bilstm_layer(h, layer, H, T_cur, B, fc=None)
        else:
            h = bilstm_layer(h, layer, H, T_cur, B,
                             fc=(params["fc_w"], params["fc_b"]))

    O = params["fc_w"].shape[0]
    return jnp.transpose(h.reshape(T_cur, B, O), (1, 0, 2))   # (B, T', O)


# --------------------------- deterministic params ---------------------------

def init_params(key, input_dim, hidden_dim, output_dim,
                feature_extractor_depth=1, lstm_layers=2):
    # torch's fc expects hidden_dim * lstm_layers inputs while the LSTM emits 2 * hidden_dim.
    assert hidden_dim * lstm_layers == 2 * hidden_dim, (
        "MFCCEncoder is only shape-consistent for lstm_layers == 2")

    keys = iter(jax.random.split(key, 128))

    def nrm(shape, s=0.1):
        return s * jax.random.normal(next(keys), shape, jnp.float32)

    cbr = []
    for _ in range(feature_extractor_depth):
        cbr.append(dict(conv_w=nrm((5, 3), 0.2),
                        conv_b=jnp.float32(0.05),
                        gamma=jnp.float32(1.2), beta=jnp.float32(0.1),
                        mean=jnp.float32(0.05), var=jnp.float32(0.8)))

    lstm = []
    d_in = input_dim
    for _ in range(lstm_layers):
        def dir_params(d):
            return (nrm((4 * hidden_dim, d)),             # W_ih  (torch layout, gates i,f,g,o)
                    nrm((4 * hidden_dim, hidden_dim)),    # W_hh
                    nrm((4 * hidden_dim,)),               # b_ih
                    nrm((4 * hidden_dim,)))               # b_hh
        lstm.append(dict(fwd=dir_params(d_in), bwd=dir_params(d_in)))
        d_in = 2 * hidden_dim                             # bidirectional output feeds next layer

    fc_w = nrm((output_dim, hidden_dim * lstm_layers))    # == (output_dim, 2*hidden_dim)
    fc_b = nrm((output_dim,))
    return dict(cbr=cbr, lstm=lstm, fc_w=fc_w, fc_b=fc_b, hidden_dim=hidden_dim)


# ----------------------------------- main ------------------------------------

if __name__ == "__main__":
    B, T = 2, 16
    input_dim, hidden_dim, output_dim = 16, 32, 8

    key = jax.random.PRNGKey(0)
    k_x, k_p = jax.random.split(key)
    x = jax.random.normal(k_x, (B, T, input_dim), jnp.float32)
    params = init_params(k_p, input_dim, hidden_dim, output_dim,
                         feature_extractor_depth=1, lstm_layers=2)

    fwd = jax.jit(lambda xx: mfcc_encoder_forward(xx, params))
    y = jax.block_until_ready(fwd(x))

    T_out = (T - 1) // 2 + 1                              # conv stride 2 along time
    assert y.shape == (B, T_out, output_dim), y.shape
    assert bool(jnp.isfinite(y).all())
    print("KERNEL_OK")
</pallas_src>

<mosaic_0001>
module attributes {stable_mosaic.version = 11 : i64} {
  func.func @kernel(%arg0: memref<16x64xf32, #tpu.memory_space<vmem>>, %arg1: memref<64x256xbf16, #tpu.memory_space<vmem>>, %arg2: memref<64x256xbf16, #tpu.memory_space<vmem>>, %arg3: memref<1x256xf32, #tpu.memory_space<vmem>>, %arg4: memref<64x8xbf16, #tpu.memory_space<vmem>>, %arg5: memref<1x8xf32, #tpu.memory_space<vmem>>, %arg6: memref<16x8xf32, #tpu.memory_space<vmem>>, %arg7: memref<16x64xf32, #tpu.memory_space<vmem>>) attributes {dimension_semantics = [], scalar_prefetch = 0 : i64, scratch_operands = 1 : i64, tpu.core_type = #tpu.core_type<tc>} {
    %c0 = arith.constant 0 : index
    %c0_0 = arith.constant 0 : index
    %0 = vector.load %arg0[%c0, %c0_0] : memref<16x64xf32, #tpu.memory_space<vmem>>, vector<16x64xf32>
    %1 = arith.truncf %0 : vector<16x64xf32> to vector<16x64xbf16>
    %c0_1 = arith.constant 0 : index
    %c0_2 = arith.constant 0 : index
    %2 = vector.load %arg1[%c0_1, %c0_2] : memref<64x256xbf16, #tpu.memory_space<vmem>>, vector<64x256xbf16>
    %cst = arith.constant dense<0.000000e+00> : vector<16x256xf32>
    %3 = tpu.matmul %1, %2, %cst {dimension_numbers = #tpu.dot_dimension_numbers<[1], [0], [0], [1], [0, 0, 1, 1], [], []>} : vector<16x64xbf16>, vector<64x256xbf16>, vector<16x256xf32> -> vector<16x256xf32>
    %c0_3 = arith.constant 0 : index
    %c0_4 = arith.constant 0 : index
    %4 = vector.load %arg3[%c0_3, %c0_4] : memref<1x256xf32, #tpu.memory_space<vmem>>, vector<1x256xf32>
    %5 = vector.broadcast %4 : vector<1x256xf32> to vector<16x256xf32>
    %6 = arith.addf %3, %5 : vector<16x256xf32>
    %c0_5 = arith.constant 0 : index
    %c0_6 = arith.constant 0 : index
    %7 = vector.load %arg2[%c0_5, %c0_6] : memref<64x256xbf16, #tpu.memory_space<vmem>>, vector<64x256xbf16>
    %8 = tpu.iota {dimensions = array<i32: 1>} : vector<1x256xi32>
    %c64_i32 = arith.constant 64 : i32
    %c0_i32 = arith.constant 0 : i32
    %9 = arith.cmpi eq, %c64_i32, %c0_i32 : i32
    %c1_i32 = arith.constant 1 : i32
    %10 = arith.select %9, %c1_i32, %c64_i32 : i32
    %11 = vector.broadcast %10 : i32 to vector<1x256xi32>
    %12 = arith.remsi %8, %11 : vector<1x256xi32>
    %c0_i32_7 = arith.constant 0 : i32
    %13 = vector.broadcast %c0_i32_7 : i32 to vector<1x256xi32>
    %14 = arith.cmpi ne, %12, %13 : vector<1x256xi32>
    %c0_i32_8 = arith.constant 0 : i32
    %15 = vector.broadcast %c0_i32_8 : i32 to vector<1x256xi32>
    %16 = arith.cmpi slt, %12, %15 : vector<1x256xi32>
    %c0_i32_9 = arith.constant 0 : i32
    %17 = arith.cmpi slt, %10, %c0_i32_9 : i32
    %18 = vector.broadcast %17 : i1 to vector<1x256xi1>
    %19 = vector.broadcast %18 : vector<1x256xi1> to vector<1x256xi1>
    %20 = arith.xori %16, %19 : vector<1x256xi1>
    %21 = arith.andi %20, %14 : vector<1x256xi1>
    %22 = vector.broadcast %10 : i32 to vector<1x256xi32>
    %23 = arith.addi %12, %22 : vector<1x256xi32>
    %24 = arith.select %21, %23, %12 : vector<1x256xi1>, vector<1x256xi32>
    %c32_i32 = arith.constant 32 : i32
    %25 = vector.broadcast %c32_i32 : i32 to vector<1x256xi32>
    %26 = arith.cmpi slt, %24, %25 : vector<1x256xi32>
    %cst_10 = arith.constant 0.000000e+00 : f32
    %27 = vector.broadcast %cst_10 : f32 to vector<2x64xf32>
    %cst_11 = arith.constant 0.000000e+00 : f32
    %28 = vector.broadcast %cst_11 : f32 to vector<2x64xf32>
    %29 = arith.truncf %27 : vector<2x64xf32> to vector<2x64xbf16>
    %cst_12 = arith.constant dense<0.000000e+00> : vector<2x256xf32>
    %30 = tpu.matmul %29, %7, %cst_12 {dimension_numbers = #tpu.dot_dimension_numbers<[1], [0], [0], [1], [0, 0, 1, 1], [], []>} : vector<2x64xbf16>, vector<64x256xbf16>, vector<2x256xf32> -> vector<2x256xf32>
    %31 = vector.extract_strided_slice %6 {offsets = [0, 0], sizes = [2, 256], strides = [1, 1]} : vector<16x256xf32> to vector<2x256xf32>
    %32 = vector.extract_strided_slice %6 {offsets = [14, 0], sizes = [2, 256], strides = [1, 1]} : vector<16x256xf32> to vector<2x256xf32>
    %33 = vector.shape_cast %26 : vector<1x256xi1> to vector<1x256xi1>
    %34 = vector.broadcast %33 : vector<1x256xi1> to vector<2x256xi1>
    %35 = arith.select %34, %31, %32 : vector<2x256xi1>, vector<2x256xf32>
    %36 = arith.addf %30, %35 : vector<2x256xf32>
    %37 = vector.extract_strided_slice %36 {offsets = [0, 0], sizes = [2, 64], strides = [1, 1]} : vector<2x256xf32> to vector<2x64xf32>
    %cst_13 = arith.constant 5.000000e-01 : f32
    %38 = vector.broadcast %cst_13 : f32 to vector<2x64xf32>
    %39 = arith.mulf %38, %37 : vector<2x64xf32>
    %40 = math.tanh %39 : vector<2x64xf32>
    %cst_14 = arith.constant 5.000000e-01 : f32
    %41 = vector.broadcast %cst_14 : f32 to vector<2x64xf32>
    %42 = arith.mulf %41, %40 : vector<2x64xf32>
    %cst_15 = arith.constant 5.000000e-01 : f32
    %43 = vector.broadcast %cst_15 : f32 to vector<2x64xf32>
    %44 = arith.addf %42, %43 : vector<2x64xf32>
    %45 = vector.extract_strided_slice %36 {offsets = [0, 64], sizes = [2, 64], strides = [1, 1]} : vector<2x256xf32> to vector<2x64xf32>
    %cst_16 = arith.constant 5.000000e-01 : f32
    %46 = vector.broadcast %cst_16 : f32 to vector<2x64xf32>
    %47 = arith.mulf %46, %45 : vector<2x64xf32>
    %48 = math.tanh %47 : vector<2x64xf32>
    %cst_17 = arith.constant 5.000000e-01 : f32
    %49 = vector.broadcast %cst_17 : f32 to vector<2x64xf32>
    %50 = arith.mulf %49, %48 : vector<2x64xf32>
    %cst_18 = arith.constant 5.000000e-01 : f32
    %51 = vector.broadcast %cst_18 : f32 to vector<2x64xf32>
    %52 = arith.addf %50, %51 : vector<2x64xf32>
    %53 = vector.extract_strided_slice %36 {offsets = [0, 128], sizes = [2, 64], strides = [1, 1]} : vector<2x256xf32> to vector<2x64xf32>
    %54 = math.tanh %53 : vector<2x64xf32>
    %55 = vector.extract_strided_slice %36 {offsets = [0, 192], sizes = [2, 64], strides = [1, 1]} : vector<2x256xf32> to vector<2x64xf32>
    %cst_19 = arith.constant 5.000000e-01 : f32
    %56 = vector.broadcast %cst_19 : f32 to vector<2x64xf32>
    %57 = arith.mulf %56, %55 : vector<2x64xf32>
    %58 = math.tanh %57 : vector<2x64xf32>
    %cst_20 = arith.constant 5.000000e-01 : f32
    %59 = vector.broadcast %cst_20 : f32 to vector<2x64xf32>
    %60 = arith.mulf %59, %58 : vector<2x64xf32>
    %cst_21 = arith.constant 5.000000e-01 : f32
    %61 = vector.broadcast %cst_21 : f32 to vector<2x64xf32>
    %62 = arith.addf %60, %61 : vector<2x64xf32>
    %63 = arith.mulf %52, %28 : vector<2x64xf32>
    %64 = arith.mulf %44, %54 : vector<2x64xf32>
    %65 = arith.addf %63, %64 : vector<2x64xf32>
    %66 = math.tanh %65 : vector<2x64xf32>
    %67 = arith.mulf %62, %66 : vector<2x64xf32>
    %68 = vector.extract_strided_slice %67 {offsets = [0, 0], sizes = [2, 32], strides = [1, 1]} : vector<2x64xf32> to vector<2x32xf32>
    %c0_22 = arith.constant 0 : index
    %c0_23 = arith.constant 0 : index
    %69 = vector.load %arg7[%c0_22, %c0_23] : memref<16x64xf32, #tpu.memory_space<vmem>>, vector<2x32xf32>
    tpu.vector_store %arg7[%c0_22, %c0_23], %68 {strides = array<i32>} : memref<16x64xf32, #tpu.memory_space<vmem>>, vector<2x32xf32>,
    %70 = vector.extract_strided_slice %67 {offsets = [0, 32], sizes = [2, 32], strides = [1, 1]} : vector<2x64xf32> to vector<2x32xf32>
    %c14 = arith.constant 14 : index
    %c32 = arith.constant 32 : index
    %71 = vector.load %arg7[%c14, %c32] : memref<16x64xf32, #tpu.memory_space<vmem>>, vector<2x32xf32>
    tpu.vector_store %arg7[%c14, %c32], %70 {strides = array<i32>} : memref<16x64xf32, #tpu.memory_space<vmem>>, vector<2x32xf32>,
    %72 = arith.truncf %67 : vector<2x64xf32> to vector<2x64xbf16>
    %cst_24 = arith.constant dense<0.000000e+00> : vector<2x256xf32>
    %73 = tpu.matmul %72, %7, %cst_24 {dimension_numbers = #tpu.dot_dimension_numbers<[1], [0], [0], [1], [0, 0, 1, 1], [], []>} : vector<2x64xbf16>, vector<64x256xbf16>, vector<2x256xf32> -> vector<2x256xf32>
    %74 = vector.extract_strided_slice %6 {offsets = [2, 0], sizes = [2, 256], strides = [1, 1]} : vector<16x256xf32> to vector<2x256xf32>
    %75 = vector.extract_strided_slice %6 {offsets = [12, 0], sizes = [2, 256], strides = [1, 1]} : vector<16x256xf32> to vector<2x256xf32>
    %76 = vector.shape_cast %26 : vector<1x256xi1> to vector<1x256xi1>
    %77 = vector.broadcast %76 : vector<1x256xi1> to vector<2x256xi1>
    %78 = arith.select %77, %74, %75 : vector<2x256xi1>, vector<2x256xf32>
    %79 = arith.addf %73, %78 : vector<2x256xf32>
    %80 = vector.extract_strided_slice %79 {offsets = [0, 0], sizes = [2, 64], strides = [1, 1]} : vector<2x256xf32> to vector<2x64xf32>
    %cst_25 = arith.constant 5.000000e-01 : f32
    %81 = vector.broadcast %cst_25 : f32 to vector<2x64xf32>
    %82 = arith.mulf %81, %80 : vector<2x64xf32>
    %83 = math.tanh %82 : vector<2x64xf32>
    %cst_26 = arith.constant 5.000000e-01 : f32
    %84 = vector.broadcast %cst_26 : f32 to vector<2x64xf32>
    %85 = arith.mulf %84, %83 : vector<2x64xf32>
    %cst_27 = arith.constant 5.000000e-01 : f32
    %86 = vector.broadcast %cst_27 : f32 to vector<2x64xf32>
    %87 = arith.addf %85, %86 : vector<2x64xf32>
    %88 = vector.extract_strided_slice %79 {offsets = [0, 64], sizes = [2, 64], strides = [1, 1]} : vector<2x256xf32> to vector<2x64xf32>
    %cst_28 = arith.constant 5.000000e-01 : f32
    %89 = vector.broadcast %cst_28 : f32 to vector<2x64xf32>
    %90 = arith.mulf %89, %88 : vector<2x64xf32>
    %91 = math.tanh %90 : vector<2x64xf32>
    %cst_29 = arith.constant 5.000000e-01 : f32
    %92 = vector.broadcast %cst_29 : f32 to vector<2x64xf32>
    %93 = arith.mulf %92, %91 : vector<2x64xf32>
    %cst_30 = arith.constant 5.000000e-01 : f32
    %94 = vector.broadcast %cst_30 : f32 to vector<2x64xf32>
    %95 = arith.addf %93, %94 : vector<2x64xf32>
    %96 = vector.extract_strided_slice %79 {offsets = [0, 128], sizes = [2, 64], strides = [1, 1]} : vector<2x256xf32> to vector<2x64xf32>
    %97 = math.tanh %96 : vector<2x64xf32>
    %98 = vector.extract_strided_slice %79 {offsets = [0, 192], sizes = [2, 64], strides = [1, 1]} : vector<2x256xf32> to vector<2x64xf32>
    %cst_31 = arith.constant 5.000000e-01 : f32
    %99 = vector.broadcast %cst_31 : f32 to vector<2x64xf32>
    %100 = arith.mulf %99, %98 : vector<2x64xf32>
    %101 = math.tanh %100 : vector<2x64xf32>
    %cst_32 = arith.constant 5.000000e-01 : f32
    %102 = vector.broadcast %cst_32 : f32 to vector<2x64xf32>
    %103 = arith.mulf %102, %101 : vector<2x64xf32>
    %cst_33 = arith.constant 5.000000e-01 : f32
    %104 = vector.broadcast %cst_33 : f32 to vector<2x64xf32>
    %105 = arith.addf %103, %104 : vector<2x64xf32>
    %106 = arith.mulf %95, %65 : vector<2x64xf32>
    %107 = arith.mulf %87, %97 : vector<2x64xf32>
    %108 = arith.addf %106, %107 : vector<2x64xf32>
    %109 = math.tanh %108 : vector<2x64xf32>
    %110 = arith.mulf %105, %109 : vector<2x64xf32>
    %111 = vector.extract_strided_slice %110 {offsets = [0, 0], sizes = [2, 32], strides = [1, 1]} : vector<2x64xf32> to vector<2x32xf32>
    %c2 = arith.constant 2 : index
    %c0_34 = arith.constant 0 : index
    %112 = vector.load %arg7[%c2, %c0_34] : memref<16x64xf32, #tpu.memory_space<vmem>>, vector<2x32xf32>
    tpu.vector_store %arg7[%c2, %c0_34], %111 {strides = array<i32>} : memref<16x64xf32, #tpu.memory_space<vmem>>, vector<2x32xf32>,
    %113 = vector.extract_strided_slice %110 {offsets = [0, 32], sizes = [2, 32], strides = [1, 1]} : vector<2x64xf32> to vector<2x32xf32>
    %c12 = arith.constant 12 : index
    %c32_35 = arith.constant 32 : index
    %114 = vector.load %arg7[%c12, %c32_35] : memref<16x64xf32, #tpu.memory_space<vmem>>, vector<2x32xf32>
    tpu.vector_store %arg7[%c12, %c32_35], %113 {strides = array<i32>} : memref<16x64xf32, #tpu.memory_space<vmem>>, vector<2x32xf32>,
    %115 = arith.truncf %110 : vector<2x64xf32> to vector<2x64xbf16>
    %cst_36 = arith.constant dense<0.000000e+00> : vector<2x256xf32>
    %116 = tpu.matmul %115, %7, %cst_36 {dimension_numbers = #tpu.dot_dimension_numbers<[1], [0], [0], [1], [0, 0, 1, 1], [], []>} : vector<2x64xbf16>, vector<64x256xbf16>, vector<2x256xf32> -> vector<2x256xf32>
    %117 = vector.extract_strided_slice %6 {offsets = [4, 0], sizes = [2, 256], strides = [1, 1]} : vector<16x256xf32> to vector<2x256xf32>
    %118 = vector.extract_strided_slice %6 {offsets = [10, 0], sizes = [2, 256], strides = [1, 1]} : vector<16x256xf32> to vector<2x256xf32>
    %119 = vector.shape_cast %26 : vector<1x256xi1> to vector<1x256xi1>
    %120 = vector.broadcast %119 : vector<1x256xi1> to vector<2x256xi1>
    %121 = arith.select %120, %117, %118 : vector<2x256xi1>, vector<2x256xf32>
    %122 = arith.addf %116, %121 : vector<2x256xf32>
    %123 = vector.extract_strided_slice %122 {offsets = [0, 0], sizes = [2, 64], strides = [1, 1]} : vector<2x256xf32> to vector<2x64xf32>
    %cst_37 = arith.constant 5.000000e-01 : f32
    %124 = vector.broadcast %cst_37 : f32 to vector<2x64xf32>
    %125 = arith.mulf %124, %123 : vector<2x64xf32>
    %126 = math.tanh %125 : vector<2x64xf32>
    %cst_38 = arith.constant 5.000000e-01 : f32
    %127 = vector.broadcast %cst_38 : f32 to vector<2x64xf32>
    %128 = arith.mulf %127, %126 : vector<2x64xf32>
    %cst_39 = arith.constant 5.000000e-01 : f32
    %129 = vector.broadcast %cst_39 : f32 to vector<2x64xf32>
    %130 = arith.addf %128, %129 : vector<2x64xf32>
    %131 = vector.extract_strided_slice %122 {offsets = [0, 64], sizes = [2, 64], strides = [1, 1]} : vector<2x256xf32> to vector<2x64xf32>
    %cst_40 = arith.constant 5.000000e-01 : f32
    %132 = vector.broadcast %cst_40 : f32 to vector<2x64xf32>
    %133 = arith.mulf %132, %131 : vector<2x64xf32>
    %134 = math.tanh %133 : vector<2x64xf32>
    %cst_41 = arith.constant 5.000000e-01 : f32
    %135 = vector.broadcast %cst_41 : f32 to vector<2x64xf32>
    %136 = arith.mulf %135, %134 : vector<2x64xf32>
    %cst_42 = arith.constant 5.000000e-01 : f32
    %137 = vector.broadcast %cst_42 : f32 to vector<2x64xf32>
    %138 = arith.addf %136, %137 : vector<2x64xf32>
    %139 = vector.extract_strided_slice %122 {offsets = [0, 128], sizes = [2, 64], strides = [1, 1]} : vector<2x256xf32> to vector<2x64xf32>
    %140 = math.tanh %139 : vector<2x64xf32>
    %141 = vector.extract_strided_slice %122 {offsets = [0, 192], sizes = [2, 64], strides = [1, 1]} : vector<2x256xf32> to vector<2x64xf32>
    %cst_43 = arith.constant 5.000000e-01 : f32
    %142 = vector.broadcast %cst_43 : f32 to vector<2x64xf32>
    %143 = arith.mulf %142, %141 : vector<2x64xf32>
    %144 = math.tanh %143 : vector<2x64xf32>
    %cst_44 = arith.constant 5.000000e-01 : f32
    %145 = vector.broadcast %cst_44 : f32 to vector<2x64xf32>
    %146 = arith.mulf %145, %144 : vector<2x64xf32>
    %cst_45 = arith.constant 5.000000e-01 : f32
    %147 = vector.broadcast %cst_45 : f32 to vector<2x64xf32>
    %148 = arith.addf %146, %147 : vector<2x64xf32>
    %149 = arith.mulf %138, %108 : vector<2x64xf32>
    %150 = arith.mulf %130, %140 : vector<2x64xf32>
    %151 = arith.addf %149, %150 : vector<2x64xf32>
    %152 = math.tanh %151 : vector<2x64xf32>
    %153 = arith.mulf %148, %152 : vector<2x64xf32>
    %154 = vector.extract_strided_slice %153 {offsets = [0, 0], sizes = [2, 32], strides = [1, 1]} : vector<2x64xf32> to vector<2x32xf32>
    %c4 = arith.constant 4 : index
    %c0_46 = arith.constant 0 : index
    %155 = vector.load %arg7[%c4, %c0_46] : memref<16x64xf32, #tpu.memory_space<vmem>>, vector<2x32xf32>
    tpu.vector_store %arg7[%c4, %c0_46], %154 {strides = array<i32>} : memref<16x64xf32, #tpu.memory_space<vmem>>, vector<2x32xf32>,
    %156 = vector.extract_strided_slice %153 {offsets = [0, 32], sizes = [2, 32], strides = [1, 1]} : vector<2x64xf32> to vector<2x32xf32>
    %c10 = arith.constant 10 : index
    %c32_47 = arith.constant 32 : index
    %157 = vector.load %arg7[%c10, %c32_47] : memref<16x64xf32, #tpu.memory_space<vmem>>, vector<2x32xf32>
    tpu.vector_store %arg7[%c10, %c32_47], %156 {strides = array<i32>} : memref<16x64xf32, #tpu.memory_space<vmem>>, vector<2x32xf32>,
    %158 = arith.truncf %153 : vector<2x64xf32> to vector<2x64xbf16>
    %cst_48 = arith.constant dense<0.000000e+00> : vector<2x256xf32>
    %159 = tpu.matmul %158, %7, %cst_48 {dimension_numbers = #tpu.dot_dimension_numbers<[1], [0], [0], [1], [0, 0, 1, 1], [], []>} : vector<2x64xbf16>, vector<64x256xbf16>, vector<2x256xf32> -> vector<2x256xf32>
    %160 = vector.extract_strided_slice %6 {offsets = [6, 0], sizes = [2, 256], strides = [1, 1]} : vector<16x256xf32> to vector<2x256xf32>
    %161 = vector.extract_strided_slice %6 {offsets = [8, 0], sizes = [2, 256], strides = [1, 1]} : vector<16x256xf32> to vector<2x256xf32>
    %162 = vector.shape_cast %26 : vector<1x256xi1> to vector<1x256xi1>
    %163 = vector.broadcast %162 : vector<1x256xi1> to vector<2x256xi1>
    %164 = arith.select %163, %160, %161 : vector<2x256xi1>, vector<2x256xf32>
    %165 = arith.addf %159, %164 : vector<2x256xf32>
    %166 = vector.extract_strided_slice %165 {offsets = [0, 0], sizes = [2, 64], strides = [1, 1]} : vector<2x256xf32> to vector<2x64xf32>
    %cst_49 = arith.constant 5.000000e-01 : f32
    %167 = vector.broadcast %cst_49 : f32 to vector<2x64xf32>
    %168 = arith.mulf %167, %166 : vector<2x64xf32>
    %169 = math.tanh %168 : vector<2x64xf32>
    %cst_50 = arith.constant 5.000000e-01 : f32
    %170 = vector.broadcast %cst_50 : f32 to vector<2x64xf32>
    %171 = arith.mulf %170, %169 : vector<2x64xf32>
    %cst_51 = arith.constant 5.000000e-01 : f32
    %172 = vector.broadcast %cst_51 : f32 to vector<2x64xf32>
    %173 = arith.addf %171, %172 : vector<2x64xf32>
    %174 = vector.extract_strided_slice %165 {offsets = [0, 64], sizes = [2, 64], strides = [1, 1]} : vector<2x256xf32> to vector<2x64xf32>
    %cst_52 = arith.constant 5.000000e-01 : f32
    %175 = vector.broadcast %cst_52 : f32 to vector<2x64xf32>
    %176 = arith.mulf %175, %174 : vector<2x64xf32>
    %177 = math.tanh %176 : vector<2x64xf32>
    %cst_53 = arith.constant 5.000000e-01 : f32
    %178 = vector.broadcast %cst_53 : f32 to vector<2x64xf32>
    %179 = arith.mulf %178, %177 : vector<2x64xf32>
    %cst_54 = arith.constant 5.000000e-01 : f32
    %180 = vector.broadcast %cst_54 : f32 to vector<2x64xf32>
    %181 = arith.addf %179, %180 : vector<2x64xf32>
    %182 = vector.extract_strided_slice %165 {offsets = [0, 128], sizes = [2, 64], strides = [1, 1]} : vector<2x256xf32> to vector<2x64xf32>
    %183 = math.tanh %182 : vector<2x64xf32>
    %184 = vector.extract_strided_slice %165 {offsets = [0, 192], sizes = [2, 64], strides = [1, 1]} : vector<2x256xf32> to vector<2x64xf32>
    %cst_55 = arith.constant 5.000000e-01 : f32
    %185 = vector.broadcast %cst_55 : f32 to vector<2x64xf32>
    %186 = arith.mulf %185, %184 : vector<2x64xf32>
    %187 = math.tanh %186 : vector<2x64xf32>
    %cst_56 = arith.constant 5.000000e-01 : f32
    %188 = vector.broadcast %cst_56 : f32 to vector<2x64xf32>
    %189 = arith.mulf %188, %187 : vector<2x64xf32>
    %cst_57 = arith.constant 5.000000e-01 : f32
    %190 = vector.broadcast %cst_57 : f32 to vector<2x64xf32>
    %191 = arith.addf %189, %190 : vector<2x64xf32>
    %192 = arith.mulf %181, %151 : vector<2x64xf32>
    %193 = arith.mulf %173, %183 : vector<2x64xf32>
    %194 = arith.addf %192, %193 : vector<2x64xf32>
    %195 = math.tanh %194 : vector<2x64xf32>
    %196 = arith.mulf %191, %195 : vector<2x64xf32>
    %197 = vector.extract_strided_slice %196 {offsets = [0, 0], sizes = [2, 32], strides = [1, 1]} : vector<2x64xf32> to vector<2x32xf32>
    %c6 = arith.constant 6 : index
    %c0_58 = arith.constant 0 : index
    %198 = vector.load %arg7[%c6, %c0_58] : memref<16x64xf32, #tpu.memory_space<vmem>>, vector<2x32xf32>
    tpu.vector_store %arg7[%c6, %c0_58], %197 {strides = array<i32>} : memref<16x64xf32, #tpu.memory_space<vmem>>, vector<2x32xf32>,
    %199 = vector.extract_strided_slice %196 {offsets = [0, 32], sizes = [2, 32], strides = [1, 1]} : vector<2x64xf32> to vector<2x32xf32>
    %c8 = arith.constant 8 : index
    %c32_59 = arith.constant 32 : index
    %200 = vector.load %arg7[%c8, %c32_59] : memref<16x64xf32, #tpu.memory_space<vmem>>, vector<2x32xf32>
    tpu.vector_store %arg7[%c8, %c32_59], %199 {strides = array<i32>} : memref<16x64xf32, #tpu.memory_space<vmem>>, vector<2x32xf32>,
    %201 = arith.truncf %196 : vector<2x64xf32> to vector<2x64xbf16>
    %cst_60 = arith.constant dense<0.000000e+00> : vector<2x256xf32>
    %202 = tpu.matmul %201, %7, %cst_60 {dimension_numbers = #tpu.dot_dimension_numbers<[1], [0], [0], [1], [0, 0, 1, 1], [], []>} : vector<2x64xbf16>, vector<64x256xbf16>, vector<2x256xf32> -> vector<2x256xf32>
    %203 = vector.extract_strided_slice %6 {offsets = [8, 0], sizes = [2, 256], strides = [1, 1]} : vector<16x256xf32> to vector<2x256xf32>
    %204 = vector.extract_strided_slice %6 {offsets = [6, 0], sizes = [2, 256], strides = [1, 1]} : vector<16x256xf32> to vector<2x256xf32>
    %205 = vector.shape_cast %26 : vector<1x256xi1> to vector<1x256xi1>
    %206 = vector.broadcast %205 : vector<1x256xi1> to vector<2x256xi1>
    %207 = arith.select %206, %203, %204 : vector<2x256xi1>, vector<2x256xf32>
    %208 = arith.addf %202, %207 : vector<2x256xf32>
    %209 = vector.extract_strided_slice %208 {offsets = [0, 0], sizes = [2, 64], strides = [1, 1]} : vector<2x256xf32> to vector<2x64xf32>
    %cst_61 = arith.constant 5.000000e-01 : f32
    %210 = vector.broadcast %cst_61 : f32 to vector<2x64xf32>
    %211 = arith.mulf %210, %209 : vector<2x64xf32>
    %212 = math.tanh %211 : vector<2x64xf32>
    %cst_62 = arith.constant 5.000000e-01 : f32
    %213 = vector.broadcast %cst_62 : f32 to vector<2x64xf32>
    %214 = arith.mulf %213, %212 : vector<2x64xf32>
    %cst_63 = arith.constant 5.000000e-01 : f32
    %215 = vector.broadcast %cst_63 : f32 to vector<2x64xf32>
    %216 = arith.addf %214, %215 : vector<2x64xf32>
    %217 = vector.extract_strided_slice %208 {offsets = [0, 64], sizes = [2, 64], strides = [1, 1]} : vector<2x256xf32> to vector<2x64xf32>
    %cst_64 = arith.constant 5.000000e-01 : f32
    %218 = vector.broadcast %cst_64 : f32 to vector<2x64xf32>
    %219 = arith.mulf %218, %217 : vector<2x64xf32>
    %220 = math.tanh %219 : vector<2x64xf32>
    %cst_65 = arith.constant 5.000000e-01 : f32
    %221 = vector.broadcast %cst_65 : f32 to vector<2x64xf32>
    %222 = arith.mulf %221, %220 : vector<2x64xf32>
    %cst_66 = arith.constant 5.000000e-01 : f32
    %223 = vector.broadcast %cst_66 : f32 to vector<2x64xf32>
    %224 = arith.addf %222, %223 : vector<2x64xf32>
    %225 = vector.extract_strided_slice %208 {offsets = [0, 128], sizes = [2, 64], strides = [1, 1]} : vector<2x256xf32> to vector<2x64xf32>
    %226 = math.tanh %225 : vector<2x64xf32>
    %227 = vector.extract_strided_slice %208 {offsets = [0, 192], sizes = [2, 64], strides = [1, 1]} : vector<2x256xf32> to vector<2x64xf32>
    %cst_67 = arith.constant 5.000000e-01 : f32
    %228 = vector.broadcast %cst_67 : f32 to vector<2x64xf32>
    %229 = arith.mulf %228, %227 : vector<2x64xf32>
    %230 = math.tanh %229 : vector<2x64xf32>
    %cst_68 = arith.constant 5.000000e-01 : f32
    %231 = vector.broadcast %cst_68 : f32 to vector<2x64xf32>
    %232 = arith.mulf %231, %230 : vector<2x64xf32>
    %cst_69 = arith.constant 5.000000e-01 : f32
    %233 = vector.broadcast %cst_69 : f32 to vector<2x64xf32>
    %234 = arith.addf %232, %233 : vector<2x64xf32>
    %235 = arith.mulf %224, %194 : vector<2x64xf32>
    %236 = arith.mulf %216, %226 : vector<2x64xf32>
    %237 = arith.addf %235, %236 : vector<2x64xf32>
    %238 = math.tanh %237 : vector<2x64xf32>
    %239 = arith.mulf %234, %238 : vector<2x64xf32>
    %240 = vector.extract_strided_slice %239 {offsets = [0, 0], sizes = [2, 32], strides = [1, 1]} : vector<2x64xf32> to vector<2x32xf32>
    %c8_70 = arith.constant 8 : index
    %c0_71 = arith.constant 0 : index
    %241 = vector.load %arg7[%c8_70, %c0_71] : memref<16x64xf32, #tpu.memory_space<vmem>>, vector<2x32xf32>
    tpu.vector_store %arg7[%c8_70, %c0_71], %240 {strides = array<i32>} : memref<16x64xf32, #tpu.memory_space<vmem>>, vector<2x32xf32>,
    %242 = vector.extract_strided_slice %239 {offsets = [0, 32], sizes = [2, 32], strides = [1, 1]} : vector<2x64xf32> to vector<2x32xf32>
    %c6_72 = arith.constant 6 : index
    %c32_73 = arith.constant 32 : index
    %243 = vector.load %arg7[%c6_72, %c32_73] : memref<16x64xf32, #tpu.memory_space<vmem>>, vector<2x32xf32>
    tpu.vector_store %arg7[%c6_72, %c32_73], %242 {strides = array<i32>} : memref<16x64xf32, #tpu.memory_space<vmem>>, vector<2x32xf32>,
    %244 = arith.truncf %239 : vector<2x64xf32> to vector<2x64xbf16>
    %cst_74 = arith.constant dense<0.000000e+00> : vector<2x256xf32>
    %245 = tpu.matmul %244, %7, %cst_74 {dimension_numbers = #tpu.dot_dimension_numbers<[1], [0], [0], [1], [0, 0, 1, 1], [], []>} : vector<2x64xbf16>, vector<64x256xbf16>, vector<2x256xf32> -> vector<2x256xf32>
    %246 = vector.extract_strided_slice %6 {offsets = [10, 0], sizes = [2, 256], strides = [1, 1]} : vector<16x256xf32> to vector<2x256xf32>
    %247 = vector.extract_strided_slice %6 {offsets = [4, 0], sizes = [2, 256], strides = [1, 1]} : vector<16x256xf32> to vector<2x256xf32>
    %248 = vector.shape_cast %26 : vector<1x256xi1> to vector<1x256xi1>
    %249 = vector.broadcast %248 : vector<1x256xi1> to vector<2x256xi1>
    %250 = arith.select %249, %246, %247 : vector<2x256xi1>, vector<2x256xf32>
    %251 = arith.addf %245, %250 : vector<2x256xf32>
    %252 = vector.extract_strided_slice %251 {offsets = [0, 0], sizes = [2, 64], strides = [1, 1]} : vector<2x256xf32> to vector<2x64xf32>
    %cst_75 = arith.constant 5.000000e-01 : f32
    %253 = vector.broadcast %cst_75 : f32 to vector<2x64xf32>
    %254 = arith.mulf %253, %252 : vector<2x64xf32>
    %255 = math.tanh %254 : vector<2x64xf32>
    %cst_76 = arith.constant 5.000000e-01 : f32
    %256 = vector.broadcast %cst_76 : f32 to vector<2x64xf32>
    %257 = arith.mulf %256, %255 : vector<2x64xf32>
    %cst_77 = arith.constant 5.000000e-01 : f32
    %258 = vector.broadcast %cst_77 : f32 to vector<2x64xf32>
    %259 = arith.addf %257, %258 : vector<2x64xf32>
    %260 = vector.extract_strided_slice %251 {offsets = [0, 64], sizes = [2, 64], strides = [1, 1]} : vector<2x256xf32> to vector<2x64xf32>
    %cst_78 = arith.constant 5.000000e-01 : f32
    %261 = vector.broadcast %cst_78 : f32 to vector<2x64xf32>
    %262 = arith.mulf %261, %260 : vector<2x64xf32>
    %263 = math.tanh %262 : vector<2x64xf32>
    %cst_79 = arith.constant 5.000000e-01 : f32
    %264 = vector.broadcast %cst_79 : f32 to vector<2x64xf32>
    %265 = arith.mulf %264, %263 : vector<2x64xf32>
    %cst_80 = arith.constant 5.000000e-01 : f32
    %266 = vector.broadcast %cst_80 : f32 to vector<2x64xf32>
    %267 = arith.addf %265, %266 : vector<2x64xf32>
    %268 = vector.extract_strided_slice %251 {offsets = [0, 128], sizes = [2, 64], strides = [1, 1]} : vector<2x256xf32> to vector<2x64xf32>
    %269 = math.tanh %268 : vector<2x64xf32>
    %270 = vector.extract_strided_slice %251 {offsets = [0, 192], sizes = [2, 64], strides = [1, 1]} : vector<2x256xf32> to vector<2x64xf32>
    %cst_81 = arith.constant 5.000000e-01 : f32
    %271 = vector.broadcast %cst_81 : f32 to vector<2x64xf32>
    %272 = arith.mulf %271, %270 : vector<2x64xf32>
    %273 = math.tanh %272 : vector<2x64xf32>
    %cst_82 = arith.constant 5.000000e-01 : f32
    %274 = vector.broadcast %cst_82 : f32 to vector<2x64xf32>
    %275 = arith.mulf %274, %273 : vector<2x64xf32>
    %cst_83 = arith.constant 5.000000e-01 : f32
    %276 = vector.broadcast %cst_83 : f32 to vector<2x64xf32>
    %277 = arith.addf %275, %276 : vector<2x64xf32>
    %278 = arith.mulf %267, %237 : vector<2x64xf32>
    %279 = arith.mulf %259, %269 : vector<2x64xf32>
    %280 = arith.addf %278, %279 : vector<2x64xf32>
    %281 = math.tanh %280 : vector<2x64xf32>
    %282 = arith.mulf %277, %281 : vector<2x64xf32>
    %283 = vector.extract_strided_slice %282 {offsets = [0, 0], sizes = [2, 32], strides = [1, 1]} : vector<2x64xf32> to vector<2x32xf32>
    %c10_84 = arith.constant 10 : index
    %c0_85 = arith.constant 0 : index
    %284 = vector.load %arg7[%c10_84, %c0_85] : memref<16x64xf32, #tpu.memory_space<vmem>>, vector<2x32xf32>
    tpu.vector_store %arg7[%c10_84, %c0_85], %283 {strides = array<i32>} : memref<16x64xf32, #tpu.memory_space<vmem>>, vector<2x32xf32>,
    %285 = vector.extract_strided_slice %282 {offsets = [0, 32], sizes = [2, 32], strides = [1, 1]} : vector<2x64xf32> to vector<2x32xf32>
    %c4_86 = arith.constant 4 : index
    %c32_87 = arith.constant 32 : index
    %286 = vector.load %arg7[%c4_86, %c32_87] : memref<16x64xf32, #tpu.memory_space<vmem>>, vector<2x32xf32>
    tpu.vector_store %arg7[%c4_86, %c32_87], %285 {strides = array<i32>} : memref<16x64xf32, #tpu.memory_space<vmem>>, vector<2x32xf32>,
    %287 = arith.truncf %282 : vector<2x64xf32> to vector<2x64xbf16>
    %cst_88 = arith.constant dense<0.000000e+00> : vector<2x256xf32>
    %288 = tpu.matmul %287, %7, %cst_88 {dimension_numbers = #tpu.dot_dimension_numbers<[1], [0], [0], [1], [0, 0, 1, 1], [], []>} : vector<2x64xbf16>, vector<64x256xbf16>, vector<2x256xf32> -> vector<2x256xf32>
    %289 = vector.extract_strided_slice %6 {offsets = [12, 0], sizes = [2, 256], strides = [1, 1]} : vector<16x256xf32> to vector<2x256xf32>
    %290 = vector.extract_strided_slice %6 {offsets = [2, 0], sizes = [2, 256], strides = [1, 1]} : vector<16x256xf32> to vector<2x256xf32>
    %291 = vector.shape_cast %26 : vector<1x256xi1> to vector<1x256xi1>
    %292 = vector.broadcast %291 : vector<1x256xi1> to vector<2x256xi1>
    %293 = arith.select %292, %289, %290 : vector<2x256xi1>, vector<2x256xf32>
    %294 = arith.addf %288, %293 : vector<2x256xf32>
    %295 = vector.extract_strided_slice %294 {offsets = [0, 0], sizes = [2, 64], strides = [1, 1]} : vector<2x256xf32> to vector<2x64xf32>
    %cst_89 = arith.constant 5.000000e-01 : f32
    %296 = vector.broadcast %cst_89 : f32 to vector<2x64xf32>
    %297 = arith.mulf %296, %295 : vector<2x64xf32>
    %298 = math.tanh %297 : vector<2x64xf32>
    %cst_90 = arith.constant 5.000000e-01 : f32
    %299 = vector.broadcast %cst_90 : f32 to vector<2x64xf32>
    %300 = arith.mulf %299, %298 : vector<2x64xf32>
    %cst_91 = arith.constant 5.000000e-01 : f32
    %301 = vector.broadcast %cst_91 : f32 to vector<2x64xf32>
    %302 = arith.addf %300, %301 : vector<2x64xf32>
    %303 = vector.extract_strided_slice %294 {offsets = [0, 64], sizes = [2, 64], strides = [1, 1]} : vector<2x256xf32> to vector<2x64xf32>
    %cst_92 = arith.constant 5.000000e-01 : f32
    %304 = vector.broadcast %cst_92 : f32 to vector<2x64xf32>
    %305 = arith.mulf %304, %303 : vector<2x64xf32>
    %306 = math.tanh %305 : vector<2x64xf32>
    %cst_93 = arith.constant 5.000000e-01 : f32
    %307 = vector.broadcast %cst_93 : f32 to vector<2x64xf32>
    %308 = arith.mulf %307, %306 : vector<2x64xf32>
    %cst_94 = arith.constant 5.000000e-01 : f32
    %309 = vector.broadcast %cst_94 : f32 to vector<2x64xf32>
    %310 = arith.addf %308, %309 : vector<2x64xf32>
    %311 = vector.extract_strided_slice %294 {offsets = [0, 128], sizes = [2, 64], strides = [1, 1]} : vector<2x256xf32> to vector<2x64xf32>
    %312 = math.tanh %311 : vector<2x64xf32>
    %313 = vector.extract_strided_slice %294 {offsets = [0, 192], sizes = [2, 64], strides = [1, 1]} : vector<2x256xf32> to vector<2x64xf32>
    %cst_95 = arith.constant 5.000000e-01 : f32
    %314 = vector.broadcast %cst_95 : f32 to vector<2x64xf32>
    %315 = arith.mulf %314, %313 : vector<2x64xf32>
    %316 = math.tanh %315 : vector<2x64xf32>
    %cst_96 = arith.constant 5.000000e-01 : f32
    %317 = vector.broadcast %cst_96 : f32 to vector<2x64xf32>
    %318 = arith.mulf %317, %316 : vector<2x64xf32>
    %cst_97 = arith.constant 5.000000e-01 : f32
    %319 = vector.broadcast %cst_97 : f32 to vector<2x64xf32>
    %320 = arith.addf %318, %319 : vector<2x64xf32>
    %321 = arith.mulf %310, %280 : vector<2x64xf32>
    %322 = arith.mulf %302, %312 : vector<2x64xf32>
    %323 = arith.addf %321, %322 : vector<2x64xf32>
    %324 = math.tanh %323 : vector<2x64xf32>
    %325 = arith.mulf %320, %324 : vector<2x64xf32>
    %326 = vector.extract_strided_slice %325 {offsets = [0, 0], sizes = [2, 32], strides = [1, 1]} : vector<2x64xf32> to vector<2x32xf32>
    %c12_98 = arith.constant 12 : index
    %c0_99 = arith.constant 0 : index
    %327 = vector.load %arg7[%c12_98, %c0_99] : memref<16x64xf32, #tpu.memory_space<vmem>>, vector<2x32xf32>
    tpu.vector_store %arg7[%c12_98, %c0_99], %326 {strides = array<i32>} : memref<16x64xf32, #tpu.memory_space<vmem>>, vector<2x32xf32>,
    %328 = vector.extract_strided_slice %325 {offsets = [0, 32], sizes = [2, 32], strides = [1, 1]} : vector<2x64xf32> to vector<2x32xf32>
    %c2_100 = arith.constant 2 : index
    %c32_101 = arith.constant 32 : index
    %329 = vector.load %arg7[%c2_100, %c32_101] : memref<16x64xf32, #tpu.memory_space<vmem>>, vector<2x32xf32>
    tpu.vector_store %arg7[%c2_100, %c32_101], %328 {strides = array<i32>} : memref<16x64xf32, #tpu.memory_space<vmem>>, vector<2x32xf32>,
    %330 = arith.truncf %325 : vector<2x64xf32> to vector<2x64xbf16>
    %cst_102 = arith.constant dense<0.000000e+00> : vector<2x256xf32>
    %331 = tpu.matmul %330, %7, %cst_102 {dimension_numbers = #tpu.dot_dimension_numbers<[1], [0], [0], [1], [0, 0, 1, 1], [], []>} : vector<2x64xbf16>, vector<64x256xbf16>, vector<2x256xf32> -> vector<2x256xf32>
    %332 = vector.extract_strided_slice %6 {offsets = [14, 0], sizes = [2, 256], strides = [1, 1]} : vector<16x256xf32> to vector<2x256xf32>
    %333 = vector.extract_strided_slice %6 {offsets = [0, 0], sizes = [2, 256], strides = [1, 1]} : vector<16x256xf32> to vector<2x256xf32>
    %334 = vector.shape_cast %26 : vector<1x256xi1> to vector<1x256xi1>
    %335 = vector.broadcast %334 : vector<1x256xi1> to vector<2x256xi1>
    %336 = arith.select %335, %332, %333 : vector<2x256xi1>, vector<2x256xf32>
    %337 = arith.addf %331, %336 : vector<2x256xf32>
    %338 = vector.extract_strided_slice %337 {offsets = [0, 0], sizes = [2, 64], strides = [1, 1]} : vector<2x256xf32> to vector<2x64xf32>
    %cst_103 = arith.constant 5.000000e-01 : f32
    %339 = vector.broadcast %cst_103 : f32 to vector<2x64xf32>
    %340 = arith.mulf %339, %338 : vector<2x64xf32>
    %341 = math.tanh %340 : vector<2x64xf32>
    %cst_104 = arith.constant 5.000000e-01 : f32
    %342 = vector.broadcast %cst_104 : f32 to vector<2x64xf32>
    %343 = arith.mulf %342, %341 : vector<2x64xf32>
    %cst_105 = arith.constant 5.000000e-01 : f32
    %344 = vector.broadcast %cst_105 : f32 to vector<2x64xf32>
    %345 = arith.addf %343, %344 : vector<2x64xf32>
    %346 = vector.extract_strided_slice %337 {offsets = [0, 64], sizes = [2, 64], strides = [1, 1]} : vector<2x256xf32> to vector<2x64xf32>
    %cst_106 = arith.constant 5.000000e-01 : f32
    %347 = vector.broadcast %cst_106 : f32 to vector<2x64xf32>
    %348 = arith.mulf %347, %346 : vector<2x64xf32>
    %349 = math.tanh %348 : vector<2x64xf32>
    %cst_107 = arith.constant 5.000000e-01 : f32
    %350 = vector.broadcast %cst_107 : f32 to vector<2x64xf32>
    %351 = arith.mulf %350, %349 : vector<2x64xf32>
    %cst_108 = arith.constant 5.000000e-01 : f32
    %352 = vector.broadcast %cst_108 : f32 to vector<2x64xf32>
    %353 = arith.addf %351, %352 : vector<2x64xf32>
    %354 = vector.extract_strided_slice %337 {offsets = [0, 128], sizes = [2, 64], strides = [1, 1]} : vector<2x256xf32> to vector<2x64xf32>
    %355 = math.tanh %354 : vector<2x64xf32>
    %356 = vector.extract_strided_slice %337 {offsets = [0, 192], sizes = [2, 64], strides = [1, 1]} : vector<2x256xf32> to vector<2x64xf32>
    %cst_109 = arith.constant 5.000000e-01 : f32
    %357 = vector.broadcast %cst_109 : f32 to vector<2x64xf32>
    %358 = arith.mulf %357, %356 : vector<2x64xf32>
    %359 = math.tanh %358 : vector<2x64xf32>
    %cst_110 = arith.constant 5.000000e-01 : f32
    %360 = vector.broadcast %cst_110 : f32 to vector<2x64xf32>
    %361 = arith.mulf %360, %359 : vector<2x64xf32>
    %cst_111 = arith.constant 5.000000e-01 : f32
    %362 = vector.broadcast %cst_111 : f32 to vector<2x64xf32>
    %363 = arith.addf %361, %362 : vector<2x64xf32>
    %364 = arith.mulf %353, %323 : vector<2x64xf32>
    %365 = arith.mulf %345, %355 : vector<2x64xf32>
    %366 = arith.addf %364, %365 : vector<2x64xf32>
    %367 = math.tanh %366 : vector<2x64xf32>
    %368 = arith.mulf %363, %367 : vector<2x64xf32>
    %369 = vector.extract_strided_slice %368 {offsets = [0, 0], sizes = [2, 32], strides = [1, 1]} : vector<2x64xf32> to vector<2x32xf32>
    %c14_112 = arith.constant 14 : index
    %c0_113 = arith.constant 0 : index
    %370 = vector.load %arg7[%c14_112, %c0_113] : memref<16x64xf32, #tpu.memory_space<vmem>>, vector<2x32xf32>
    tpu.vector_store %arg7[%c14_112, %c0_113], %369 {strides = array<i32>} : memref<16x64xf32, #tpu.memory_space<vmem>>, vector<2x32xf32>,
    %371 = vector.extract_strided_slice %368 {offsets = [0, 32], sizes = [2, 32], strides = [1, 1]} : vector<2x64xf32> to vector<2x32xf32>
    %c0_114 = arith.constant 0 : index
    %c32_115 = arith.constant 32 : index
    %372 = vector.load %arg7[%c0_114, %c32_115] : memref<16x64xf32, #tpu.memory_space<vmem>>, vector<2x32xf32>
    tpu.vector_store %arg7[%c0_114, %c32_115], %371 {strides = array<i32>} : memref<16x64xf32, #tpu.memory_space<vmem>>, vector<2x32xf32>,
    %c0_116 = arith.constant 0 : index
    %c0_117 = arith.constant 0 : index
    %373 = vector.load %arg7[%c0_116, %c0_117] : memref<16x64xf32, #tpu.memory_space<vmem>>, vector<16x64xf32>
    %374 = arith.truncf %373 : vector<16x64xf32> to vector<16x64xbf16>
    %c0_118 = arith.constant 0 : index
    %c0_119 = arith.constant 0 : index
    %375 = vector.load %arg4[%c0_118, %c0_119] : memref<64x8xbf16, #tpu.memory_space<vmem>>, vector<64x8xbf16>
    %cst_120 = arith.constant dense<0.000000e+00> : vector<16x8xf32>
    %376 = tpu.matmul %374, %375, %cst_120 {dimension_numbers = #tpu.dot_dimension_numbers<[1], [0], [0], [1], [0, 0, 1, 1], [], []>} : vector<16x64xbf16>, vector<64x8xbf16>, vector<16x8xf32> -> vector<16x8xf32>
    %c0_121 = arith.constant 0 : index
    %c0_122 = arith.constant 0 : index
    %377 = vector.load %arg5[%c0_121, %c0_122] : memref<1x8xf32, #tpu.memory_space<vmem>>, vector<1x8xf32>
    %378 = vector.broadcast %377 : vector<1x8xf32> to vector<16x8xf32>
    %379 = arith.addf %376, %378 : vector<16x8xf32>
    %c0_123 = arith.constant 0 : index
    %c0_124 = arith.constant 0 : index
    %380 = vector.load %arg6[%c0_123, %c0_124] : memref<16x8xf32, #tpu.memory_space<vmem>>, vector<16x8xf32>
    tpu.vector_store %arg6[%c0_123, %c0_124], %379 {strides = array<i32>} : memref<16x8xf32, #tpu.memory_space<vmem>>, vector<16x8xf32>,
    return
  }
}

module attributes {stable_mosaic.version = 11 : i64} {
  func.func @kernel(%arg0: memref<16x16xf32, #tpu.memory_space<vmem>>, %arg1: memref<16x256xbf16, #tpu.memory_space<vmem>>, %arg2: memref<64x256xbf16, #tpu.memory_space<vmem>>, %arg3: memref<1x256xf32, #tpu.memory_space<vmem>>, %arg4: memref<16x64xf32, #tpu.memory_space<vmem>>) attributes {dimension_semantics = [], scalar_prefetch = 0 : i64, scratch_operands = 0 : i64, tpu.core_type = #tpu.core_type<tc>} {
    %c0 = arith.constant 0 : index
    %c0_0 = arith.constant 0 : index
    %0 = vector.load %arg0[%c0, %c0_0] : memref<16x16xf32, #tpu.memory_space<vmem>>, vector<16x16xf32>
    %1 = arith.truncf %0 : vector<16x16xf32> to vector<16x16xbf16>
    %c0_1 = arith.constant 0 : index
    %c0_2 = arith.constant 0 : index
    %2 = vector.load %arg1[%c0_1, %c0_2] : memref<16x256xbf16, #tpu.memory_space<vmem>>, vector<16x256xbf16>
    %cst = arith.constant dense<0.000000e+00> : vector<16x256xf32>
    %3 = tpu.matmul %1, %2, %cst {dimension_numbers = #tpu.dot_dimension_numbers<[1], [0], [0], [1], [0, 0, 1, 1], [], []>} : vector<16x16xbf16>, vector<16x256xbf16>, vector<16x256xf32> -> vector<16x256xf32>
    %c0_3 = arith.constant 0 : index
    %c0_4 = arith.constant 0 : index
    %4 = vector.load %arg3[%c0_3, %c0_4] : memref<1x256xf32, #tpu.memory_space<vmem>>, vector<1x256xf32>
    %5 = vector.broadcast %4 : vector<1x256xf32> to vector<16x256xf32>
    %6 = arith.addf %3, %5 : vector<16x256xf32>
    %c0_5 = arith.constant 0 : index
    %c0_6 = arith.constant 0 : index
    %7 = vector.load %arg2[%c0_5, %c0_6] : memref<64x256xbf16, #tpu.memory_space<vmem>>, vector<64x256xbf16>
    %8 = tpu.iota {dimensions = array<i32: 1>} : vector<1x256xi32>
    %c64_i32 = arith.constant 64 : i32
    %c0_i32 = arith.constant 0 : i32
    %9 = arith.cmpi eq, %c64_i32, %c0_i32 : i32
    %c1_i32 = arith.constant 1 : i32
    %10 = arith.select %9, %c1_i32, %c64_i32 : i32
    %11 = vector.broadcast %10 : i32 to vector<1x256xi32>
    %12 = arith.remsi %8, %11 : vector<1x256xi32>
    %c0_i32_7 = arith.constant 0 : i32
    %13 = vector.broadcast %c0_i32_7 : i32 to vector<1x256xi32>
    %14 = arith.cmpi ne, %12, %13 : vector<1x256xi32>
    %c0_i32_8 = arith.constant 0 : i32
    %15 = vector.broadcast %c0_i32_8 : i32 to vector<1x256xi32>
    %16 = arith.cmpi slt, %12, %15 : vector<1x256xi32>
    %c0_i32_9 = arith.constant 0 : i32
    %17 = arith.cmpi slt, %10, %c0_i32_9 : i32
    %18 = vector.broadcast %17 : i1 to vector<1x256xi1>
    %19 = vector.broadcast %18 : vector<1x256xi1> to vector<1x256xi1>
    %20 = arith.xori %16, %19 : vector<1x256xi1>
    %21 = arith.andi %20, %14 : vector<1x256xi1>
    %22 = vector.broadcast %10 : i32 to vector<1x256xi32>
    %23 = arith.addi %12, %22 : vector<1x256xi32>
    %24 = arith.select %21, %23, %12 : vector<1x256xi1>, vector<1x256xi32>
    %c32_i32 = arith.constant 32 : i32
    %25 = vector.broadcast %c32_i32 : i32 to vector<1x256xi32>
    %26 = arith.cmpi slt, %24, %25 : vector<1x256xi32>
    %cst_10 = arith.constant 0.000000e+00 : f32
    %27 = vector.broadcast %cst_10 : f32 to vector<2x64xf32>
    %cst_11 = arith.constant 0.000000e+00 : f32
    %28 = vector.broadcast %cst_11 : f32 to vector<2x64xf32>
    %29 = arith.truncf %27 : vector<2x64xf32> to vector<2x64xbf16>
    %cst_12 = arith.constant dense<0.000000e+00> : vector<2x256xf32>
    %30 = tpu.matmul %29, %7, %cst_12 {dimension_numbers = #tpu.dot_dimension_numbers<[1], [0], [0], [1], [0, 0, 1, 1], [], []>} : vector<2x64xbf16>, vector<64x256xbf16>, vector<2x256xf32> -> vector<2x256xf32>
    %31 = vector.extract_strided_slice %6 {offsets = [0, 0], sizes = [2, 256], strides = [1, 1]} : vector<16x256xf32> to vector<2x256xf32>
    %32 = vector.extract_strided_slice %6 {offsets = [14, 0], sizes = [2, 256], strides = [1, 1]} : vector<16x256xf32> to vector<2x256xf32>
    %33 = vector.shape_cast %26 : vector<1x256xi1> to vector<1x256xi1>
    %34 = vector.broadcast %33 : vector<1x256xi1> to vector<2x256xi1>
    %35 = arith.select %34, %31, %32 : vector<2x256xi1>, vector<2x256xf32>
    %36 = arith.addf %30, %35 : vector<2x256xf32>
    %37 = vector.extract_strided_slice %36 {offsets = [0, 0], sizes = [2, 64], strides = [1, 1]} : vector<2x256xf32> to vector<2x64xf32>
    %cst_13 = arith.constant 5.000000e-01 : f32
    %38 = vector.broadcast %cst_13 : f32 to vector<2x64xf32>
    %39 = arith.mulf %38, %37 : vector<2x64xf32>
    %40 = math.tanh %39 : vector<2x64xf32>
    %cst_14 = arith.constant 5.000000e-01 : f32
    %41 = vector.broadcast %cst_14 : f32 to vector<2x64xf32>
    %42 = arith.mulf %41, %40 : vector<2x64xf32>
    %cst_15 = arith.constant 5.000000e-01 : f32
    %43 = vector.broadcast %cst_15 : f32 to vector<2x64xf32>
    %44 = arith.addf %42, %43 : vector<2x64xf32>
    %45 = vector.extract_strided_slice %36 {offsets = [0, 64], sizes = [2, 64], strides = [1, 1]} : vector<2x256xf32> to vector<2x64xf32>
    %cst_16 = arith.constant 5.000000e-01 : f32
    %46 = vector.broadcast %cst_16 : f32 to vector<2x64xf32>
    %47 = arith.mulf %46, %45 : vector<2x64xf32>
    %48 = math.tanh %47 : vector<2x64xf32>
    %cst_17 = arith.constant 5.000000e-01 : f32
    %49 = vector.broadcast %cst_17 : f32 to vector<2x64xf32>
    %50 = arith.mulf %49, %48 : vector<2x64xf32>
    %cst_18 = arith.constant 5.000000e-01 : f32
    %51 = vector.broadcast %cst_18 : f32 to vector<2x64xf32>
    %52 = arith.addf %50, %51 : vector<2x64xf32>
    %53 = vector.extract_strided_slice %36 {offsets = [0, 128], sizes = [2, 64], strides = [1, 1]} : vector<2x256xf32> to vector<2x64xf32>
    %54 = math.tanh %53 : vector<2x64xf32>
    %55 = vector.extract_strided_slice %36 {offsets = [0, 192], sizes = [2, 64], strides = [1, 1]} : vector<2x256xf32> to vector<2x64xf32>
    %cst_19 = arith.constant 5.000000e-01 : f32
    %56 = vector.broadcast %cst_19 : f32 to vector<2x64xf32>
    %57 = arith.mulf %56, %55 : vector<2x64xf32>
    %58 = math.tanh %57 : vector<2x64xf32>
    %cst_20 = arith.constant 5.000000e-01 : f32
    %59 = vector.broadcast %cst_20 : f32 to vector<2x64xf32>
    %60 = arith.mulf %59, %58 : vector<2x64xf32>
    %cst_21 = arith.constant 5.000000e-01 : f32
    %61 = vector.broadcast %cst_21 : f32 to vector<2x64xf32>
    %62 = arith.addf %60, %61 : vector<2x64xf32>
    %63 = arith.mulf %52, %28 : vector<2x64xf32>
    %64 = arith.mulf %44, %54 : vector<2x64xf32>
    %65 = arith.addf %63, %64 : vector<2x64xf32>
    %66 = math.tanh %65 : vector<2x64xf32>
    %67 = arith.mulf %62, %66 : vector<2x64xf32>
    %68 = vector.extract_strided_slice %67 {offsets = [0, 0], sizes = [2, 32], strides = [1, 1]} : vector<2x64xf32> to vector<2x32xf32>
    %c0_22 = arith.constant 0 : index
    %c0_23 = arith.constant 0 : index
    %69 = vector.load %arg4[%c0_22, %c0_23] : memref<16x64xf32, #tpu.memory_space<vmem>>, vector<2x32xf32>
    tpu.vector_store %arg4[%c0_22, %c0_23], %68 {strides = array<i32>} : memref<16x64xf32, #tpu.memory_space<vmem>>, vector<2x32xf32>,
    %70 = vector.extract_strided_slice %67 {offsets = [0, 32], sizes = [2, 32], strides = [1, 1]} : vector<2x64xf32> to vector<2x32xf32>
    %c14 = arith.constant 14 : index
    %c32 = arith.constant 32 : index
    %71 = vector.load %arg4[%c14, %c32] : memref<16x64xf32, #tpu.memory_space<vmem>>, vector<2x32xf32>
    tpu.vector_store %arg4[%c14, %c32], %70 {strides = array<i32>} : memref<16x64xf32, #tpu.memory_space<vmem>>, vector<2x32xf32>,
    %72 = arith.truncf %67 : vector<2x64xf32> to vector<2x64xbf16>
    %cst_24 = arith.constant dense<0.000000e+00> : vector<2x256xf32>
    %73 = tpu.matmul %72, %7, %cst_24 {dimension_numbers = #tpu.dot_dimension_numbers<[1], [0], [0], [1], [0, 0, 1, 1], [], []>} : vector<2x64xbf16>, vector<64x256xbf16>, vector<2x256xf32> -> vector<2x256xf32>
    %74 = vector.extract_strided_slice %6 {offsets = [2, 0], sizes = [2, 256], strides = [1, 1]} : vector<16x256xf32> to vector<2x256xf32>
    %75 = vector.extract_strided_slice %6 {offsets = [12, 0], sizes = [2, 256], strides = [1, 1]} : vector<16x256xf32> to vector<2x256xf32>
    %76 = vector.shape_cast %26 : vector<1x256xi1> to vector<1x256xi1>
    %77 = vector.broadcast %76 : vector<1x256xi1> to vector<2x256xi1>
    %78 = arith.select %77, %74, %75 : vector<2x256xi1>, vector<2x256xf32>
    %79 = arith.addf %73, %78 : vector<2x256xf32>
    %80 = vector.extract_strided_slice %79 {offsets = [0, 0], sizes = [2, 64], strides = [1, 1]} : vector<2x256xf32> to vector<2x64xf32>
    %cst_25 = arith.constant 5.000000e-01 : f32
    %81 = vector.broadcast %cst_25 : f32 to vector<2x64xf32>
    %82 = arith.mulf %81, %80 : vector<2x64xf32>
    %83 = math.tanh %82 : vector<2x64xf32>
    %cst_26 = arith.constant 5.000000e-01 : f32
    %84 = vector.broadcast %cst_26 : f32 to vector<2x64xf32>
    %85 = arith.mulf %84, %83 : vector<2x64xf32>
    %cst_27 = arith.constant 5.000000e-01 : f32
    %86 = vector.broadcast %cst_27 : f32 to vector<2x64xf32>
    %87 = arith.addf %85, %86 : vector<2x64xf32>
    %88 = vector.extract_strided_slice %79 {offsets = [0, 64], sizes = [2, 64], strides = [1, 1]} : vector<2x256xf32> to vector<2x64xf32>
    %cst_28 = arith.constant 5.000000e-01 : f32
    %89 = vector.broadcast %cst_28 : f32 to vector<2x64xf32>
    %90 = arith.mulf %89, %88 : vector<2x64xf32>
    %91 = math.tanh %90 : vector<2x64xf32>
    %cst_29 = arith.constant 5.000000e-01 : f32
    %92 = vector.broadcast %cst_29 : f32 to vector<2x64xf32>
    %93 = arith.mulf %92, %91 : vector<2x64xf32>
    %cst_30 = arith.constant 5.000000e-01 : f32
    %94 = vector.broadcast %cst_30 : f32 to vector<2x64xf32>
    %95 = arith.addf %93, %94 : vector<2x64xf32>
    %96 = vector.extract_strided_slice %79 {offsets = [0, 128], sizes = [2, 64], strides = [1, 1]} : vector<2x256xf32> to vector<2x64xf32>
    %97 = math.tanh %96 : vector<2x64xf32>
    %98 = vector.extract_strided_slice %79 {offsets = [0, 192], sizes = [2, 64], strides = [1, 1]} : vector<2x256xf32> to vector<2x64xf32>
    %cst_31 = arith.constant 5.000000e-01 : f32
    %99 = vector.broadcast %cst_31 : f32 to vector<2x64xf32>
    %100 = arith.mulf %99, %98 : vector<2x64xf32>
    %101 = math.tanh %100 : vector<2x64xf32>
    %cst_32 = arith.constant 5.000000e-01 : f32
    %102 = vector.broadcast %cst_32 : f32 to vector<2x64xf32>
    %103 = arith.mulf %102, %101 : vector<2x64xf32>
    %cst_33 = arith.constant 5.000000e-01 : f32
    %104 = vector.broadcast %cst_33 : f32 to vector<2x64xf32>
    %105 = arith.addf %103, %104 : vector<2x64xf32>
    %106 = arith.mulf %95, %65 : vector<2x64xf32>
    %107 = arith.mulf %87, %97 : vector<2x64xf32>
    %108 = arith.addf %106, %107 : vector<2x64xf32>
    %109 = math.tanh %108 : vector<2x64xf32>
    %110 = arith.mulf %105, %109 : vector<2x64xf32>
    %111 = vector.extract_strided_slice %110 {offsets = [0, 0], sizes = [2, 32], strides = [1, 1]} : vector<2x64xf32> to vector<2x32xf32>
    %c2 = arith.constant 2 : index
    %c0_34 = arith.constant 0 : index
    %112 = vector.load %arg4[%c2, %c0_34] : memref<16x64xf32, #tpu.memory_space<vmem>>, vector<2x32xf32>
    tpu.vector_store %arg4[%c2, %c0_34], %111 {strides = array<i32>} : memref<16x64xf32, #tpu.memory_space<vmem>>, vector<2x32xf32>,
    %113 = vector.extract_strided_slice %110 {offsets = [0, 32], sizes = [2, 32], strides = [1, 1]} : vector<2x64xf32> to vector<2x32xf32>
    %c12 = arith.constant 12 : index
    %c32_35 = arith.constant 32 : index
    %114 = vector.load %arg4[%c12, %c32_35] : memref<16x64xf32, #tpu.memory_space<vmem>>, vector<2x32xf32>
    tpu.vector_store %arg4[%c12, %c32_35], %113 {strides = array<i32>} : memref<16x64xf32, #tpu.memory_space<vmem>>, vector<2x32xf32>,
    %115 = arith.truncf %110 : vector<2x64xf32> to vector<2x64xbf16>
    %cst_36 = arith.constant dense<0.000000e+00> : vector<2x256xf32>
    %116 = tpu.matmul %115, %7, %cst_36 {dimension_numbers = #tpu.dot_dimension_numbers<[1], [0], [0], [1], [0, 0, 1, 1], [], []>} : vector<2x64xbf16>, vector<64x256xbf16>, vector<2x256xf32> -> vector<2x256xf32>
    %117 = vector.extract_strided_slice %6 {offsets = [4, 0], sizes = [2, 256], strides = [1, 1]} : vector<16x256xf32> to vector<2x256xf32>
    %118 = vector.extract_strided_slice %6 {offsets = [10, 0], sizes = [2, 256], strides = [1, 1]} : vector<16x256xf32> to vector<2x256xf32>
    %119 = vector.shape_cast %26 : vector<1x256xi1> to vector<1x256xi1>
    %120 = vector.broadcast %119 : vector<1x256xi1> to vector<2x256xi1>
    %121 = arith.select %120, %117, %118 : vector<2x256xi1>, vector<2x256xf32>
    %122 = arith.addf %116, %121 : vector<2x256xf32>
    %123 = vector.extract_strided_slice %122 {offsets = [0, 0], sizes = [2, 64], strides = [1, 1]} : vector<2x256xf32> to vector<2x64xf32>
    %cst_37 = arith.constant 5.000000e-01 : f32
    %124 = vector.broadcast %cst_37 : f32 to vector<2x64xf32>
    %125 = arith.mulf %124, %123 : vector<2x64xf32>
    %126 = math.tanh %125 : vector<2x64xf32>
    %cst_38 = arith.constant 5.000000e-01 : f32
    %127 = vector.broadcast %cst_38 : f32 to vector<2x64xf32>
    %128 = arith.mulf %127, %126 : vector<2x64xf32>
    %cst_39 = arith.constant 5.000000e-01 : f32
    %129 = vector.broadcast %cst_39 : f32 to vector<2x64xf32>
    %130 = arith.addf %128, %129 : vector<2x64xf32>
    %131 = vector.extract_strided_slice %122 {offsets = [0, 64], sizes = [2, 64], strides = [1, 1]} : vector<2x256xf32> to vector<2x64xf32>
    %cst_40 = arith.constant 5.000000e-01 : f32
    %132 = vector.broadcast %cst_40 : f32 to vector<2x64xf32>
    %133 = arith.mulf %132, %131 : vector<2x64xf32>
    %134 = math.tanh %133 : vector<2x64xf32>
    %cst_41 = arith.constant 5.000000e-01 : f32
    %135 = vector.broadcast %cst_41 : f32 to vector<2x64xf32>
    %136 = arith.mulf %135, %134 : vector<2x64xf32>
    %cst_42 = arith.constant 5.000000e-01 : f32
    %137 = vector.broadcast %cst_42 : f32 to vector<2x64xf32>
    %138 = arith.addf %136, %137 : vector<2x64xf32>
    %139 = vector.extract_strided_slice %122 {offsets = [0, 128], sizes = [2, 64], strides = [1, 1]} : vector<2x256xf32> to vector<2x64xf32>
    %140 = math.tanh %139 : vector<2x64xf32>
    %141 = vector.extract_strided_slice %122 {offsets = [0, 192], sizes = [2, 64], strides = [1, 1]} : vector<2x256xf32> to vector<2x64xf32>
    %cst_43 = arith.constant 5.000000e-01 : f32
    %142 = vector.broadcast %cst_43 : f32 to vector<2x64xf32>
    %143 = arith.mulf %142, %141 : vector<2x64xf32>
    %144 = math.tanh %143 : vector<2x64xf32>
    %cst_44 = arith.constant 5.000000e-01 : f32
    %145 = vector.broadcast %cst_44 : f32 to vector<2x64xf32>
    %146 = arith.mulf %145, %144 : vector<2x64xf32>
    %cst_45 = arith.constant 5.000000e-01 : f32
    %147 = vector.broadcast %cst_45 : f32 to vector<2x64xf32>
    %148 = arith.addf %146, %147 : vector<2x64xf32>
    %149 = arith.mulf %138, %108 : vector<2x64xf32>
    %150 = arith.mulf %130, %140 : vector<2x64xf32>
    %151 = arith.addf %149, %150 : vector<2x64xf32>
    %152 = math.tanh %151 : vector<2x64xf32>
    %153 = arith.mulf %148, %152 : vector<2x64xf32>
    %154 = vector.extract_strided_slice %153 {offsets = [0, 0], sizes = [2, 32], strides = [1, 1]} : vector<2x64xf32> to vector<2x32xf32>
    %c4 = arith.constant 4 : index
    %c0_46 = arith.constant 0 : index
    %155 = vector.load %arg4[%c4, %c0_46] : memref<16x64xf32, #tpu.memory_space<vmem>>, vector<2x32xf32>
    tpu.vector_store %arg4[%c4, %c0_46], %154 {strides = array<i32>} : memref<16x64xf32, #tpu.memory_space<vmem>>, vector<2x32xf32>,
    %156 = vector.extract_strided_slice %153 {offsets = [0, 32], sizes = [2, 32], strides = [1, 1]} : vector<2x64xf32> to vector<2x32xf32>
    %c10 = arith.constant 10 : index
    %c32_47 = arith.constant 32 : index
    %157 = vector.load %arg4[%c10, %c32_47] : memref<16x64xf32, #tpu.memory_space<vmem>>, vector<2x32xf32>
    tpu.vector_store %arg4[%c10, %c32_47], %156 {strides = array<i32>} : memref<16x64xf32, #tpu.memory_space<vmem>>, vector<2x32xf32>,
    %158 = arith.truncf %153 : vector<2x64xf32> to vector<2x64xbf16>
    %cst_48 = arith.constant dense<0.000000e+00> : vector<2x256xf32>
    %159 = tpu.matmul %158, %7, %cst_48 {dimension_numbers = #tpu.dot_dimension_numbers<[1], [0], [0], [1], [0, 0, 1, 1], [], []>} : vector<2x64xbf16>, vector<64x256xbf16>, vector<2x256xf32> -> vector<2x256xf32>
    %160 = vector.extract_strided_slice %6 {offsets = [6, 0], sizes = [2, 256], strides = [1, 1]} : vector<16x256xf32> to vector<2x256xf32>
    %161 = vector.extract_strided_slice %6 {offsets = [8, 0], sizes = [2, 256], strides = [1, 1]} : vector<16x256xf32> to vector<2x256xf32>
    %162 = vector.shape_cast %26 : vector<1x256xi1> to vector<1x256xi1>
    %163 = vector.broadcast %162 : vector<1x256xi1> to vector<2x256xi1>
    %164 = arith.select %163, %160, %161 : vector<2x256xi1>, vector<2x256xf32>
    %165 = arith.addf %159, %164 : vector<2x256xf32>
    %166 = vector.extract_strided_slice %165 {offsets = [0, 0], sizes = [2, 64], strides = [1, 1]} : vector<2x256xf32> to vector<2x64xf32>
    %cst_49 = arith.constant 5.000000e-01 : f32
    %167 = vector.broadcast %cst_49 : f32 to vector<2x64xf32>
    %168 = arith.mulf %167, %166 : vector<2x64xf32>
    %169 = math.tanh %168 : vector<2x64xf32>
    %cst_50 = arith.constant 5.000000e-01 : f32
    %170 = vector.broadcast %cst_50 : f32 to vector<2x64xf32>
    %171 = arith.mulf %170, %169 : vector<2x64xf32>
    %cst_51 = arith.constant 5.000000e-01 : f32
    %172 = vector.broadcast %cst_51 : f32 to vector<2x64xf32>
    %173 = arith.addf %171, %172 : vector<2x64xf32>
    %174 = vector.extract_strided_slice %165 {offsets = [0, 64], sizes = [2, 64], strides = [1, 1]} : vector<2x256xf32> to vector<2x64xf32>
    %cst_52 = arith.constant 5.000000e-01 : f32
    %175 = vector.broadcast %cst_52 : f32 to vector<2x64xf32>
    %176 = arith.mulf %175, %174 : vector<2x64xf32>
    %177 = math.tanh %176 : vector<2x64xf32>
    %cst_53 = arith.constant 5.000000e-01 : f32
    %178 = vector.broadcast %cst_53 : f32 to vector<2x64xf32>
    %179 = arith.mulf %178, %177 : vector<2x64xf32>
    %cst_54 = arith.constant 5.000000e-01 : f32
    %180 = vector.broadcast %cst_54 : f32 to vector<2x64xf32>
    %181 = arith.addf %179, %180 : vector<2x64xf32>
    %182 = vector.extract_strided_slice %165 {offsets = [0, 128], sizes = [2, 64], strides = [1, 1]} : vector<2x256xf32> to vector<2x64xf32>
    %183 = math.tanh %182 : vector<2x64xf32>
    %184 = vector.extract_strided_slice %165 {offsets = [0, 192], sizes = [2, 64], strides = [1, 1]} : vector<2x256xf32> to vector<2x64xf32>
    %cst_55 = arith.constant 5.000000e-01 : f32
    %185 = vector.broadcast %cst_55 : f32 to vector<2x64xf32>
    %186 = arith.mulf %185, %184 : vector<2x64xf32>
    %187 = math.tanh %186 : vector<2x64xf32>
    %cst_56 = arith.constant 5.000000e-01 : f32
    %188 = vector.broadcast %cst_56 : f32 to vector<2x64xf32>
    %189 = arith.mulf %188, %187 : vector<2x64xf32>
    %cst_57 = arith.constant 5.000000e-01 : f32
    %190 = vector.broadcast %cst_57 : f32 to vector<2x64xf32>
    %191 = arith.addf %189, %190 : vector<2x64xf32>
    %192 = arith.mulf %181, %151 : vector<2x64xf32>
    %193 = arith.mulf %173, %183 : vector<2x64xf32>
    %194 = arith.addf %192, %193 : vector<2x64xf32>
    %195 = math.tanh %194 : vector<2x64xf32>
    %196 = arith.mulf %191, %195 : vector<2x64xf32>
    %197 = vector.extract_strided_slice %196 {offsets = [0, 0], sizes = [2, 32], strides = [1, 1]} : vector<2x64xf32> to vector<2x32xf32>
    %c6 = arith.constant 6 : index
    %c0_58 = arith.constant 0 : index
    %198 = vector.load %arg4[%c6, %c0_58] : memref<16x64xf32, #tpu.memory_space<vmem>>, vector<2x32xf32>
    tpu.vector_store %arg4[%c6, %c0_58], %197 {strides = array<i32>} : memref<16x64xf32, #tpu.memory_space<vmem>>, vector<2x32xf32>,
    %199 = vector.extract_strided_slice %196 {offsets = [0, 32], sizes = [2, 32], strides = [1, 1]} : vector<2x64xf32> to vector<2x32xf32>
    %c8 = arith.constant 8 : index
    %c32_59 = arith.constant 32 : index
    %200 = vector.load %arg4[%c8, %c32_59] : memref<16x64xf32, #tpu.memory_space<vmem>>, vector<2x32xf32>
    tpu.vector_store %arg4[%c8, %c32_59], %199 {strides = array<i32>} : memref<16x64xf32, #tpu.memory_space<vmem>>, vector<2x32xf32>,
    %201 = arith.truncf %196 : vector<2x64xf32> to vector<2x64xbf16>
    %cst_60 = arith.constant dense<0.000000e+00> : vector<2x256xf32>
    %202 = tpu.matmul %201, %7, %cst_60 {dimension_numbers = #tpu.dot_dimension_numbers<[1], [0], [0], [1], [0, 0, 1, 1], [], []>} : vector<2x64xbf16>, vector<64x256xbf16>, vector<2x256xf32> -> vector<2x256xf32>
    %203 = vector.extract_strided_slice %6 {offsets = [8, 0], sizes = [2, 256], strides = [1, 1]} : vector<16x256xf32> to vector<2x256xf32>
    %204 = vector.extract_strided_slice %6 {offsets = [6, 0], sizes = [2, 256], strides = [1, 1]} : vector<16x256xf32> to vector<2x256xf32>
    %205 = vector.shape_cast %26 : vector<1x256xi1> to vector<1x256xi1>
    %206 = vector.broadcast %205 : vector<1x256xi1> to vector<2x256xi1>
    %207 = arith.select %206, %203, %204 : vector<2x256xi1>, vector<2x256xf32>
    %208 = arith.addf %202, %207 : vector<2x256xf32>
    %209 = vector.extract_strided_slice %208 {offsets = [0, 0], sizes = [2, 64], strides = [1, 1]} : vector<2x256xf32> to vector<2x64xf32>
    %cst_61 = arith.constant 5.000000e-01 : f32
    %210 = vector.broadcast %cst_61 : f32 to vector<2x64xf32>
    %211 = arith.mulf %210, %209 : vector<2x64xf32>
    %212 = math.tanh %211 : vector<2x64xf32>
    %cst_62 = arith.constant 5.000000e-01 : f32
    %213 = vector.broadcast %cst_62 : f32 to vector<2x64xf32>
    %214 = arith.mulf %213, %212 : vector<2x64xf32>
    %cst_63 = arith.constant 5.000000e-01 : f32
    %215 = vector.broadcast %cst_63 : f32 to vector<2x64xf32>
    %216 = arith.addf %214, %215 : vector<2x64xf32>
    %217 = vector.extract_strided_slice %208 {offsets = [0, 64], sizes = [2, 64], strides = [1, 1]} : vector<2x256xf32> to vector<2x64xf32>
    %cst_64 = arith.constant 5.000000e-01 : f32
    %218 = vector.broadcast %cst_64 : f32 to vector<2x64xf32>
    %219 = arith.mulf %218, %217 : vector<2x64xf32>
    %220 = math.tanh %219 : vector<2x64xf32>
    %cst_65 = arith.constant 5.000000e-01 : f32
    %221 = vector.broadcast %cst_65 : f32 to vector<2x64xf32>
    %222 = arith.mulf %221, %220 : vector<2x64xf32>
    %cst_66 = arith.constant 5.000000e-01 : f32
    %223 = vector.broadcast %cst_66 : f32 to vector<2x64xf32>
    %224 = arith.addf %222, %223 : vector<2x64xf32>
    %225 = vector.extract_strided_slice %208 {offsets = [0, 128], sizes = [2, 64], strides = [1, 1]} : vector<2x256xf32> to vector<2x64xf32>
    %226 = math.tanh %225 : vector<2x64xf32>
    %227 = vector.extract_strided_slice %208 {offsets = [0, 192], sizes = [2, 64], strides = [1, 1]} : vector<2x256xf32> to vector<2x64xf32>
    %cst_67 = arith.constant 5.000000e-01 : f32
    %228 = vector.broadcast %cst_67 : f32 to vector<2x64xf32>
    %229 = arith.mulf %228, %227 : vector<2x64xf32>
    %230 = math.tanh %229 : vector<2x64xf32>
    %cst_68 = arith.constant 5.000000e-01 : f32
    %231 = vector.broadcast %cst_68 : f32 to vector<2x64xf32>
    %232 = arith.mulf %231, %230 : vector<2x64xf32>
    %cst_69 = arith.constant 5.000000e-01 : f32
    %233 = vector.broadcast %cst_69 : f32 to vector<2x64xf32>
    %234 = arith.addf %232, %233 : vector<2x64xf32>
    %235 = arith.mulf %224, %194 : vector<2x64xf32>
    %236 = arith.mulf %216, %226 : vector<2x64xf32>
    %237 = arith.addf %235, %236 : vector<2x64xf32>
    %238 = math.tanh %237 : vector<2x64xf32>
    %239 = arith.mulf %234, %238 : vector<2x64xf32>
    %240 = vector.extract_strided_slice %239 {offsets = [0, 0], sizes = [2, 32], strides = [1, 1]} : vector<2x64xf32> to vector<2x32xf32>
    %c8_70 = arith.constant 8 : index
    %c0_71 = arith.constant 0 : index
    %241 = vector.load %arg4[%c8_70, %c0_71] : memref<16x64xf32, #tpu.memory_space<vmem>>, vector<2x32xf32>
    tpu.vector_store %arg4[%c8_70, %c0_71], %240 {strides = array<i32>} : memref<16x64xf32, #tpu.memory_space<vmem>>, vector<2x32xf32>,
    %242 = vector.extract_strided_slice %239 {offsets = [0, 32], sizes = [2, 32], strides = [1, 1]} : vector<2x64xf32> to vector<2x32xf32>
    %c6_72 = arith.constant 6 : index
    %c32_73 = arith.constant 32 : index
    %243 = vector.load %arg4[%c6_72, %c32_73] : memref<16x64xf32, #tpu.memory_space<vmem>>, vector<2x32xf32>
    tpu.vector_store %arg4[%c6_72, %c32_73], %242 {strides = array<i32>} : memref<16x64xf32, #tpu.memory_space<vmem>>, vector<2x32xf32>,
    %244 = arith.truncf %239 : vector<2x64xf32> to vector<2x64xbf16>
    %cst_74 = arith.constant dense<0.000000e+00> : vector<2x256xf32>
    %245 = tpu.matmul %244, %7, %cst_74 {dimension_numbers = #tpu.dot_dimension_numbers<[1], [0], [0], [1], [0, 0, 1, 1], [], []>} : vector<2x64xbf16>, vector<64x256xbf16>, vector<2x256xf32> -> vector<2x256xf32>
    %246 = vector.extract_strided_slice %6 {offsets = [10, 0], sizes = [2, 256], strides = [1, 1]} : vector<16x256xf32> to vector<2x256xf32>
    %247 = vector.extract_strided_slice %6 {offsets = [4, 0], sizes = [2, 256], strides = [1, 1]} : vector<16x256xf32> to vector<2x256xf32>
    %248 = vector.shape_cast %26 : vector<1x256xi1> to vector<1x256xi1>
    %249 = vector.broadcast %248 : vector<1x256xi1> to vector<2x256xi1>
    %250 = arith.select %249, %246, %247 : vector<2x256xi1>, vector<2x256xf32>
    %251 = arith.addf %245, %250 : vector<2x256xf32>
    %252 = vector.extract_strided_slice %251 {offsets = [0, 0], sizes = [2, 64], strides = [1, 1]} : vector<2x256xf32> to vector<2x64xf32>
    %cst_75 = arith.constant 5.000000e-01 : f32
    %253 = vector.broadcast %cst_75 : f32 to vector<2x64xf32>
    %254 = arith.mulf %253, %252 : vector<2x64xf32>
    %255 = math.tanh %254 : vector<2x64xf32>
    %cst_76 = arith.constant 5.000000e-01 : f32
    %256 = vector.broadcast %cst_76 : f32 to vector<2x64xf32>
    %257 = arith.mulf %256, %255 : vector<2x64xf32>
    %cst_77 = arith.constant 5.000000e-01 : f32
    %258 = vector.broadcast %cst_77 : f32 to vector<2x64xf32>
    %259 = arith.addf %257, %258 : vector<2x64xf32>
    %260 = vector.extract_strided_slice %251 {offsets = [0, 64], sizes = [2, 64], strides = [1, 1]} : vector<2x256xf32> to vector<2x64xf32>
    %cst_78 = arith.constant 5.000000e-01 : f32
    %261 = vector.broadcast %cst_78 : f32 to vector<2x64xf32>
    %262 = arith.mulf %261, %260 : vector<2x64xf32>
    %263 = math.tanh %262 : vector<2x64xf32>
    %cst_79 = arith.constant 5.000000e-01 : f32
    %264 = vector.broadcast %cst_79 : f32 to vector<2x64xf32>
    %265 = arith.mulf %264, %263 : vector<2x64xf32>
    %cst_80 = arith.constant 5.000000e-01 : f32
    %266 = vector.broadcast %cst_80 : f32 to vector<2x64xf32>
    %267 = arith.addf %265, %266 : vector<2x64xf32>
    %268 = vector.extract_strided_slice %251 {offsets = [0, 128], sizes = [2, 64], strides = [1, 1]} : vector<2x256xf32> to vector<2x64xf32>
    %269 = math.tanh %268 : vector<2x64xf32>
    %270 = vector.extract_strided_slice %251 {offsets = [0, 192], sizes = [2, 64], strides = [1, 1]} : vector<2x256xf32> to vector<2x64xf32>
    %cst_81 = arith.constant 5.000000e-01 : f32
    %271 = vector.broadcast %cst_81 : f32 to vector<2x64xf32>
    %272 = arith.mulf %271, %270 : vector<2x64xf32>
    %273 = math.tanh %272 : vector<2x64xf32>
    %cst_82 = arith.constant 5.000000e-01 : f32
    %274 = vector.broadcast %cst_82 : f32 to vector<2x64xf32>
    %275 = arith.mulf %274, %273 : vector<2x64xf32>
    %cst_83 = arith.constant 5.000000e-01 : f32
    %276 = vector.broadcast %cst_83 : f32 to vector<2x64xf32>
    %277 = arith.addf %275, %276 : vector<2x64xf32>
    %278 = arith.mulf %267, %237 : vector<2x64xf32>
    %279 = arith.mulf %259, %269 : vector<2x64xf32>
    %280 = arith.addf %278, %279 : vector<2x64xf32>
    %281 = math.tanh %280 : vector<2x64xf32>
    %282 = arith.mulf %277, %281 : vector<2x64xf32>
    %283 = vector.extract_strided_slice %282 {offsets = [0, 0], sizes = [2, 32], strides = [1, 1]} : vector<2x64xf32> to vector<2x32xf32>
    %c10_84 = arith.constant 10 : index
    %c0_85 = arith.constant 0 : index
    %284 = vector.load %arg4[%c10_84, %c0_85] : memref<16x64xf32, #tpu.memory_space<vmem>>, vector<2x32xf32>
    tpu.vector_store %arg4[%c10_84, %c0_85], %283 {strides = array<i32>} : memref<16x64xf32, #tpu.memory_space<vmem>>, vector<2x32xf32>,
    %285 = vector.extract_strided_slice %282 {offsets = [0, 32], sizes = [2, 32], strides = [1, 1]} : vector<2x64xf32> to vector<2x32xf32>
    %c4_86 = arith.constant 4 : index
    %c32_87 = arith.constant 32 : index
    %286 = vector.load %arg4[%c4_86, %c32_87] : memref<16x64xf32, #tpu.memory_space<vmem>>, vector<2x32xf32>
    tpu.vector_store %arg4[%c4_86, %c32_87], %285 {strides = array<i32>} : memref<16x64xf32, #tpu.memory_space<vmem>>, vector<2x32xf32>,
    %287 = arith.truncf %282 : vector<2x64xf32> to vector<2x64xbf16>
    %cst_88 = arith.constant dense<0.000000e+00> : vector<2x256xf32>
    %288 = tpu.matmul %287, %7, %cst_88 {dimension_numbers = #tpu.dot_dimension_numbers<[1], [0], [0], [1], [0, 0, 1, 1], [], []>} : vector<2x64xbf16>, vector<64x256xbf16>, vector<2x256xf32> -> vector<2x256xf32>
    %289 = vector.extract_strided_slice %6 {offsets = [12, 0], sizes = [2, 256], strides = [1, 1]} : vector<16x256xf32> to vector<2x256xf32>
    %290 = vector.extract_strided_slice %6 {offsets = [2, 0], sizes = [2, 256], strides = [1, 1]} : vector<16x256xf32> to vector<2x256xf32>
    %291 = vector.shape_cast %26 : vector<1x256xi1> to vector<1x256xi1>
    %292 = vector.broadcast %291 : vector<1x256xi1> to vector<2x256xi1>
    %293 = arith.select %292, %289, %290 : vector<2x256xi1>, vector<2x256xf32>
    %294 = arith.addf %288, %293 : vector<2x256xf32>
    %295 = vector.extract_strided_slice %294 {offsets = [0, 0], sizes = [2, 64], strides = [1, 1]} : vector<2x256xf32> to vector<2x64xf32>
    %cst_89 = arith.constant 5.000000e-01 : f32
    %296 = vector.broadcast %cst_89 : f32 to vector<2x64xf32>
    %297 = arith.mulf %296, %295 : vector<2x64xf32>
    %298 = math.tanh %297 : vector<2x64xf32>
    %cst_90 = arith.constant 5.000000e-01 : f32
    %299 = vector.broadcast %cst_90 : f32 to vector<2x64xf32>
    %300 = arith.mulf %299, %298 : vector<2x64xf32>
    %cst_91 = arith.constant 5.000000e-01 : f32
    %301 = vector.broadcast %cst_91 : f32 to vector<2x64xf32>
    %302 = arith.addf %300, %301 : vector<2x64xf32>
    %303 = vector.extract_strided_slice %294 {offsets = [0, 64], sizes = [2, 64], strides = [1, 1]} : vector<2x256xf32> to vector<2x64xf32>
    %cst_92 = arith.constant 5.000000e-01 : f32
    %304 = vector.broadcast %cst_92 : f32 to vector<2x64xf32>
    %305 = arith.mulf %304, %303 : vector<2x64xf32>
    %306 = math.tanh %305 : vector<2x64xf32>
    %cst_93 = arith.constant 5.000000e-01 : f32
    %307 = vector.broadcast %cst_93 : f32 to vector<2x64xf32>
    %308 = arith.mulf %307, %306 : vector<2x64xf32>
    %cst_94 = arith.constant 5.000000e-01 : f32
    %309 = vector.broadcast %cst_94 : f32 to vector<2x64xf32>
    %310 = arith.addf %308, %309 : vector<2x64xf32>
    %311 = vector.extract_strided_slice %294 {offsets = [0, 128], sizes = [2, 64], strides = [1, 1]} : vector<2x256xf32> to vector<2x64xf32>
    %312 = math.tanh %311 : vector<2x64xf32>
    %313 = vector.extract_strided_slice %294 {offsets = [0, 192], sizes = [2, 64], strides = [1, 1]} : vector<2x256xf32> to vector<2x64xf32>
    %cst_95 = arith.constant 5.000000e-01 : f32
    %314 = vector.broadcast %cst_95 : f32 to vector<2x64xf32>
    %315 = arith.mulf %314, %313 : vector<2x64xf32>
    %316 = math.tanh %315 : vector<2x64xf32>
    %cst_96 = arith.constant 5.000000e-01 : f32
    %317 = vector.broadcast %cst_96 : f32 to vector<2x64xf32>
    %318 = arith.mulf %317, %316 : vector<2x64xf32>
    %cst_97 = arith.constant 5.000000e-01 : f32
    %319 = vector.broadcast %cst_97 : f32 to vector<2x64xf32>
    %320 = arith.addf %318, %319 : vector<2x64xf32>
    %321 = arith.mulf %310, %280 : vector<2x64xf32>
    %322 = arith.mulf %302, %312 : vector<2x64xf32>
    %323 = arith.addf %321, %322 : vector<2x64xf32>
    %324 = math.tanh %323 : vector<2x64xf32>
    %325 = arith.mulf %320, %324 : vector<2x64xf32>
    %326 = vector.extract_strided_slice %325 {offsets = [0, 0], sizes = [2, 32], strides = [1, 1]} : vector<2x64xf32> to vector<2x32xf32>
    %c12_98 = arith.constant 12 : index
    %c0_99 = arith.constant 0 : index
    %327 = vector.load %arg4[%c12_98, %c0_99] : memref<16x64xf32, #tpu.memory_space<vmem>>, vector<2x32xf32>
    tpu.vector_store %arg4[%c12_98, %c0_99], %326 {strides = array<i32>} : memref<16x64xf32, #tpu.memory_space<vmem>>, vector<2x32xf32>,
    %328 = vector.extract_strided_slice %325 {offsets = [0, 32], sizes = [2, 32], strides = [1, 1]} : vector<2x64xf32> to vector<2x32xf32>
    %c2_100 = arith.constant 2 : index
    %c32_101 = arith.constant 32 : index
    %329 = vector.load %arg4[%c2_100, %c32_101] : memref<16x64xf32, #tpu.memory_space<vmem>>, vector<2x32xf32>
    tpu.vector_store %arg4[%c2_100, %c32_101], %328 {strides = array<i32>} : memref<16x64xf32, #tpu.memory_space<vmem>>, vector<2x32xf32>,
    %330 = arith.truncf %325 : vector<2x64xf32> to vector<2x64xbf16>
    %cst_102 = arith.constant dense<0.000000e+00> : vector<2x256xf32>
    %331 = tpu.matmul %330, %7, %cst_102 {dimension_numbers = #tpu.dot_dimension_numbers<[1], [0], [0], [1], [0, 0, 1, 1], [], []>} : vector<2x64xbf16>, vector<64x256xbf16>, vector<2x256xf32> -> vector<2x256xf32>
    %332 = vector.extract_strided_slice %6 {offsets = [14, 0], sizes = [2, 256], strides = [1, 1]} : vector<16x256xf32> to vector<2x256xf32>
    %333 = vector.extract_strided_slice %6 {offsets = [0, 0], sizes = [2, 256], strides = [1, 1]} : vector<16x256xf32> to vector<2x256xf32>
    %334 = vector.shape_cast %26 : vector<1x256xi1> to vector<1x256xi1>
    %335 = vector.broadcast %334 : vector<1x256xi1> to vector<2x256xi1>
    %336 = arith.select %335, %332, %333 : vector<2x256xi1>, vector<2x256xf32>
    %337 = arith.addf %331, %336 : vector<2x256xf32>
    %338 = vector.extract_strided_slice %337 {offsets = [0, 0], sizes = [2, 64], strides = [1, 1]} : vector<2x256xf32> to vector<2x64xf32>
    %cst_103 = arith.constant 5.000000e-01 : f32
    %339 = vector.broadcast %cst_103 : f32 to vector<2x64xf32>
    %340 = arith.mulf %339, %338 : vector<2x64xf32>
    %341 = math.tanh %340 : vector<2x64xf32>
    %cst_104 = arith.constant 5.000000e-01 : f32
    %342 = vector.broadcast %cst_104 : f32 to vector<2x64xf32>
    %343 = arith.mulf %342, %341 : vector<2x64xf32>
    %cst_105 = arith.constant 5.000000e-01 : f32
    %344 = vector.broadcast %cst_105 : f32 to vector<2x64xf32>
    %345 = arith.addf %343, %344 : vector<2x64xf32>
    %346 = vector.extract_strided_slice %337 {offsets = [0, 64], sizes = [2, 64], strides = [1, 1]} : vector<2x256xf32> to vector<2x64xf32>
    %cst_106 = arith.constant 5.000000e-01 : f32
    %347 = vector.broadcast %cst_106 : f32 to vector<2x64xf32>
    %348 = arith.mulf %347, %346 : vector<2x64xf32>
    %349 = math.tanh %348 : vector<2x64xf32>
    %cst_107 = arith.constant 5.000000e-01 : f32
    %350 = vector.broadcast %cst_107 : f32 to vector<2x64xf32>
    %351 = arith.mulf %350, %349 : vector<2x64xf32>
    %cst_108 = arith.constant 5.000000e-01 : f32
    %352 = vector.broadcast %cst_108 : f32 to vector<2x64xf32>
    %353 = arith.addf %351, %352 : vector<2x64xf32>
    %354 = vector.extract_strided_slice %337 {offsets = [0, 128], sizes = [2, 64], strides = [1, 1]} : vector<2x256xf32> to vector<2x64xf32>
    %355 = math.tanh %354 : vector<2x64xf32>
    %356 = vector.extract_strided_slice %337 {offsets = [0, 192], sizes = [2, 64], strides = [1, 1]} : vector<2x256xf32> to vector<2x64xf32>
    %cst_109 = arith.constant 5.000000e-01 : f32
    %357 = vector.broadcast %cst_109 : f32 to vector<2x64xf32>
    %358 = arith.mulf %357, %356 : vector<2x64xf32>
    %359 = math.tanh %358 : vector<2x64xf32>
    %cst_110 = arith.constant 5.000000e-01 : f32
    %360 = vector.broadcast %cst_110 : f32 to vector<2x64xf32>
    %361 = arith.mulf %360, %359 : vector<2x64xf32>
    %cst_111 = arith.constant 5.000000e-01 : f32
    %362 = vector.broadcast %cst_111 : f32 to vector<2x64xf32>
    %363 = arith.addf %361, %362 : vector<2x64xf32>
    %364 = arith.mulf %353, %323 : vector<2x64xf32>
    %365 = arith.mulf %345, %355 : vector<2x64xf32>
    %366 = arith.addf %364, %365 : vector<2x64xf32>
    %367 = math.tanh %366 : vector<2x64xf32>
    %368 = arith.mulf %363, %367 : vector<2x64xf32>
    %369 = vector.extract_strided_slice %368 {offsets = [0, 0], sizes = [2, 32], strides = [1, 1]} : vector<2x64xf32> to vector<2x32xf32>
    %c14_112 = arith.constant 14 : index
    %c0_113 = arith.constant 0 : index
    %370 = vector.load %arg4[%c14_112, %c0_113] : memref<16x64xf32, #tpu.memory_space<vmem>>, vector<2x32xf32>
    tpu.vector_store %arg4[%c14_112, %c0_113], %369 {strides = array<i32>} : memref<16x64xf32, #tpu.memory_space<vmem>>, vector<2x32xf32>,
    %371 = vector.extract_strided_slice %368 {offsets = [0, 32], sizes = [2, 32], strides = [1, 1]} : vector<2x64xf32> to vector<2x32xf32>
    %c0_114 = arith.constant 0 : index
    %c32_115 = arith.constant 32 : index
    %372 = vector.load %arg4[%c0_114, %c32_115] : memref<16x64xf32, #tpu.memory_space<vmem>>, vector<2x32xf32>
    tpu.vector_store %arg4[%c0_114, %c32_115], %371 {strides = array<i32>} : memref<16x64xf32, #tpu.memory_space<vmem>>, vector<2x32xf32>,
    return
  }
}

module attributes {stable_mosaic.version = 11 : i64} {
  func.func @kernel(%arg0: memref<8x4x16xf32, #tpu.memory_space<vmem>>, %arg1: memref<15xf32, #tpu.memory_space<smem>>, %arg2: memref<2xf32, #tpu.memory_space<smem>>, %arg3: memref<8x2x16xf32, #tpu.memory_space<vmem>>, %arg4: memref<10x2x18xf32, #tpu.memory_space<vmem>>, %arg5: memref<10x2x18xf32, #tpu.memory_space<vmem>>) attributes {dimension_semantics = [], scalar_prefetch = 0 : i64, scratch_operands = 2 : i64, tpu.core_type = #tpu.core_type<tc>} {
    %cst = arith.constant 0.000000e+00 : f32
    %0 = vector.broadcast %cst : f32 to vector<10x2x18xf32>
    %c0 = arith.constant 0 : index
    %c0_0 = arith.constant 0 : index
    %c0_1 = arith.constant 0 : index
    %1 = vector.load %arg4[%c0, %c0_0, %c0_1] : memref<10x2x18xf32, #tpu.memory_space<vmem>>, vector<10x2x18xf32>
    tpu.vector_store %arg4[%c0, %c0_0, %c0_1], %0 {strides = array<i32>} : memref<10x2x18xf32, #tpu.memory_space<vmem>>, vector<10x2x18xf32>,
    %cst_2 = arith.constant 0.000000e+00 : f32
    %2 = vector.broadcast %cst_2 : f32 to vector<10x2x18xf32>
    %c0_3 = arith.constant 0 : index
    %c0_4 = arith.constant 0 : index
    %c0_5 = arith.constant 0 : index
    %3 = vector.load %arg5[%c0_3, %c0_4, %c0_5] : memref<10x2x18xf32, #tpu.memory_space<vmem>>, vector<10x2x18xf32>
    tpu.vector_store %arg5[%c0_3, %c0_4, %c0_5], %2 {strides = array<i32>} : memref<10x2x18xf32, #tpu.memory_space<vmem>>, vector<10x2x18xf32>,
    %c0_6 = arith.constant 0 : index
    %c0_7 = arith.constant 0 : index
    %c0_8 = arith.constant 0 : index
    %4 = vector.load %arg0[%c0_6, %c0_7, %c0_8] : memref<8x4x16xf32, #tpu.memory_space<vmem>>, vector<8x2x16xf32>
    %c1 = arith.constant 1 : index
    %c0_9 = arith.constant 0 : index
    %c1_10 = arith.constant 1 : index
    %5 = vector.load %arg4[%c1, %c0_9, %c1_10] : memref<10x2x18xf32, #tpu.memory_space<vmem>>, vector<8x2x16xf32>
    tpu.vector_store %arg4[%c1, %c0_9, %c1_10], %4 {strides = array<i32>} : memref<10x2x18xf32, #tpu.memory_space<vmem>>, vector<8x2x16xf32>,
    %c0_11 = arith.constant 0 : index
    %c2 = arith.constant 2 : index
    %c0_12 = arith.constant 0 : index
    %6 = vector.load %arg0[%c0_11, %c2, %c0_12] : memref<8x4x16xf32, #tpu.memory_space<vmem>>, vector<8x2x16xf32>
    %c1_13 = arith.constant 1 : index
    %c0_14 = arith.constant 0 : index
    %c1_15 = arith.constant 1 : index
    %7 = vector.load %arg5[%c1_13, %c0_14, %c1_15] : memref<10x2x18xf32, #tpu.memory_space<vmem>>, vector<8x2x16xf32>
    tpu.vector_store %arg5[%c1_13, %c0_14, %c1_15], %6 {strides = array<i32>} : memref<10x2x18xf32, #tpu.memory_space<vmem>>, vector<8x2x16xf32>,
    %cst_16 = arith.constant 0.000000e+00 : f32
    %8 = vector.broadcast %cst_16 : f32 to vector<8x2x16xf32>
    %c0_17 = arith.constant 0 : index
    %9 = memref.load %arg1[%c0_17] : memref<15xf32, #tpu.memory_space<smem>>
    %c0_18 = arith.constant 0 : index
    %c0_19 = arith.constant 0 : index
    %c0_20 = arith.constant 0 : index
    %10 = vector.load %arg4[%c0_18, %c0_19, %c0_20] : memref<10x2x18xf32, #tpu.memory_space<vmem>>, vector<8x2x16xf32>
    %11 = vector.broadcast %9 : f32 to vector<8x2x16xf32>
    %12 = arith.mulf %11, %10 : vector<8x2x16xf32>
    %13 = arith.addf %8, %12 : vector<8x2x16xf32>
    %c1_21 = arith.constant 1 : index
    %14 = memref.load %arg1[%c1_21] : memref<15xf32, #tpu.memory_space<smem>>
    %c0_22 = arith.constant 0 : index
    %c0_23 = arith.constant 0 : index
    %c1_24 = arith.constant 1 : index
    %15 = vector.load %arg4[%c0_22, %c0_23, %c1_24] : memref<10x2x18xf32, #tpu.memory_space<vmem>>, vector<8x2x16xf32>
    %16 = vector.broadcast %14 : f32 to vector<8x2x16xf32>
    %17 = arith.mulf %16, %15 : vector<8x2x16xf32>
    %18 = arith.addf %13, %17 : vector<8x2x16xf32>
    %c2_25 = arith.constant 2 : index
    %19 = memref.load %arg1[%c2_25] : memref<15xf32, #tpu.memory_space<smem>>
    %c0_26 = arith.constant 0 : index
    %c0_27 = arith.constant 0 : index
    %c2_28 = arith.constant 2 : index
    %20 = vector.load %arg4[%c0_26, %c0_27, %c2_28] : memref<10x2x18xf32, #tpu.memory_space<vmem>>, vector<8x2x16xf32>
    %21 = vector.broadcast %19 : f32 to vector<8x2x16xf32>
    %22 = arith.mulf %21, %20 : vector<8x2x16xf32>
    %23 = arith.addf %18, %22 : vector<8x2x16xf32>
    %c3 = arith.constant 3 : index
    %24 = memref.load %arg1[%c3] : memref<15xf32, #tpu.memory_space<smem>>
    %c0_29 = arith.constant 0 : index
    %c0_30 = arith.constant 0 : index
    %c0_31 = arith.constant 0 : index
    %25 = vector.load %arg5[%c0_29, %c0_30, %c0_31] : memref<10x2x18xf32, #tpu.memory_space<vmem>>, vector<8x2x16xf32>
    %26 = vector.broadcast %24 : f32 to vector<8x2x16xf32>
    %27 = arith.mulf %26, %25 : vector<8x2x16xf32>
    %28 = arith.addf %23, %27 : vector<8x2x16xf32>
    %c4 = arith.constant 4 : index
    %29 = memref.load %arg1[%c4] : memref<15xf32, #tpu.memory_space<smem>>
    %c0_32 = arith.constant 0 : index
    %c0_33 = arith.constant 0 : index
    %c1_34 = arith.constant 1 : index
    %30 = vector.load %arg5[%c0_32, %c0_33, %c1_34] : memref<10x2x18xf32, #tpu.memory_space<vmem>>, vector<8x2x16xf32>
    %31 = vector.broadcast %29 : f32 to vector<8x2x16xf32>
    %32 = arith.mulf %31, %30 : vector<8x2x16xf32>
    %33 = arith.addf %28, %32 : vector<8x2x16xf32>
    %c5 = arith.constant 5 : index
    %34 = memref.load %arg1[%c5] : memref<15xf32, #tpu.memory_space<smem>>
    %c0_35 = arith.constant 0 : index
    %c0_36 = arith.constant 0 : index
    %c2_37 = arith.constant 2 : index
    %35 = vector.load %arg5[%c0_35, %c0_36, %c2_37] : memref<10x2x18xf32, #tpu.memory_space<vmem>>, vector<8x2x16xf32>
    %36 = vector.broadcast %34 : f32 to vector<8x2x16xf32>
    %37 = arith.mulf %36, %35 : vector<8x2x16xf32>
    %38 = arith.addf %33, %37 : vector<8x2x16xf32>
    %c6 = arith.constant 6 : index
    %39 = memref.load %arg1[%c6] : memref<15xf32, #tpu.memory_space<smem>>
    %c1_38 = arith.constant 1 : index
    %c0_39 = arith.constant 0 : index
    %c0_40 = arith.constant 0 : index
    %40 = vector.load %arg4[%c1_38, %c0_39, %c0_40] : memref<10x2x18xf32, #tpu.memory_space<vmem>>, vector<8x2x16xf32>
    %41 = vector.broadcast %39 : f32 to vector<8x2x16xf32>
    %42 = arith.mulf %41, %40 : vector<8x2x16xf32>
    %43 = arith.addf %38, %42 : vector<8x2x16xf32>
    %c7 = arith.constant 7 : index
    %44 = memref.load %arg1[%c7] : memref<15xf32, #tpu.memory_space<smem>>
    %c1_41 = arith.constant 1 : index
    %c0_42 = arith.constant 0 : index
    %c1_43 = arith.constant 1 : index
    %45 = vector.load %arg4[%c1_41, %c0_42, %c1_43] : memref<10x2x18xf32, #tpu.memory_space<vmem>>, vector<8x2x16xf32>
    %46 = vector.broadcast %44 : f32 to vector<8x2x16xf32>
    %47 = arith.mulf %46, %45 : vector<8x2x16xf32>
    %48 = arith.addf %43, %47 : vector<8x2x16xf32>
    %c8 = arith.constant 8 : index
    %49 = memref.load %arg1[%c8] : memref<15xf32, #tpu.memory_space<smem>>
    %c1_44 = arith.constant 1 : index
    %c0_45 = arith.constant 0 : index
    %c2_46 = arith.constant 2 : index
    %50 = vector.load %arg4[%c1_44, %c0_45, %c2_46] : memref<10x2x18xf32, #tpu.memory_space<vmem>>, vector<8x2x16xf32>
    %51 = vector.broadcast %49 : f32 to vector<8x2x16xf32>
    %52 = arith.mulf %51, %50 : vector<8x2x16xf32>
    %53 = arith.addf %48, %52 : vector<8x2x16xf32>
    %c9 = arith.constant 9 : index
    %54 = memref.load %arg1[%c9] : memref<15xf32, #tpu.memory_space<smem>>
    %c1_47 = arith.constant 1 : index
    %c0_48 = arith.constant 0 : index
    %c0_49 = arith.constant 0 : index
    %55 = vector.load %arg5[%c1_47, %c0_48, %c0_49] : memref<10x2x18xf32, #tpu.memory_space<vmem>>, vector<8x2x16xf32>
    %56 = vector.broadcast %54 : f32 to vector<8x2x16xf32>
    %57 = arith.mulf %56, %55 : vector<8x2x16xf32>
    %58 = arith.addf %53, %57 : vector<8x2x16xf32>
    %c10 = arith.constant 10 : index
    %59 = memref.load %arg1[%c10] : memref<15xf32, #tpu.memory_space<smem>>
    %c1_50 = arith.constant 1 : index
    %c0_51 = arith.constant 0 : index
    %c1_52 = arith.constant 1 : index
    %60 = vector.load %arg5[%c1_50, %c0_51, %c1_52] : memref<10x2x18xf32, #tpu.memory_space<vmem>>, vector<8x2x16xf32>
    %61 = vector.broadcast %59 : f32 to vector<8x2x16xf32>
    %62 = arith.mulf %61, %60 : vector<8x2x16xf32>
    %63 = arith.addf %58, %62 : vector<8x2x16xf32>
    %c11 = arith.constant 11 : index
    %64 = memref.load %arg1[%c11] : memref<15xf32, #tpu.memory_space<smem>>
    %c1_53 = arith.constant 1 : index
    %c0_54 = arith.constant 0 : index
    %c2_55 = arith.constant 2 : index
    %65 = vector.load %arg5[%c1_53, %c0_54, %c2_55] : memref<10x2x18xf32, #tpu.memory_space<vmem>>, vector<8x2x16xf32>
    %66 = vector.broadcast %64 : f32 to vector<8x2x16xf32>
    %67 = arith.mulf %66, %65 : vector<8x2x16xf32>
    %68 = arith.addf %63, %67 : vector<8x2x16xf32>
    %c12 = arith.constant 12 : index
    %69 = memref.load %arg1[%c12] : memref<15xf32, #tpu.memory_space<smem>>
    %c2_56 = arith.constant 2 : index
    %c0_57 = arith.constant 0 : index
    %c0_58 = arith.constant 0 : index
    %70 = vector.load %arg4[%c2_56, %c0_57, %c0_58] : memref<10x2x18xf32, #tpu.memory_space<vmem>>, vector<8x2x16xf32>
    %71 = vector.broadcast %69 : f32 to vector<8x2x16xf32>
    %72 = arith.mulf %71, %70 : vector<8x2x16xf32>
    %73 = arith.addf %68, %72 : vector<8x2x16xf32>
    %c13 = arith.constant 13 : index
    %74 = memref.load %arg1[%c13] : memref<15xf32, #tpu.memory_space<smem>>
    %c2_59 = arith.constant 2 : index
    %c0_60 = arith.constant 0 : index
    %c1_61 = arith.constant 1 : index
    %75 = vector.load %arg4[%c2_59, %c0_60, %c1_61] : memref<10x2x18xf32, #tpu.memory_space<vmem>>, vector<8x2x16xf32>
    %76 = vector.broadcast %74 : f32 to vector<8x2x16xf32>
    %77 = arith.mulf %76, %75 : vector<8x2x16xf32>
    %78 = arith.addf %73, %77 : vector<8x2x16xf32>
    %c14 = arith.constant 14 : index
    %79 = memref.load %arg1[%c14] : memref<15xf32, #tpu.memory_space<smem>>
    %c2_62 = arith.constant 2 : index
    %c0_63 = arith.constant 0 : index
    %c2_64 = arith.constant 2 : index
    %80 = vector.load %arg4[%c2_62, %c0_63, %c2_64] : memref<10x2x18xf32, #tpu.memory_space<vmem>>, vector<8x2x16xf32>
    %81 = vector.broadcast %79 : f32 to vector<8x2x16xf32>
    %82 = arith.mulf %81, %80 : vector<8x2x16xf32>
    %83 = arith.addf %78, %82 : vector<8x2x16xf32>
    %c0_65 = arith.constant 0 : index
    %84 = memref.load %arg2[%c0_65] : memref<2xf32, #tpu.memory_space<smem>>
    %85 = vector.broadcast %84 : f32 to vector<8x2x16xf32>
    %86 = arith.mulf %83, %85 : vector<8x2x16xf32>
    %c1_66 = arith.constant 1 : index
    %87 = memref.load %arg2[%c1_66] : memref<2xf32, #tpu.memory_space<smem>>
    %88 = vector.broadcast %87 : f32 to vector<8x2x16xf32>
    %89 = arith.addf %86, %88 : vector<8x2x16xf32>
    %cst_67 = arith.constant 0.000000e+00 : f32
    %90 = vector.broadcast %cst_67 : f32 to vector<8x2x16xf32>
    %91 = arith.maximumf %89, %90 : vector<8x2x16xf32>
    %c0_68 = arith.constant 0 : index
    %c0_69 = arith.constant 0 : index
    %c0_70 = arith.constant 0 : index
    %92 = vector.load %arg3[%c0_68, %c0_69, %c0_70] : memref<8x2x16xf32, #tpu.memory_space<vmem>>, vector<8x2x16xf32>
    tpu.vector_store %arg3[%c0_68, %c0_69, %c0_70], %91 {strides = array<i32>} : memref<8x2x16xf32, #tpu.memory_space<vmem>>, vector<8x2x16xf32>,
    return
  }
}

</mosaic_0001>

<bundles_post_ra>
// kernel: _lambda_.3
= control target key start
LH: loop header
LB: loop body
LE: loop exit
PB: predicated region body
PF: predicated region fallthrough
CT: control target
= control target key end

     0   :  { %8 = vsyncpa [#allocation5], 0  ;;  %s1427_s0 = inlined_call_operand.vmem [shape: f32[8,4,16], index: 0, kind: input, shape index: {}]   ;;  %s1428_s1 = inlined_call_operand.vmem [shape: f32[15], index: 1, kind: input, shape index: {}]   ;;  %s1429_s2 = inlined_call_operand.vmem [shape: f32[2], index: 2, kind: input, shape index: {}]   ;;  %s1430_s3 = inlined_call_operand.vmem [shape: f32[8,2,16], index: 3, kind: output, shape index: {}]  }
   0x1   :  { %s17_s14 = sshll.u32 %s1428_s1, 4  ;;  %s18_s14 = int_to_ptr.vmem [resolvable:$true] %s17_s14 }
   0x2   :  { %9 = vsyncpa [#allocation7], 0  ;;  %s26_s17 = sshll.u32 %s1429_s2, 4  ;;  %s882_s18 = smov [#allocation4]   ;;  %s27_s17 = int_to_ptr.vmem [resolvable:$true] %s26_s17 }
   0x3   :  { %20 = dma.vmem_to_smem %s18_s14, 16, %s882_s18, [#allocation5]  }
   0x4   :  { %s883_s19 = smov [#allocation6]  }
   0x5   :  { %29 = dma.vmem_to_smem %s27_s17, 16, %s883_s19, [#allocation7]  }
   0x6   :  { %878 = dma.done.wait [#allocation5], 16  }
   0x7   :  { %879 = vsyncadd [#allocation5], 4294967280 }
   0x8   :  { %880 = dma.done.wait [#allocation7], 16  }
   0x9   :  { %881 = vsyncadd [#allocation7], 4294967280 }
   0xa   :  { %38 = sfence }
   0xb   :  { %v62_v0 = vld [vmem:[%s1427_s0 + $0x8] sm:$0x3]  ;;  %v60_v1 = vld [vmem:[%s1427_s0] sm:$0x3]  ;;  %s884_s23 = smov 1   ;;  %vm39_vm0 = vcmask 140288  }
   0xc   :  { %80 = vrot.lane.b32.xlu1 %v62_v0, %s884_s23  ;;  %76 = vrot.lane.b32.xlu0 %v60_v1, %s884_s23  ;;  %v64_v2 = vld [vmem:[%s1427_s0 + $0x10] sm:$0x3]  ;;  %v63_v3 = vld [vmem:[%s1427_s0 + $0xc] sm:$0x3]  ;;  %v885_v5 = vmov 0.0   ;;  %s833_s16 = sld [smem:[#allocation4 + $0x1]] }
   0xd   :  { %84 = vrot.lane.b32.xlu2 %v64_v2, %s884_s23  ;;  %v61_v4 = vld [vmem:[%s1427_s0 + $0x4] sm:$0x3]  ;;  %40 = vst.msk [vmem:[#allocation2] sm:$0x3] %vm39_vm0, %v885_v5  ;;  %v65_v6 = vld [vmem:[%s1427_s0 + $0x14] sm:$0x3] }
   0xe   :  { %41 = vst.msk [vmem:[#allocation2 + $0x2] sm:$0x3] %vm39_vm0, %v885_v5  ;;  %v66_v7 = vld [vmem:[%s1427_s0 + $0x18] sm:$0x3]  ;;  %v67_v8 = vld [vmem:[%s1427_s0 + $0x1c] sm:$0x3] }
   0xf   :  { %42 = vst.msk [vmem:[#allocation2 + $0x4] sm:$0x3] %vm39_vm0, %v885_v5  ;;  %v110_v9 = vld [vmem:[%s1427_s0 + $0x2] sm:$0x3]  ;;  %v111_v10 = vld [vmem:[%s1427_s0 + $0x6] sm:$0x3] }
  0x10   :  { %43 = vst.msk [vmem:[#allocation2 + $0x6] sm:$0x3] %vm39_vm0, %v885_v5  ;;  %v112_v11 = vld [vmem:[%s1427_s0 + $0xa] sm:$0x3]  ;;  %v113_v12 = vld [vmem:[%s1427_s0 + $0xe] sm:$0x3] }
  0x11   :  { %44 = vst.msk [vmem:[#allocation2 + $0x8] sm:$0x3] %vm39_vm0, %v885_v5  ;;  %s836_s17 = sld [smem:[#allocation4 + $0x4]]  ;;  %v114_v13 = vld [vmem:[%s1427_s0 + $0x12] sm:$0x3]  ;;  %s886_s27 = smov 127  }
  0x12   :  { %45 = vst.msk [vmem:[#allocation2 + $0xa] sm:$0x3] %vm39_vm0, %v885_v5  ;;  %v115_v14 = vld [vmem:[%s1427_s0 + $0x16] sm:$0x3]  ;;  %v116_v15 = vld [vmem:[%s1427_s0 + $0x1a] sm:$0x3]  ;;  %v994_v17 = vstv %s833_s16 }
  0x13   :  { %46 = vst.msk [vmem:[#allocation2 + $0xc] sm:$0x3] %vm39_vm0, %v885_v5  ;;  %s834_s2 = sld [smem:[#allocation4 + $0x2]]  ;;  %v117_v20 = vld [vmem:[%s1427_s0 + $0x1e] sm:$0x3]  ;;  %s887_s0 = smov 126  }
  0x14   :  { %82 = vrot.lane.b32.xlu1 %v63_v3, %s884_s23  ;;  %78 = vrot.lane.b32.xlu0 %v61_v4, %s884_s23  ;;  %47 = vst.msk [vmem:[#allocation2 + $0xe] sm:$0x3] %vm39_vm0, %v885_v5  ;;  %v992_v16 = vld [vmem:[#allocation2] sm:$0x3]  ;;  %s837_s24 = sld [smem:[#allocation4 + $0x5]]  ;;  %vm101_vm1 = vcmask 132104  }
  0x15   :  { %86 = vrot.lane.b32.xlu2 %v65_v6, %s884_s23  ;;  %48 = vst.msk [vmem:[#allocation2 + $0x10] sm:$0x3] %vm39_vm0, %v885_v5  ;;  %v187_v19 = vmul.f32 %v994_v17, %v992_v16  ;;  %s835_s28 = sld [smem:[#allocation4 + $0x3]]  ;;  %vm818_vm2 = vcmask 123904  }
  0x16   :  { %49 = vst.msk [vmem:[#allocation2 + $0x12] sm:$0x3] %vm39_vm0, %v885_v5  ;;  %s838_s29 = sld [smem:[#allocation4 + $0x6]] }
  0x17   :  { %50 = vst.msk [vmem:[#allocation3] sm:$0x3] %vm39_vm0, %v885_v5  ;;  %v997_v18 = vstv %s836_s17  ;;  %s839_s30 = sld [smem:[#allocation4 + $0x7]] }
  0x18   :  { %51 = vst.msk [vmem:[#allocation3 + $0x2] sm:$0x3] %vm39_vm0, %v885_v5  ;;  %s840_s4 = sld [smem:[#allocation4 + $0x8]] }
  0x19   :  { %52 = vst.msk [vmem:[#allocation3 + $0x4] sm:$0x3] %vm39_vm0, %v885_v5  ;;  %v1010_v23 = vstv %s834_s2  ;;  %s842_s5 = sld [smem:[#allocation4 + $0xa]] }
  0x1a   :  { %53 = vst.msk [vmem:[#allocation3 + $0x6] sm:$0x3] %vm39_vm0, %v885_v5  ;;  %v1012_v24 = vstv %s837_s24  ;;  %v237_v25 = vmul.f32 %v1010_v23, %v992_v16  ;;  %s843_s6 = sld [smem:[#allocation4 + $0xb]] }
  0x1b   :  { %54 = vst.msk [vmem:[#allocation3 + $0x8] sm:$0x3] %vm39_vm0, %v885_v5  ;;  %v1099_v4 = vstv %s835_s28  ;;  %s845_s7 = sld [smem:[#allocation4 + $0xd]] }
  0x1c   :  { %88 = vrot.lane.b32.xlu0 %v66_v7, %s884_s23  ;;  %90 = vrot.lane.b32.xlu1 %v67_v8, %s884_s23  ;;  %55 = vst.msk [vmem:[#allocation3 + $0xa] sm:$0x3] %vm39_vm0, %v885_v5  ;;  %s846_s8 = sld [smem:[#allocation4 + $0xe]] }
  0x1d   :  { %126 = vrot.lane.b32.xlu2 %v110_v9, %s884_s23  ;;  %56 = vst.msk [vmem:[#allocation3 + $0xc] sm:$0x3] %vm39_vm0, %v885_v5  ;;  %s841_s9 = sld [smem:[#allocation4 + $0x9]] }
  0x1e   :  { %57 = vst.msk [vmem:[#allocation3 + $0xe] sm:$0x3] %vm39_vm0, %v885_v5  ;;  %v1004_v21 = vld [vmem:[#allocation3] sm:$0x3]  ;;  %s844_s10 = sld [smem:[#allocation4 + $0xc]] }
  0x1f   :  { %58 = vst.msk [vmem:[#allocation3 + $0x10] sm:$0x3] %vm39_vm0, %v885_v5  ;;  %v313_v22 = vmul.f32 %v997_v18, %v1004_v21  ;;  %v363_v26 = vmul.f32 %v1012_v24, %v1004_v21  ;;  %v295_v9 = vmul.f32 %v1099_v4, %v1004_v21  ;;  %s790_s11 = sld [smem:[#allocation6]] }
  0x20   :  { %s847_s12 = sld [smem:[#allocation6 + $0x1]] }
  0x24   :  { %128 = vrot.lane.b32.xlu0 %v111_v10, %s884_s23  ;;  %130 = vrot.lane.b32.xlu1 %v112_v11, %s884_s23 }
  0x25   :  { %132 = vrot.lane.b32.xlu2 %v113_v12, %s884_s23 }
  0x2c   :  { %134 = vrot.lane.b32.xlu0 %v114_v13, %s884_s23  ;;  %136 = vrot.lane.b32.xlu1 %v115_v14, %s884_s23 }
  0x2d   :  { %138 = vrot.lane.b32.xlu2 %v116_v15, %s884_s23 }
  0x34   :  { %140 = vrot.lane.b32.xlu0 %v117_v20, %s884_s23  ;;  %203 = vrot.lane.b32.xlu1 %v187_v19, %s886_s27  ;;  %s159_s23 = sld [smem:[#allocation4]]  ;;  %v1118_v20 = vstv %s838_s29 }
  0x35   :  { %329 = vrot.lane.b32.xlu2 %v313_v22, %s886_s27 }
  0x3a   :  { %v1085_v62 = vstv %s159_s23 }
  0x3b   :  { %v169_v63 = vmul.f32 %v1085_v62, %v992_v16 }
  0x3c   :  { %253 = vrot.lane.b32.xlu0 %v237_v25, %s887_s0  ;;  %379 = vrot.lane.b32.xlu1 %v363_v26, %s887_s0 }
  0x67   :  { %v85_v27 = vpop.permute.xlu2 %84 }
  0x68   :  { %106 = vst.msk [vmem:[#allocation2 + $0xa] sm:$0x3] %vm101_vm1, %v85_v27 }
  0x6f   :  { %v87_v28 = vpop.permute.xlu2 %86  ;;  %v1057_v48 = vld [vmem:[#allocation2 + $0xa] sm:$0x3] }
  0x70   :  { %107 = vst.msk [vmem:[#allocation2 + $0xc] sm:$0x3] %vm101_vm1, %v87_v28  ;;  %v192_v54 = vmul.f32 %v994_v17, %v1057_v48  ;;  %v242_v0 = vmul.f32 %v1010_v23, %v1057_v48 }
  0x77   :  { %v127_v29 = vpop.permute.xlu2 %126  ;;  %v1039_v39 = vld [vmem:[#allocation2 + $0xc] sm:$0x3] }
  0x78   :  { %151 = vst.msk [vmem:[#allocation3 + $0x2] sm:$0x3] %vm101_vm1, %v127_v29  ;;  %v193_v41 = vmul.f32 %v994_v17, %v1039_v39  ;;  %v243_v1 = vmul.f32 %v1010_v23, %v1039_v39 }
  0x7e   :  { %v81_v30 = vpop.permute.xlu1 %80  ;;  %v77_v31 = vpop.permute.xlu0 %76 }
  0x7f   :  { %104 = vst.msk [vmem:[#allocation2 + $0x6] sm:$0x3] %vm101_vm1, %v81_v30  ;;  %v133_v32 = vpop.permute.xlu2 %132  ;;  %v1103_v7 = vld [vmem:[#allocation3 + $0x2] sm:$0x3] }
  0x80   :  { %102 = vst.msk [vmem:[#allocation2 + $0x2] sm:$0x3] %vm101_vm1, %v77_v31  ;;  %v314_v12 = vmul.f32 %v997_v18, %v1103_v7 }
  0x81   :  { %154 = vst.msk [vmem:[#allocation3 + $0x8] sm:$0x3] %vm101_vm1, %v133_v32 }
  0x86   :  { %v83_v33 = vpop.permute.xlu1 %82  ;;  %v79_v34 = vpop.permute.xlu0 %78  ;;  %v1027_v35 = vld [vmem:[#allocation2 + $0x6] sm:$0x3] }
  0x87   :  { %105 = vst.msk [vmem:[#allocation2 + $0x8] sm:$0x3] %vm101_vm1, %v83_v33  ;;  %v1030_v36 = vld [vmem:[#allocation2 + $0x2] sm:$0x3]  ;;  %v190_v37 = vmul.f32 %v994_v17, %v1027_v35  ;;  %v139_v40 = vpop.permute.xlu2 %138  ;;  %v240_v59 = vmul.f32 %v1010_v23, %v1027_v35 }
  0x88   :  { %103 = vst.msk [vmem:[#allocation2 + $0x4] sm:$0x3] %vm101_vm1, %v79_v34  ;;  %v188_v38 = vmul.f32 %v994_v17, %v1030_v36  ;;  %v238_v53 = vmul.f32 %v1010_v23, %v1030_v36  ;;  %v412_v19 = vld [vmem:[#allocation2 + $0x2] sm:$0x3]  ;;  %v364_v34 = vmul.f32 %v1012_v24, %v1103_v7 }
  0x89   :  { %209 = vrot.lane.b32.xlu1 %v190_v37, %s886_s27  ;;  %157 = vst.msk [vmem:[#allocation3 + $0xe] sm:$0x3] %vm101_vm1, %v139_v40  ;;  %v421_v27 = vmul.f32 %v1118_v20, %v412_v19 }
  0x8a   :  { %205 = vrot.lane.b32.xlu2 %v188_v38, %s886_s27 }
  0x8e   :  { %v89_v42 = vpop.permute.xlu0 %88  ;;  %v1044_v43 = vld [vmem:[#allocation2 + $0x8] sm:$0x3]  ;;  %v91_v44 = vpop.permute.xlu1 %90 }
  0x8f   :  { %108 = vst.msk [vmem:[#allocation2 + $0xe] sm:$0x3] %vm101_vm1, %v89_v42  ;;  %v191_v45 = vmul.f32 %v994_v17, %v1044_v43  ;;  %v1049_v46 = vld [vmem:[#allocation2 + $0x4] sm:$0x3]  ;;  %v241_v55 = vmul.f32 %v1010_v23, %v1044_v43  ;;  %v330_v14 = vpop.permute.xlu2 %329 }
  0x90   :  { %v189_v47 = vmul.f32 %v994_v17, %v1049_v46  ;;  %109 = vst.msk [vmem:[#allocation2 + $0x10] sm:$0x3] %vm101_vm1, %v91_v44  ;;  %v239_v58 = vmul.f32 %v1010_v23, %v1049_v46  ;;  %v1136_v31 = vld [vmem:[#allocation3 + $0xe] sm:$0x3] }
  0x91   :  { %215 = vrot.lane.b32.xlu1 %v193_v41, %s886_s27  ;;  %v320_v33 = vmul.f32 %v997_v18, %v1136_v31  ;;  %v438_v41 = vstv %s839_s30  ;;  %v370_v44 = vmul.f32 %v1012_v24, %v1136_v31 }
  0x92   :  { %211 = vrot.lane.b32.xlu2 %v191_v45, %s886_s27  ;;  %207 = vrot.lane.b32.xlu0 %v189_v47, %s886_s27  ;;  %v1166_v47 = vld [vmem:[#allocation2 + $0xa] sm:$0x3] }
  0x96   :  { %v129_v49 = vpop.permute.xlu0 %128  ;;  %v1059_v50 = vld [vmem:[#allocation2 + $0xe] sm:$0x3]  ;;  %v131_v51 = vpop.permute.xlu1 %130 }
  0x97   :  { %152 = vst.msk [vmem:[#allocation3 + $0x4] sm:$0x3] %vm101_vm1, %v129_v49  ;;  %v194_v52 = vmul.f32 %v994_v17, %v1059_v50  ;;  %v244_v60 = vmul.f32 %v1010_v23, %v1059_v50  ;;  %v1122_v23 = vld [vmem:[#allocation3 + $0x8] sm:$0x3]  ;;  %v1168_v49 = vld [vmem:[#allocation2 + $0x6] sm:$0x3] }
  0x98   :  { %153 = vst.msk [vmem:[#allocation3 + $0x6] sm:$0x3] %vm101_vm1, %v131_v51  ;;  %v317_v29 = vmul.f32 %v997_v18, %v1122_v23  ;;  %v367_v38 = vmul.f32 %v1012_v24, %v1122_v23  ;;  %v443_v51 = vmul.f32 %v438_v41, %v1166_v47 }
  0x99   :  { %255 = vrot.lane.b32.xlu1 %v238_v53, %s887_s0  ;;  %v439_v53 = vmul.f32 %v438_v41, %v412_v19 }
  0x9a   :  { %217 = vrot.lane.b32.xlu2 %v194_v52, %s886_s27  ;;  %213 = vrot.lane.b32.xlu0 %v192_v54, %s886_s27  ;;  %v441_v52 = vmul.f32 %v438_v41, %v1168_v49  ;;  %v1177_v54 = vld [vmem:[#allocation2 + $0xc] sm:$0x3] }
  0x9e   :  { %v135_v56 = vpop.permute.xlu0 %134  ;;  %v137_v57 = vpop.permute.xlu1 %136  ;;  %v1097_v3 = vld [vmem:[#allocation3 + $0x4] sm:$0x3] }
  0x9f   :  { %155 = vst.msk [vmem:[#allocation3 + $0xa] sm:$0x3] %vm101_vm1, %v135_v56  ;;  %v1101_v6 = vld [vmem:[#allocation3 + $0x6] sm:$0x3]  ;;  %v315_v8 = vmul.f32 %v997_v18, %v1097_v3  ;;  %v365_v40 = vmul.f32 %v1012_v24, %v1097_v3 }
  0xa0   :  { %156 = vst.msk [vmem:[#allocation3 + $0xc] sm:$0x3] %vm101_vm1, %v137_v57  ;;  %v316_v11 = vmul.f32 %v997_v18, %v1101_v6  ;;  %v366_v32 = vmul.f32 %v1012_v24, %v1101_v6  ;;  %v444_v57 = vmul.f32 %v438_v41, %v1177_v54 }
  0xa1   :  { %261 = vrot.lane.b32.xlu1 %v241_v55, %s887_s0  ;;  %v1179_v55 = vld [vmem:[#allocation2 + $0x8] sm:$0x3] }
  0xa2   :  { %257 = vrot.lane.b32.xlu2 %v239_v58, %s887_s0  ;;  %259 = vrot.lane.b32.xlu0 %v240_v59, %s887_s0  ;;  %v442_v58 = vmul.f32 %v438_v41, %v1179_v55  ;;  %v170_v59 = vmul.f32 %v1085_v62, %v1030_v36  ;;  %v173_v36 = vmul.f32 %v1085_v62, %v1044_v43 }
  0xa6   :  { %v141_v61 = vpop.permute.xlu0 %140  ;;  %v204_v2 = vpop.permute.xlu1 %203  ;;  %v1116_v17 = vld [vmem:[#allocation3 + $0xa] sm:$0x3] }
  0xa7   :  { %158 = vst.msk [vmem:[#allocation3 + $0x10] sm:$0x3] %vm101_vm1, %v141_v61  ;;  %v227_v5 = vadd.f32 %v204_v2, %v169_v63  ;;  %v1120_v22 = vld [vmem:[#allocation3 + $0xc] sm:$0x3]  ;;  %v318_v26 = vmul.f32 %v997_v18, %v1116_v17  ;;  %v368_v45 = vmul.f32 %v1012_v24, %v1116_v17  ;;  %v488_v63 = vstv %s840_s4 }
  0xa8   :  { %v319_v28 = vmul.f32 %v997_v18, %v1120_v22  ;;  %v369_v37 = vmul.f32 %v1012_v24, %v1120_v22  ;;  %v1156_v18 = vld [vmem:[#allocation2 + $0x4] sm:$0x3]  ;;  %v1175_v24 = vld [vmem:[#allocation2 + $0x10] sm:$0x3]  ;;  %v489_v2 = vmul.f32 %v488_v63, %v412_v19 }
  0xa9   :  { %267 = vrot.lane.b32.xlu1 %v244_v60, %s887_s0  ;;  %v440_v42 = vmul.f32 %v438_v41, %v1156_v18  ;;  %v446_v56 = vmul.f32 %v438_v41, %v1175_v24 }
  0xaa   :  { %263 = vrot.lane.b32.xlu2 %v242_v0, %s887_s0  ;;  %265 = vrot.lane.b32.xlu0 %v243_v1, %s887_s0  ;;  %v1191_v0 = vld [vmem:[#allocation2 + $0xe] sm:$0x3]  ;;  %v491_v1 = vmul.f32 %v488_v63, %v1168_v49 }
  0xae   :  { %v254_v10 = vpop.permute.xlu0 %253  ;;  %v380_v16 = vpop.permute.xlu1 %379 }
  0xaf   :  { %v277_v13 = vadd.f32 %v254_v10, %v227_v5  ;;  %v445_v5 = vmul.f32 %v438_v41, %v1191_v0  ;;  %v494_v10 = vmul.f32 %v488_v63, %v1177_v54 }
  0xb1   :  { %333 = vrot.lane.b32.xlu1 %v315_v8, %s886_s27  ;;  %v303_v15 = vadd.f32 %v295_v9, %v277_v13  ;;  %v176_v13 = vmul.f32 %v1085_v62, %v1059_v50  ;;  %v172_v50 = vmul.f32 %v1085_v62, %v1027_v35  ;;  %v175_v35 = vmul.f32 %v1085_v62, %v1039_v39 }
  0xb2   :  { %335 = vrot.lane.b32.xlu2 %v316_v11, %s886_s27  ;;  %331 = vrot.lane.b32.xlu0 %v314_v12, %s886_s27  ;;  %v492_v11 = vmul.f32 %v488_v63, %v1179_v55  ;;  %v490_v12 = vmul.f32 %v488_v63, %v1156_v18  ;;  %v297_v39 = vmul.f32 %v1099_v4, %v1097_v3 }
  0xb3   :  { %v353_v21 = vadd.f32 %v330_v14, %v303_v15  ;;  %v1210_v14 = vld [vmem:[#allocation3 + $0x2] sm:$0x3]  ;;  %v564_v15 = vstv %s842_s5  ;;  %v296_v3 = vmul.f32 %v1099_v4, %v1103_v7 }
  0xb4   :  { %v565_v19 = vmul.f32 %v564_v15, %v1210_v14 }
  0xb5   :  { %v403_v25 = vadd.f32 %v380_v16, %v353_v21  ;;  %v495_v21 = vmul.f32 %v488_v63, %v1191_v0 }
  0xb7   :  { %v1131_v30 = vadd.f32 %v421_v27, %v403_v25  ;;  %v493_v25 = vmul.f32 %v488_v63, %v1166_v47 }
  0xb9   :  { %339 = vrot.lane.b32.xlu1 %v318_v26, %s886_s27 }
  0xba   :  { %341 = vrot.lane.b32.xlu2 %v319_v28, %s886_s27  ;;  %337 = vrot.lane.b32.xlu0 %v317_v29, %s886_s27  ;;  %v1222_v29 = vld [vmem:[#allocation3 + $0x8] sm:$0x3] }
  0xc1   :  { %385 = vrot.lane.b32.xlu1 %v366_v32, %s887_s0  ;;  %v1224_v32 = vld [vmem:[#allocation3 + $0x4] sm:$0x3] }
  0xc2   :  { %381 = vrot.lane.b32.xlu2 %v364_v34, %s887_s0  ;;  %343 = vrot.lane.b32.xlu0 %v320_v33, %s886_s27  ;;  %v568_v33 = vmul.f32 %v564_v15, %v1222_v29  ;;  %v566_v34 = vmul.f32 %v564_v15, %v1224_v32 }
  0xc9   :  { %391 = vrot.lane.b32.xlu1 %v369_v37, %s887_s0  ;;  %v496_v37 = vmul.f32 %v488_v63, %v1175_v24 }
  0xca   :  { %387 = vrot.lane.b32.xlu2 %v367_v38, %s887_s0  ;;  %383 = vrot.lane.b32.xlu0 %v365_v40, %s887_s0  ;;  %v171_v38 = vmul.f32 %v1085_v62, %v1049_v46 }
  0xd1   :  { %457 = vrot.lane.b32.xlu1 %v440_v42, %s886_s27 }
  0xd2   :  { %393 = vrot.lane.b32.xlu2 %v370_v44, %s887_s0  ;;  %389 = vrot.lane.b32.xlu0 %v368_v45, %s887_s0  ;;  %v1236_v45 = vld [vmem:[#allocation3 + $0xe] sm:$0x3] }
  0xd9   :  { %463 = vrot.lane.b32.xlu1 %v443_v51, %s886_s27 }
  0xda   :  { %459 = vrot.lane.b32.xlu2 %v441_v52, %s886_s27  ;;  %455 = vrot.lane.b32.xlu0 %v439_v53, %s886_s27  ;;  %v1238_v52 = vld [vmem:[#allocation3 + $0xa] sm:$0x3]  ;;  %v1240_v53 = vld [vmem:[#allocation3 + $0x6] sm:$0x3] }
  0xdb   :  { %v569_v46 = vmul.f32 %v564_v15, %v1238_v52 }
  0xe1   :  { %469 = vrot.lane.b32.xlu1 %v446_v56, %s886_s27 }
  0xe2   :  { %465 = vrot.lane.b32.xlu2 %v444_v57, %s886_s27  ;;  %461 = vrot.lane.b32.xlu0 %v442_v58, %s886_s27  ;;  %v571_v57 = vmul.f32 %v564_v15, %v1236_v45  ;;  %v567_v58 = vmul.f32 %v564_v15, %v1240_v53 }
  0xe4   :  { %v206_v60 = vpop.permute.xlu2 %205 }
  0xe5   :  { %v1189_v61 = vadd.f32 %v206_v60, %v170_v59  ;;  %v174_v60 = vmul.f32 %v1085_v62, %v1057_v48  ;;  %v300_v48 = vmul.f32 %v1099_v4, %v1116_v17  ;;  %v298_v17 = vmul.f32 %v1099_v4, %v1101_v6 }
  0xe9   :  { %509 = vrot.lane.b32.xlu1 %v491_v1, %s887_s0 }
  0xea   :  { %505 = vrot.lane.b32.xlu2 %v489_v2, %s887_s0  ;;  %467 = vrot.lane.b32.xlu0 %v445_v5, %s886_s27 }
  0xec   :  { %v212_v8 = vpop.permute.xlu2 %211 }
  0xed   :  { %v1200_v9 = vadd.f32 %v212_v8, %v173_v36  ;;  %v1255_v8 = vld [vmem:[#allocation3 + $0x10] sm:$0x3] }
  0xee   :  { %v572_v62 = vmul.f32 %v564_v15, %v1255_v8 }
  0xf1   :  { %515 = vrot.lane.b32.xlu1 %v494_v10, %s887_s0  ;;  %v1257_v10 = vld [vmem:[#allocation3 + $0xc] sm:$0x3] }
  0xf2   :  { %511 = vrot.lane.b32.xlu2 %v492_v11, %s887_s0  ;;  %507 = vrot.lane.b32.xlu0 %v490_v12, %s887_s0  ;;  %v614_v11 = vstv %s843_s6 }
  0xf4   :  { %v218_v43 = vpop.permute.xlu2 %217 }
  0xf5   :  { %v1212_v16 = vadd.f32 %v218_v43, %v176_v13  ;;  %v616_v43 = vmul.f32 %v614_v11, %v1224_v32 }
  0xf9   :  { %581 = vrot.lane.b32.xlu1 %v565_v19, %s886_s27 }
  0xfa   :  { %517 = vrot.lane.b32.xlu2 %v495_v21, %s887_s0  ;;  %513 = vrot.lane.b32.xlu0 %v493_v25, %s887_s0 }
  0xfb   :  { %v210_v26 = vpop.permute.xlu1 %209 }
  0xfc   :  { %v258_v27 = vpop.permute.xlu2 %257  ;;  %v230_v28 = vadd.f32 %v210_v26, %v172_v50  ;;  %v299_v26 = vmul.f32 %v1099_v4, %v1122_v23 }
 0x101   :  { %587 = vrot.lane.b32.xlu1 %v568_v33, %s886_s27 }
 0x102   :  { %583 = vrot.lane.b32.xlu2 %v566_v34, %s886_s27  ;;  %519 = vrot.lane.b32.xlu0 %v496_v37, %s887_s0  ;;  %v619_v34 = vmul.f32 %v614_v11, %v1238_v52  ;;  %v617_v37 = vmul.f32 %v614_v11, %v1240_v53 }
 0x103   :  { %v216_v40 = vpop.permute.xlu1 %215 }
 0x104   :  { %v264_v41 = vpop.permute.xlu2 %263  ;;  %v208_v42 = vpop.permute.xlu0 %207  ;;  %v233_v44 = vadd.f32 %v216_v40, %v175_v35  ;;  %v615_v35 = vmul.f32 %v614_v11, %v1210_v14 }
 0x105   :  { %v229_v51 = vadd.f32 %v208_v42, %v171_v38 }
 0x107   :  { %v279_v56 = vadd.f32 %v258_v27, %v229_v51 }
 0x109   :  { %593 = vrot.lane.b32.xlu1 %v571_v57, %s886_s27  ;;  %v305_v59 = vadd.f32 %v297_v39, %v279_v56  ;;  %v622_v57 = vmul.f32 %v614_v11, %v1255_v8  ;;  %v620_v39 = vmul.f32 %v614_v11, %v1257_v10 }
 0x10a   :  { %589 = vrot.lane.b32.xlu2 %v569_v46, %s886_s27  ;;  %585 = vrot.lane.b32.xlu0 %v567_v58, %s886_s27  ;;  %v618_v46 = vmul.f32 %v614_v11, %v1222_v29 }
 0x10b   :  { %v256_v63 = vpop.permute.xlu1 %255 }
 0x10c   :  { %v336_v1 = vpop.permute.xlu2 %335  ;;  %v214_v2 = vpop.permute.xlu0 %213  ;;  %v278_v5 = vadd.f32 %v256_v63, %v1189_v61  ;;  %v570_v61 = vmul.f32 %v564_v15, %v1257_v10  ;;  %v1291_v63 = vld [vmem:[#allocation2 + $0x4] sm:$0x3] }
 0x10d   :  { %v232_v36 = vadd.f32 %v214_v2, %v174_v60 }
 0x10e   :  { %v304_v12 = vadd.f32 %v296_v3, %v278_v5  ;;  %v422_v3 = vmul.f32 %v1118_v20, %v1156_v18  ;;  %v1303_v18 = vld [vmem:[#allocation2 + $0xa] sm:$0x3] }
 0x10f   :  { %v282_v13 = vadd.f32 %v264_v41, %v232_v36  ;;  %v301_v41 = vmul.f32 %v1099_v4, %v1120_v22 }
 0x111   :  { %633 = vrot.lane.b32.xlu1 %v616_v43, %s887_s0  ;;  %v308_v7 = vadd.f32 %v300_v48, %v282_v13  ;;  %v621_v13 = vmul.f32 %v614_v11, %v1236_v45 }
 0x112   :  { %595 = vrot.lane.b32.xlu2 %v572_v62, %s886_s27  ;;  %591 = vrot.lane.b32.xlu0 %v570_v61, %s886_s27  ;;  %v1301_v61 = vld [vmem:[#allocation2 + $0xe] sm:$0x3] }
 0x113   :  { %v262_v19 = vpop.permute.xlu1 %261 }
 0x114   :  { %v342_v21 = vpop.permute.xlu2 %341  ;;  %v260_v25 = vpop.permute.xlu0 %259  ;;  %v281_v50 = vadd.f32 %v262_v19, %v1200_v9 }
 0x115   :  { %v280_v27 = vadd.f32 %v260_v25, %v230_v28  ;;  %v302_v28 = vmul.f32 %v1099_v4, %v1136_v31 }
 0x116   :  { %v307_v15 = vadd.f32 %v299_v26, %v281_v50  ;;  %v425_v50 = vmul.f32 %v1118_v20, %v1166_v47 }
 0x117   :  { %v306_v33 = vadd.f32 %v298_v17, %v280_v27 }
 0x119   :  { %639 = vrot.lane.b32.xlu1 %v619_v34, %s887_s0  ;;  %v356_v38 = vadd.f32 %v336_v1, %v306_v33  ;;  %v691_v1 = vstv %s845_s7 }
 0x11a   :  { %635 = vrot.lane.b32.xlu2 %v617_v37, %s887_s0  ;;  %631 = vrot.lane.b32.xlu0 %v615_v35, %s887_s0  ;;  %v692_v36 = vmul.f32 %v691_v1, %v1291_v63  ;;  %v697_v25 = vmul.f32 %v691_v1, %v1301_v61  ;;  %v695_v26 = vmul.f32 %v691_v1, %v1303_v18  ;;  %v741_v37 = vstv %s846_s8 }
 0x11b   :  { %v268_v23 = vpop.permute.xlu1 %267  ;;  %v424_v35 = vmul.f32 %v1118_v20, %v1179_v55 }
 0x11c   :  { %v382_v9 = vpop.permute.xlu2 %381  ;;  %v266_v40 = vpop.permute.xlu0 %265  ;;  %v284_v6 = vadd.f32 %v268_v23, %v1212_v16  ;;  %v1317_v23 = vld [vmem:[#allocation2 + $0x10] sm:$0x3] }
 0x11d   :  { %v283_v42 = vadd.f32 %v266_v40, %v233_v44  ;;  %v1289_v44 = vld [vmem:[#allocation2 + $0x8] sm:$0x3] }
 0x11e   :  { %v310_v51 = vadd.f32 %v302_v28, %v284_v6  ;;  %v694_v5 = vmul.f32 %v691_v1, %v1289_v44  ;;  %v742_v28 = vmul.f32 %v741_v37, %v1291_v63 }
 0x11f   :  { %v309_v56 = vadd.f32 %v301_v41, %v283_v42  ;;  %v428_v41 = vmul.f32 %v1118_v20, %v1175_v24  ;;  %v698_v42 = vmul.f32 %v691_v1, %v1317_v23  ;;  %v427_v24 = vmul.f32 %v1118_v20, %v1191_v0 }
 0x121   :  { %645 = vrot.lane.b32.xlu1 %v622_v57, %s887_s0  ;;  %v359_v58 = vadd.f32 %v342_v21, %v309_v56  ;;  %v1305_v21 = vld [vmem:[#allocation2 + $0x6] sm:$0x3] }
 0x122   :  { %641 = vrot.lane.b32.xlu2 %v620_v39, %s887_s0  ;;  %637 = vrot.lane.b32.xlu0 %v618_v46, %s887_s0  ;;  %v693_v17 = vmul.f32 %v691_v1, %v1305_v21 }
 0x123   :  { %v334_v31 = vpop.permute.xlu1 %333 }
 0x124   :  { %v388_v16 = vpop.permute.xlu2 %387  ;;  %v332_v4 = vpop.permute.xlu0 %331  ;;  %v355_v22 = vadd.f32 %v334_v31, %v305_v59  ;;  %v423_v31 = vmul.f32 %v1118_v20, %v1168_v49 }
 0x125   :  { %v354_v60 = vadd.f32 %v332_v4, %v304_v12 }
 0x127   :  { %v404_v2 = vadd.f32 %v382_v9, %v354_v60  ;;  %v1319_v9 = vld [vmem:[#allocation2 + $0xc] sm:$0x3] }
 0x129   :  { %712 = vrot.lane.b32.xlu1 %v694_v5, %s886_s27  ;;  %v430_v43 = vadd.f32 %v422_v3, %v404_v2  ;;  %v745_v5 = vmul.f32 %v741_v37, %v1303_v18  ;;  %v743_v3 = vmul.f32 %v741_v37, %v1305_v21 }
 0x12a   :  { %708 = vrot.lane.b32.xlu2 %v692_v36, %s886_s27  ;;  %643 = vrot.lane.b32.xlu0 %v621_v13, %s887_s0 }
 0x12b   :  { %v340_v59 = vpop.permute.xlu1 %339 }
 0x12c   :  { %v394_v12 = vpop.permute.xlu2 %393  ;;  %v338_v48 = vpop.permute.xlu0 %337  ;;  %v358_v62 = vadd.f32 %v340_v59, %v308_v7 }
 0x12d   :  { %v357_v19 = vadd.f32 %v338_v48, %v307_v15  ;;  %v746_v48 = vmul.f32 %v741_v37, %v1319_v9 }
 0x12f   :  { %v407_v11 = vadd.f32 %v388_v16, %v357_v19  ;;  %v744_v19 = vmul.f32 %v741_v37, %v1289_v44 }
 0x131   :  { %718 = vrot.lane.b32.xlu1 %v697_v25, %s886_s27  ;;  %v433_v7 = vadd.f32 %v425_v50, %v407_v11 }
 0x132   :  { %714 = vrot.lane.b32.xlu2 %v695_v26, %s886_s27  ;;  %710 = vrot.lane.b32.xlu0 %v693_v17, %s886_s27 }
 0x133   :  { %v386_v27 = vpop.permute.xlu1 %385 }
 0x134   :  { %v460_v15 = vpop.permute.xlu2 %459  ;;  %v344_v33 = vpop.permute.xlu0 %343  ;;  %v406_v34 = vadd.f32 %v386_v27, %v356_v38  ;;  %v696_v38 = vmul.f32 %v691_v1, %v1319_v9 }
 0x135   :  { %v360_v47 = vadd.f32 %v344_v33, %v310_v51  ;;  %v1329_v51 = vld [vmem:[#allocation2 + $0x12] sm:$0x3] }
 0x136   :  { %v432_v40 = vadd.f32 %v424_v35, %v406_v34  ;;  %v699_v4 = vmul.f32 %v691_v1, %v1329_v51 }
 0x137   :  { %v410_v6 = vadd.f32 %v394_v12, %v360_v47  ;;  %v748_v12 = vmul.f32 %v741_v37, %v1317_v23 }
 0x139   :  { %758 = vrot.lane.b32.xlu1 %v742_v28, %s887_s0  ;;  %v436_v56 = vadd.f32 %v428_v41, %v410_v6 }
 0x13a   :  { %720 = vrot.lane.b32.xlu2 %v698_v42, %s886_s27  ;;  %716 = vrot.lane.b32.xlu0 %v696_v38, %s886_s27 }
 0x13b   :  { %v392_v55 = vpop.permute.xlu1 %391 }
 0x13c   :  { %v466_v57 = vpop.permute.xlu2 %465  ;;  %v384_v39 = vpop.permute.xlu0 %383  ;;  %v409_v46 = vadd.f32 %v392_v55, %v359_v58 }
 0x13d   :  { %v405_v16 = vadd.f32 %v384_v39, %v355_v22  ;;  %v426_v22 = vmul.f32 %v1118_v20, %v1177_v54  ;;  %v546_v20 = vstv %s841_s9 }
 0x13e   :  { %v435_v60 = vadd.f32 %v427_v24, %v409_v46  ;;  %v547_v27 = vmul.f32 %v546_v20, %v1210_v14  ;;  %v549_v55 = vmul.f32 %v546_v20, %v1240_v53  ;;  %v553_v24 = vmul.f32 %v546_v20, %v1236_v45 }
 0x13f   :  { %v431_v2 = vadd.f32 %v423_v31, %v405_v16 }
 0x141   :  { %764 = vrot.lane.b32.xlu1 %v745_v5, %s887_s0  ;;  %v481_v36 = vadd.f32 %v460_v15, %v431_v2  ;;  %v747_v15 = vmul.f32 %v741_v37, %v1301_v61  ;;  %v548_v2 = vmul.f32 %v546_v20, %v1224_v32 }
 0x142   :  { %760 = vrot.lane.b32.xlu2 %v743_v3, %s887_s0  ;;  %722 = vrot.lane.b32.xlu0 %v699_v4, %s886_s27 }
 0x143   :  { %v458_v0 = vpop.permute.xlu1 %457 }
 0x144   :  { %v506_v58 = vpop.permute.xlu2 %505  ;;  %v390_v13 = vpop.permute.xlu0 %389  ;;  %v480_v49 = vadd.f32 %v458_v0, %v430_v43 }
 0x145   :  { %v408_v1 = vadd.f32 %v390_v13, %v358_v62  ;;  %v749_v62 = vmul.f32 %v741_v37, %v1329_v51 }
 0x147   :  { %v434_v59 = vadd.f32 %v426_v22, %v408_v1 }
 0x149   :  { %770 = vrot.lane.b32.xlu1 %v748_v12, %s887_s0  ;;  %v484_v11 = vadd.f32 %v466_v57, %v434_v59  ;;  %v554_v12 = vmul.f32 %v546_v20, %v1255_v8 }
 0x14a   :  { %766 = vrot.lane.b32.xlu2 %v746_v48, %s887_s0  ;;  %762 = vrot.lane.b32.xlu0 %v744_v19, %s887_s0 }
 0x14b   :  { %v464_v43 = vpop.permute.xlu1 %463 }
 0x14c   :  { %v512_v25 = vpop.permute.xlu2 %511  ;;  %v456_v50 = vpop.permute.xlu0 %455  ;;  %v483_v26 = vadd.f32 %v464_v43, %v433_v7  ;;  %v1368_v43 = vstv %s844_s10 }
 0x14d   :  { %v479_v54 = vadd.f32 %v456_v50, %v1131_v30  ;;  %v550_v30 = vmul.f32 %v546_v20, %v1222_v29  ;;  %v552_v29 = vmul.f32 %v546_v20, %v1257_v10 }
 0x14f   :  { %v529_v17 = vadd.f32 %v506_v58, %v479_v54 }
 0x151   :  { %v1353_v33 = vadd.f32 %v547_v27, %v529_v17 }
 0x152   :  { %768 = vrot.lane.b32.xlu0 %v747_v15, %s887_s0  ;;  %772 = vrot.lane.b32.xlu2 %v749_v62, %s887_s0 }
 0x153   :  { %v470_v34 = vpop.permute.xlu1 %469 }
 0x154   :  { %v518_v35 = vpop.permute.xlu2 %517  ;;  %v462_v47 = vpop.permute.xlu0 %461  ;;  %v486_v7 = vadd.f32 %v470_v34, %v436_v56 }
 0x155   :  { %v482_v6 = vadd.f32 %v462_v47, %v432_v40 }
 0x157   :  { %v532_v28 = vadd.f32 %v512_v25, %v482_v6 }
 0x159   :  { %v1358_v41 = vadd.f32 %v550_v30, %v532_v28 }
 0x15b   :  { %v510_v42 = vpop.permute.xlu1 %509 }
 0x15c   :  { %v584_v14 = vpop.permute.xlu2 %583  ;;  %v468_v38 = vpop.permute.xlu0 %467  ;;  %v531_v37 = vadd.f32 %v510_v42, %v481_v36  ;;  %v678_v42 = vmul.f32 %v1368_v43, %v1319_v9 }
 0x15d   :  { %v485_v57 = vadd.f32 %v468_v38, %v435_v60  ;;  %v551_v60 = vmul.f32 %v546_v20, %v1238_v52  ;;  %v676_v52 = vmul.f32 %v1368_v43, %v1289_v44  ;;  %v675_v20 = vmul.f32 %v1368_v43, %v1305_v21 }
 0x15e   :  { %v557_v39 = vadd.f32 %v549_v55, %v531_v37  ;;  %v674_v21 = vmul.f32 %v1368_v43, %v1291_v63  ;;  %v680_v63 = vmul.f32 %v1368_v43, %v1317_v23 }
 0x15f   :  { %v535_v46 = vadd.f32 %v518_v35, %v485_v57  ;;  %v679_v35 = vmul.f32 %v1368_v43, %v1301_v61 }
 0x161   :  { %v561_v31 = vadd.f32 %v553_v24, %v535_v46 }
 0x163   :  { %v516_v16 = vpop.permute.xlu1 %515 }
 0x164   :  { %v590_v56 = vpop.permute.xlu2 %589  ;;  %v508_v40 = vpop.permute.xlu0 %507  ;;  %v534_v4 = vadd.f32 %v516_v16, %v484_v11 }
 0x165   :  { %v530_v5 = vadd.f32 %v508_v40, %v480_v49 }
 0x166   :  { %v560_v3 = vadd.f32 %v552_v29, %v534_v4 }
 0x167   :  { %v556_v0 = vadd.f32 %v548_v2, %v530_v5 }
 0x16b   :  { %v582_v36 = vpop.permute.xlu1 %581 }
 0x16c   :  { %v1364_v58 = vpop.permute.xlu2 %595  ;;  %v514_v53 = vpop.permute.xlu0 %513  ;;  %v605_v44 = vadd.f32 %v582_v36, %v1353_v33  ;;  %v677_v33 = vmul.f32 %v1368_v43, %v1303_v18  ;;  %v801_v18 = vstv %s847_s12 }
 0x16d   :  { %v533_v13 = vadd.f32 %v514_v53, %v483_v26  ;;  %v606_v26 = vadd.f32 %v584_v14, %v556_v0  ;;  %v791_v0 = vstv %s790_s11 }
 0x16f   :  { %v559_v45 = vadd.f32 %v551_v60, %v533_v13 }
 0x173   :  { %v588_v22 = vpop.permute.xlu1 %587 }
 0x174   :  { %v636_v1 = vpop.permute.xlu2 %635  ;;  %v520_v59 = vpop.permute.xlu0 %519  ;;  %v608_v61 = vadd.f32 %v588_v22, %v1358_v41 }
 0x175   :  { %v536_v48 = vadd.f32 %v520_v59, %v486_v7  ;;  %v609_v7 = vadd.f32 %v590_v56, %v559_v45 }
 0x177   :  { %v562_v10 = vadd.f32 %v554_v12, %v536_v48 }
 0x179   :  { %v612_v23 = vadd.f32 %v1364_v58, %v562_v10 }
 0x17b   :  { %v594_v32 = vpop.permute.xlu1 %593 }
 0x17c   :  { %v642_v49 = vpop.permute.xlu2 %641  ;;  %v586_v19 = vpop.permute.xlu0 %585  ;;  %v611_v56 = vadd.f32 %v594_v32, %v561_v31 }
 0x17d   :  { %v607_v11 = vadd.f32 %v586_v19, %v557_v39  ;;  %v681_v19 = vmul.f32 %v1368_v43, %v1329_v51 }
 0x17f   :  { %v657_v25 = vadd.f32 %v636_v1, %v607_v11 }
 0x181   :  { %v1372_v50 = vadd.f32 %v676_v52, %v657_v25 }
 0x183   :  { %v634_v54 = vpop.permute.xlu1 %633 }
 0x184   :  { %v709_v62 = vpop.permute.xlu2 %708  ;;  %v592_v17 = vpop.permute.xlu0 %591  ;;  %v656_v8 = vadd.f32 %v634_v54, %v606_v26 }
 0x185   :  { %v610_v27 = vadd.f32 %v592_v17, %v560_v3 }
 0x186   :  { %v683_v15 = vadd.f32 %v675_v20, %v656_v8 }
 0x187   :  { %v660_v34 = vadd.f32 %v642_v49, %v610_v27 }
 0x189   :  { %v1378_v47 = vadd.f32 %v679_v35, %v660_v34 }
 0x18b   :  { %v640_v6 = vpop.permute.xlu1 %639 }
 0x18c   :  { %v632_v28 = vpop.permute.xlu0 %631  ;;  %v659_v30 = vadd.f32 %v640_v6, %v609_v7  ;;  %v715_v38 = vpop.permute.xlu2 %714 }
 0x18d   :  { %v655_v14 = vadd.f32 %v632_v28, %v605_v44 }
 0x18e   :  { %v686_v37 = vadd.f32 %v678_v42, %v659_v30 }
 0x18f   :  { %v682_v55 = vadd.f32 %v674_v21, %v655_v14 }
 0x191   :  { %v732_v60 = vadd.f32 %v709_v62, %v682_v55 }
 0x193   :  { %v646_v57 = vpop.permute.xlu1 %645 }
 0x194   :  { %v638_v39 = vpop.permute.xlu0 %637  ;;  %v721_v16 = vpop.permute.xlu2 %720  ;;  %v662_v32 = vadd.f32 %v646_v57, %v612_v23 }
 0x195   :  { %v658_v46 = vadd.f32 %v638_v39, %v608_v61 }
 0x196   :  { %v689_v62 = vadd.f32 %v681_v19, %v662_v32 }
 0x197   :  { %v685_v24 = vadd.f32 %v677_v33, %v658_v46 }
 0x199   :  { %v735_v26 = vadd.f32 %v715_v38, %v685_v24 }
 0x19b   :  { %v713_v40 = vpop.permute.xlu1 %712 }
 0x19c   :  { %v644_v9 = vpop.permute.xlu0 %643  ;;  %v761_v2 = vpop.permute.xlu2 %760  ;;  %v734_v44 = vadd.f32 %v713_v40, %v1372_v50 }
 0x19d   :  { %v661_v4 = vadd.f32 %v644_v9, %v611_v56 }
 0x19f   :  { %v688_v29 = vadd.f32 %v680_v63, %v661_v4 }
 0x1a1   :  { %v738_v7 = vadd.f32 %v721_v16, %v688_v29 }
 0x1a3   :  { %v719_v41 = vpop.permute.xlu1 %718 }
 0x1a4   :  { %v711_v5 = vpop.permute.xlu0 %710  ;;  %v767_v45 = vpop.permute.xlu2 %766  ;;  %v737_v57 = vadd.f32 %v719_v41, %v1378_v47 }
 0x1a5   :  { %v733_v3 = vadd.f32 %v711_v5, %v683_v15 }
 0x1a7   :  { %v783_v36 = vadd.f32 %v761_v2, %v733_v3 }
 0x1a9   :  { %v793_v53 = vmul.f32 %v791_v0, %v783_v36 }
 0x1ab   :  { %v803_v13 = vadd.f32 %v801_v18, %v793_v53  ;;  %v759_v31 = vpop.permute.xlu1 %758 }
 0x1ac   :  { %v717_v22 = vpop.permute.xlu0 %716  ;;  %v782_v1 = vadd.f32 %v759_v31, %v732_v60  ;;  %v773_v8 = vpop.permute.xlu2 %772 }
 0x1ad   :  { %v811_v59 = vmax.f32 %v803_v13, 0.0  ;;  %v736_v12 = vadd.f32 %v717_v22, %v686_v37 }
 0x1ae   :  { %v792_v48 = vmul.f32 %v791_v0, %v782_v1 }
 0x1af   :  { %820 = vst.msk [vmem:[%s1430_s3 + $0x2] sm:$0x3] %vm818_vm2, %v811_v59  ;;  %v786_v49 = vadd.f32 %v767_v45, %v736_v12 }
 0x1b0   :  { %v802_v11 = vadd.f32 %v801_v18, %v792_v48 }
 0x1b1   :  { %v796_v25 = vmul.f32 %v791_v0, %v786_v49 }
 0x1b2   :  { %v810_v52 = vmax.f32 %v802_v11, 0.0 }
 0x1b3   :  { %v806_v54 = vadd.f32 %v801_v18, %v796_v25  ;;  %v765_v58 = vpop.permute.xlu1 %764 }
 0x1b4   :  { %819 = vst.msk [vmem:[%s1430_s3] sm:$0x3] %vm818_vm2, %v810_v52  ;;  %v723_v10 = vpop.permute.xlu0 %722  ;;  %v785_v17 = vadd.f32 %v765_v58, %v735_v26 }
 0x1b5   :  { %v814_v20 = vmax.f32 %v806_v54, 0.0  ;;  %v739_v27 = vadd.f32 %v723_v10, %v689_v62 }
 0x1b6   :  { %v795_v15 = vmul.f32 %v791_v0, %v785_v17 }
 0x1b7   :  { %823 = vst.msk [vmem:[%s1430_s3 + $0x8] sm:$0x3] %vm818_vm2, %v814_v20  ;;  %v789_v51 = vadd.f32 %v773_v8, %v739_v27 }
 0x1b8   :  { %v805_v43 = vadd.f32 %v801_v18, %v795_v15 }
 0x1b9   :  { %v799_v34 = vmul.f32 %v791_v0, %v789_v51 }
 0x1ba   :  { %v813_v35 = vmax.f32 %v805_v43, 0.0 }
 0x1bb   :  { %v809_v6 = vadd.f32 %v801_v18, %v799_v34  ;;  %v771_v28 = vpop.permute.xlu1 %770 }
 0x1bc   :  { %822 = vst.msk [vmem:[%s1430_s3 + $0x6] sm:$0x3] %vm818_vm2, %v813_v35  ;;  %v763_v30 = vpop.permute.xlu0 %762  ;;  %v788_v42 = vadd.f32 %v771_v28, %v738_v7 }
 0x1bd   :  { %v817_v21 = vmax.f32 %v809_v6, 0.0  ;;  %v784_v14 = vadd.f32 %v763_v30, %v734_v44 }
 0x1be   :  { %v798_v38 = vmul.f32 %v791_v0, %v788_v42 }
 0x1bf   :  { %826 = vst.msk [vmem:[%s1430_s3 + $0xe] sm:$0x3] %vm818_vm2, %v817_v21  ;;  %v794_v37 = vmul.f32 %v791_v0, %v784_v14 }
 0x1c0   :  { %v808_v55 = vadd.f32 %v801_v18, %v798_v38 }
 0x1c1   :  { %v804_v50 = vadd.f32 %v801_v18, %v794_v37 }
 0x1c2   :  { %v816_v61 = vmax.f32 %v808_v55, 0.0 }
 0x1c3   :  { %v812_v39 = vmax.f32 %v804_v50, 0.0 }
 0x1c4   :  { %825 = vst.msk [vmem:[%s1430_s3 + $0xc] sm:$0x3] %vm818_vm2, %v816_v61  ;;  %v769_v33 = vpop.permute.xlu0 %768 }
 0x1c5   :  { %821 = vst.msk [vmem:[%s1430_s3 + $0x4] sm:$0x3] %vm818_vm2, %v812_v39  ;;  %v787_v46 = vadd.f32 %v769_v33, %v737_v57 }
 0x1c7   :  { %v797_v24 = vmul.f32 %v791_v0, %v787_v46 }
 0x1c9   :  { %v807_v16 = vadd.f32 %v801_v18, %v797_v24 }
 0x1cb   :  { %v815_v56 = vmax.f32 %v807_v16, 0.0 }
 0x1cd   :  { %824 = vst.msk [vmem:[%s1430_s3 + $0xa] sm:$0x3] %vm818_vm2, %v815_v56 }
 0x1ce   :  { %831 = vsyncpa [#allocation5], 1 }
 0x1cf   :  { %832 = vsyncpa [#allocation7], 1 }

// kernel: _lambda_.4
= control target key start
LH: loop header
LB: loop body
LE: loop exit
PB: predicated region body
PF: predicated region fallthrough
CT: control target
= control target key end

     0   :  { %9 = vsyncpa [#allocation3], 0  ;;  %s1208_s0 = inlined_call_operand.vmem [shape: f32[16,16], index: 0, kind: input, shape index: {}]   ;;  %s1209_s1 = inlined_call_operand.hbm [shape: bf16[16,256], index: 1, kind: input, shape index: {}]   ;;  %s1210_s2 = inlined_call_operand.hbm [shape: bf16[64,256], index: 2, kind: input, shape index: {}]   ;;  %s1211_s3 = inlined_call_operand.vmem [shape: f32[1,256], index: 3, kind: input, shape index: {}]   ;;  %s1212_s4 = inlined_call_operand.vmem [shape: f32[16,64], index: 4, kind: output, shape index: {}]  }
   0x1   :  { %s17_s17 = sshll.u32 %s1209_s1, 4  ;;  %s18_s17 = int_to_ptr.hbm [resolvable:$true] %s17_s17 }
   0x2   :  { %10 = vsyncpa [#allocation5], 0  ;;  %s893_s18 = smov [#allocation2]   ;;  %s30_s22 = sshll.u32 %s1210_s2, 4  ;;  %s31_s22 = int_to_ptr.hbm [resolvable:$true] %s30_s22 }
   0x3   :  { %s19_s19 = sshll.u32 %s893_s18, 4  ;;  %s894_s23 = smov 128   ;;  %s20_s19 = int_to_ptr.vmem [resolvable:$true] %s19_s19 }
   0x4   :  { %s895_s24 = smov 8   ;;  %s896_s25 = smov [#allocation4]  }
   0x5   :  { %25 = dma.hbm_to_vmem [thread:$0]  %s18_s17, 256, %s20_s19, [#allocation3], %s894_s23, %s894_s23, %s895_s24  }
   0x6   :  { %s32_s26 = sshll.u32 %s896_s25, 4  ;;  %s33_s26 = int_to_ptr.vmem [resolvable:$true] %s32_s26 }
   0x7   :  { %38 = dma.hbm_to_vmem [thread:$0]  %s31_s22, 1024, %s33_s26, [#allocation5], %s894_s23, %s894_s23, %s895_s24  }
   0x8   :  { %889 = dma.done.wait [#allocation3], 256  }
   0x9   :  { %890 = vsyncadd [#allocation3], 4294967040 }
   0xa   :  { %891 = dma.done.wait [#allocation5], 1024  }
   0xb   :  { %892 = vsyncadd [#allocation5], 4294966272  ;;  %v707_v0 = vld [vmem:[#allocation2] sm:$0xf]  ;;  %v762_v1 = vld [vmem:[#allocation2 + $0x4] sm:$0xf0]  ;;  %v111_v34 = vlaneseq }
   0xc   :  { %v741_v2 = vld [vmem:[#allocation4 + $0x30] sm:$0xf]  ;;  %v708_v3 = vor.u32 %v762_v1, %v707_v0  ;;  %v770_v4 = vld [vmem:[#allocation4 + $0x34] sm:$0xf0]  ;;  %v769_v5 = vld [vmem:[#allocation4 + $0x34] sm:$0xf] }
   0xd   :  { %v743_v6 = vld [vmem:[#allocation4 + $0x38] sm:$0xf0]  ;;  %v930_v7 = vor.u32 %v770_v4, %v741_v2  ;;  %v761_v9 = vld [vmem:[#allocation2 + $0x4] sm:$0xf]  ;;  %vm71_vm0 = vcmask 130048   ;;  %v897_v33 = vmov 0  }
   0xe   :  { %v932_v8 = vor.u32 %v769_v5, %v743_v6  ;;  %v709_v10 = vld [vmem:[#allocation2 + $0x8] sm:$0xf0]  ;;  %v50_v11 = vld [vmem:[%s1208_s0] sm:$0xff]  ;;  %82 = vmatpush.bf16.msra.mxu0 %v708_v3  ;;  %v733_v14 = vld [vmem:[#allocation4 + $0x20] sm:$0xf]  ;;  %v112_v36 = vand.u32 127, %v111_v34 }
   0xf   :  { %v712_v12 = vor.u32 %v761_v9, %v709_v10  ;;  %v51_v13 = vld [vmem:[%s1208_s0 + $0x8] sm:$0xff]  ;;  %v768_v15 = vld [vmem:[#allocation4 + $0x24] sm:$0xf0]  ;;  %200 = vmatpush.bf16.msra.mxu2 %v930_v7  ;;  %v767_v18 = vld [vmem:[#allocation4 + $0x24] sm:$0xf]  ;;  %vm192_vm3 = vcmask 523264  }
  0x10   :  { %213 = vmatpush.bf16.msra.mxu3 %v932_v8  ;;  %v52_v16 = vpack.c.bf16 %v51_v13, %v50_v11  ;;  %v942_v17 = vor.u32 %v768_v15, %v733_v14  ;;  %v735_v19 = vld [vmem:[#allocation4 + $0x28] sm:$0xf0]  ;;  %v725_v21 = vld [vmem:[#allocation4 + $0x10] sm:$0xf]  ;;  %v766_v22 = vld [vmem:[#allocation4 + $0x14] sm:$0xf0] }
  0x11   :  { %96 = vmatpush.bf16.msra.mxu1 %v712_v12  ;;  %v944_v20 = vor.u32 %v767_v18, %v735_v19  ;;  %v765_v23 = vld [vmem:[#allocation4 + $0x14] sm:$0xf]  ;;  %v727_v24 = vld [vmem:[#allocation4 + $0x18] sm:$0xf0]  ;;  %v951_v25 = vor.u32 %v766_v22, %v725_v21  ;;  %v717_v27 = vld [vmem:[#allocation4] sm:$0xf] }
  0x12   :  { %271 = vmatpush.bf16.msrb.mxu0 %v930_v7  ;;  %v954_v26 = vor.u32 %v765_v23, %v727_v24  ;;  %v764_v28 = vld [vmem:[#allocation4 + $0x4] sm:$0xf0]  ;;  %v763_v29 = vld [vmem:[#allocation4 + $0x4] sm:$0xf]  ;;  %v719_v30 = vld [vmem:[#allocation4 + $0x8] sm:$0xf0] }
  0x13   :  { %713 = vmatmul.msk.bf16.vlgmr.msra.gmra.mxu0 %vm71_vm0, %v52_v16  ;;  %201 = vmatpush.bf16.msra.mxu2 %v942_v17  ;;  %v959_v31 = vor.u32 %v764_v28, %v717_v27  ;;  %v962_v32 = vor.u32 %v763_v29, %v719_v30  ;;  %v55_v35 = vld [vmem:[%s1211_s3] sm:$0x3]  ;;  %v113_v41 = vadd.s32 128, %v112_v36  ;;  %v118_v43 = vand.u32 63, %v112_v36  ;;  %s898_s3 = smov 64  }
  0x14   :  { %714 = vmatmul.msk.bf16.vlgmr.msra.gmra.mxu1 %vm71_vm0, %v52_v16  ;;  %214 = vmatpush.bf16.msra.mxu3 %v944_v20  ;;  %v57_v37 = vperm.slane %v55_v35, 0  ;;  %v58_v39 = vperm.slane %v55_v35, 1  ;;  %vm244_vm4 = vcmask 254976   ;;  %vm246_vm5 = vcmask 517376  }
  0x15   :  { %284 = vmatpush.bf16.msrb.mxu1 %v932_v8  ;;  %v125_v45 = vand.u32 63, %v113_v41  ;;  %vm997_vm1 = vcmp.lt.s32.totalorder %v118_v43, 32 }
  0x16   :  { %272 = vmatpush.bf16.msrb.mxu0 %v942_v17 }
  0x17   :  { %202 = vmatpush.bf16.msra.mxu2 %v951_v25  ;;  %vm1001_vm2 = vcmp.lt.s32.totalorder %v125_v45, 32 }
  0x18   :  { %215 = vmatpush.bf16.msra.mxu3 %v954_v26 }
  0x19   :  { %285 = vmatpush.bf16.msrb.mxu1 %v944_v20 }
  0x1a   :  { %273 = vmatpush.bf16.msrb.mxu0 %v951_v25 }
  0x1b   :  { %203 = vmatpush.bf16.msra.mxu2 %v959_v31 }
  0x1c   :  { %216 = vmatpush.bf16.msra.mxu3 %v962_v32 }
  0x1d   :  { %286 = vmatpush.bf16.msrb.mxu1 %v954_v26 }
  0x1e   :  { %274 = vmatpush.bf16.msrb.mxu0 %v959_v31  ;;  %204 = vmatmul.bf16.vlgmr.msra.gmra.mxu2 %v897_v33 }
  0x1f   :  { %334 = vmatpush.bf16.msrb.mxu2 %v930_v7  ;;  %217 = vmatmul.bf16.vlgmr.msra.gmra.mxu3 %v897_v33 }
  0x20   :  { %347 = vmatpush.bf16.msrb.mxu3 %v932_v8 }
  0x21   :  { %287 = vmatpush.bf16.msrb.mxu1 %v962_v32 }
  0x22   :  { %395 = vmatpush.bf16.msra.mxu0 %v930_v7 }
  0x23   :  { %335 = vmatpush.bf16.msrb.mxu2 %v942_v17 }
  0x24   :  { %348 = vmatpush.bf16.msrb.mxu3 %v944_v20 }
  0x25   :  { %408 = vmatpush.bf16.msra.mxu1 %v932_v8 }
  0x26   :  { %396 = vmatpush.bf16.msra.mxu0 %v942_v17 }
  0x27   :  { %336 = vmatpush.bf16.msrb.mxu2 %v951_v25 }
  0x28   :  { %349 = vmatpush.bf16.msrb.mxu3 %v954_v26 }
  0x29   :  { %409 = vmatpush.bf16.msra.mxu1 %v944_v20 }
  0x2a   :  { %397 = vmatpush.bf16.msra.mxu0 %v951_v25 }
  0x2b   :  { %337 = vmatpush.bf16.msrb.mxu2 %v959_v31 }
  0x2c   :  { %350 = vmatpush.bf16.msrb.mxu3 %v962_v32 }
  0x2d   :  { %410 = vmatpush.bf16.msra.mxu1 %v954_v26 }
  0x2e   :  { %398 = vmatpush.bf16.msra.mxu0 %v959_v31 }
  0x2f   :  { %460 = vmatpush.bf16.msra.mxu2 %v930_v7 }
  0x30   :  { %473 = vmatpush.bf16.msra.mxu3 %v932_v8 }
  0x31   :  { %411 = vmatpush.bf16.msra.mxu1 %v962_v32 }
  0x33   :  { %461 = vmatpush.bf16.msra.mxu2 %v942_v17 }
  0x34   :  { %474 = vmatpush.bf16.msra.mxu3 %v944_v20 }
  0x37   :  { %462 = vmatpush.bf16.msra.mxu2 %v951_v25 }
  0x38   :  { %475 = vmatpush.bf16.msra.mxu3 %v954_v26 }
  0x3b   :  { %463 = vmatpush.bf16.msra.mxu2 %v959_v31 }
  0x3c   :  { %476 = vmatpush.bf16.msra.mxu3 %v962_v32 }
  0x90   :  { %v84_v38 = vpop.f32.mrf.mxu0 }
  0x91   :  { %v98_v40 = vpop.f32.mrf.mxu1  ;;  %v85_v42 = vadd.f32 %v84_v38, %v57_v37 }
  0x92   :  { %v99_v44 = vadd.f32 %v98_v40, %v58_v39 }
  0x93   :  { %v444_v46 = vrot.slane %v85_v42, 6  ;;  %v507_v49 = vrot.slane %v85_v42, 2 }
  0x94   :  { %v445_v53 = vrot.slane %v99_v44, 6  ;;  %v508_v57 = vrot.slane %v99_v44, 2 }
  0x98   :  { %v86_v47 = vpop.f32.mrf.mxu0 }
  0x99   :  { %v87_v50 = vadd.f32 %v86_v47, %v57_v37  ;;  %v100_v51 = vpop.f32.mrf.mxu1 }
  0x9a   :  { %v101_v54 = vadd.f32 %v100_v51, %v58_v39 }
  0x9b   :  { %v249_v55 = vrot.slane %v87_v50, 2  ;;  %v1007_v56 = vsel %vm997_vm1, %v87_v50, %v444_v46  ;;  %v1011_v58 = vsel %vm997_vm1, %v87_v50, %v507_v49  ;;  %v146_v62 = vrot.slane %v87_v50, 6 }
  0x9c   :  { %v250_v60 = vrot.slane %v101_v54, 2  ;;  %v1019_v61 = vsel %vm1001_vm2, %v101_v54, %v445_v53  ;;  %v1027_v0 = vsel %vm1001_vm2, %v101_v54, %v508_v57  ;;  %v147_v3 = vrot.slane %v101_v54, 6 }
  0x9d   :  { %v1015_v59 = vsel %vm997_vm1, %v85_v42, %v249_v55  ;;  %v1031_v1 = vsel %vm997_vm1, %v85_v42, %v146_v62 }
  0x9e   :  { %v1023_v63 = vsel %vm1001_vm2, %v99_v44, %v250_v60  ;;  %v1036_v9 = vsel %vm1001_vm2, %v99_v44, %v147_v3  ;;  %v260_v35 = vrot.slane %v1015_v59, 2  ;;  %v323_v3 = vrot.slane %v1031_v1, 4 }
  0x9f   :  { %v261_v40 = vrot.slane %v1023_v63, 2 }
  0xa1   :  { %v205_v2 = vpop.f32.mrf.mxu2 }
  0xa2   :  { %v206_v4 = vadd.f32 %v205_v2, %v1031_v1  ;;  %v218_v5 = vpop.f32.mrf.mxu3 }
  0xa3   :  { %v219_v10 = vadd.f32 %v218_v5, %v1036_v9 }
  0xa4   :  { %v222_v6 = vmul.f32 0.5, %v206_v4 }
  0xa5   :  { %v227_v19 = vmul.f32 0.5, %v219_v10 }
  0xa6   :  { %777 = vtanh.f32 %v222_v6 }
  0xa7   :  { %779 = vtanh.f32 %v219_v10 }
  0xa8   :  { %781 = vtanh.f32 %v227_v19 }
  0xa9   :  { %v207_v11 = vpop.f32.mrf.mxu2 }
  0xaa   :  { %v220_v12 = vpop.f32.mrf.mxu3  ;;  %v324_v11 = vrot.slane %v1036_v9, 4 }
  0xac   :  { %v778_v13 = vpop.eup %777 }
  0xad   :  { %v224_v14 = vmul.f32 0.5, %v778_v13  ;;  %v780_v16 = vpop.eup %779 }
  0xae   :  { %v782_v23 = vpop.eup %781 }
  0xaf   :  { %v225_v15 = vadd.f32 0.5, %v224_v14  ;;  %v229_v27 = vmul.f32 0.5, %v782_v23 }
  0xb1   :  { %v232_v18 = vmul.f32 %v780_v16, %v225_v15  ;;  %v231_v21 = vmul.f32 0.0, %v225_v15  ;;  %v230_v28 = vadd.f32 0.5, %v229_v27 }
  0xb3   :  { %234 = vrot.lane.b32.xlu0 %v232_v18, %s898_s3 }
 0x125   :  { %v235_v22 = vpop.permute.xlu0 %234 }
 0x126   :  { %v237_v24 = vadd.f32 %v235_v22, %v231_v21 }
 0x128   :  { %783 = vtanh.f32 %v237_v24 }
 0x12e   :  { %v784_v29 = vpop.eup %783 }
 0x12f   :  { %v1040_v30 = vmul.f32 %v784_v29, %v230_v28 }
 0x131   :  { %v248_v33 = vpack.c.bf16 %v1040_v30, %v1040_v30 }
 0x133   :  { %256 = vrot.lane.b32.xlu0 %v248_v33, %s898_s3 }
 0x1a5   :  { %v257_v34 = vpop.permute.xlu0 %256 }
 0x1a6   :  { %747 = vmatmul.msk.bf16.vlgmr.msrb.gmra.mxu0 %vm192_vm3, %v257_v34  ;;  %748 = vmatmul.msk.bf16.vlgmr.msrb.gmra.mxu1 %vm192_vm3, %v257_v34 }
 0x1a7   :  { %529 = vmatpush.bf16.msrb.mxu0 %v930_v7  ;;  %542 = vmatpush.bf16.msrb.mxu1 %v932_v8 }
 0x1ab   :  { %530 = vmatpush.bf16.msrb.mxu0 %v942_v17  ;;  %543 = vmatpush.bf16.msrb.mxu1 %v944_v20 }
 0x1af   :  { %531 = vmatpush.bf16.msrb.mxu0 %v951_v25  ;;  %544 = vmatpush.bf16.msrb.mxu1 %v954_v26 }
 0x1b3   :  { %532 = vmatpush.bf16.msrb.mxu0 %v959_v31  ;;  %545 = vmatpush.bf16.msrb.mxu1 %v962_v32 }
 0x223   :  { %v276_v36 = vpop.f32.mrf.mxu0  ;;  %v289_v37 = vpop.f32.mrf.mxu1 }
 0x224   :  { %v277_v38 = vadd.f32 %v276_v36, %v260_v35  ;;  %v290_v41 = vadd.f32 %v289_v37, %v261_v40  ;;  %v384_v36 = vrot.slane %v1015_v59, 6 }
 0x226   :  { %v293_v39 = vmul.f32 0.5, %v277_v38  ;;  %v298_v49 = vmul.f32 0.5, %v290_v41 }
 0x228   :  { %785 = vtanh.f32 %v293_v39 }
 0x229   :  { %787 = vtanh.f32 %v290_v41 }
 0x22a   :  { %789 = vtanh.f32 %v298_v49 }
 0x22b   :  { %v278_v42 = vpop.f32.mrf.mxu0  ;;  %v291_v43 = vpop.f32.mrf.mxu1 }
 0x22e   :  { %v786_v44 = vpop.eup %785 }
 0x22f   :  { %v295_v45 = vmul.f32 0.5, %v786_v44  ;;  %v788_v47 = vpop.eup %787 }
 0x230   :  { %v790_v52 = vpop.eup %789 }
 0x231   :  { %v296_v46 = vadd.f32 0.5, %v295_v45  ;;  %v300_v54 = vmul.f32 0.5, %v790_v52 }
 0x233   :  { %v303_v48 = vmul.f32 %v788_v47, %v296_v46  ;;  %v302_v50 = vmul.f32 %v296_v46, %v237_v24  ;;  %v301_v55 = vadd.f32 0.5, %v300_v54 }
 0x235   :  { %305 = vrot.lane.b32.xlu1 %v303_v48, %s898_s3 }
 0x2a7   :  { %v306_v51 = vpop.permute.xlu1 %305 }
 0x2a8   :  { %v308_v53 = vadd.f32 %v306_v51, %v302_v50 }
 0x2aa   :  { %791 = vtanh.f32 %v308_v53 }
 0x2b0   :  { %v792_v57 = vpop.eup %791 }
 0x2b1   :  { %v1058_v60 = vmul.f32 %v792_v57, %v301_v55 }
 0x2b3   :  { %v317_v62 = vpack.c.bf16 %v1058_v60, %v1058_v60 }
 0x2b5   :  { %319 = vrot.lane.b32.xlu1 %v317_v62, %s898_s3 }
 0x327   :  { %v320_v2 = vpop.permute.xlu1 %319 }
 0x328   :  { %749 = vmatmul.msk.bf16.vlgmr.msrb.gmra.mxu2 %vm192_vm3, %v320_v2  ;;  %750 = vmatmul.msk.bf16.vlgmr.msrb.gmra.mxu3 %vm192_vm3, %v320_v2 }
 0x329   :  { %592 = vmatpush.bf16.msrb.mxu2 %v930_v7  ;;  %605 = vmatpush.bf16.msrb.mxu3 %v932_v8 }
 0x32d   :  { %593 = vmatpush.bf16.msrb.mxu2 %v942_v17  ;;  %606 = vmatpush.bf16.msrb.mxu3 %v944_v20 }
 0x331   :  { %594 = vmatpush.bf16.msrb.mxu2 %v951_v25  ;;  %607 = vmatpush.bf16.msrb.mxu3 %v954_v26 }
 0x335   :  { %595 = vmatpush.bf16.msrb.mxu2 %v959_v31  ;;  %608 = vmatpush.bf16.msrb.mxu3 %v962_v32 }
 0x3ab   :  { %v339_v4 = vpop.f32.mrf.mxu2  ;;  %v352_v5 = vpop.f32.mrf.mxu3 }
 0x3ac   :  { %v340_v6 = vadd.f32 %v339_v4, %v323_v3  ;;  %v353_v12 = vadd.f32 %v352_v5, %v324_v11 }
 0x3ae   :  { %v356_v10 = vmul.f32 0.5, %v340_v6  ;;  %v361_v22 = vmul.f32 0.5, %v353_v12 }
 0x3b0   :  { %793 = vtanh.f32 %v356_v10 }
 0x3b1   :  { %795 = vtanh.f32 %v353_v12 }
 0x3b2   :  { %797 = vtanh.f32 %v361_v22 }
 0x3b3   :  { %v341_v13 = vpop.f32.mrf.mxu2  ;;  %v354_v14 = vpop.f32.mrf.mxu3 }
 0x3b6   :  { %v794_v15 = vpop.eup %793 }
 0x3b7   :  { %v358_v16 = vmul.f32 0.5, %v794_v15  ;;  %v796_v19 = vpop.eup %795 }
 0x3b8   :  { %v798_v24 = vpop.eup %797 }
 0x3b9   :  { %v359_v18 = vadd.f32 0.5, %v358_v16  ;;  %v363_v9 = vmul.f32 0.5, %v798_v24 }
 0x3bb   :  { %v366_v21 = vmul.f32 %v796_v19, %v359_v18  ;;  %v365_v1 = vmul.f32 %v359_v18, %v308_v53  ;;  %v364_v28 = vadd.f32 0.5, %v363_v9 }
 0x3bd   :  { %368 = vrot.lane.b32.xlu2 %v366_v21, %s898_s3 }
 0x417   :  { %v369_v23 = vpop.permute.xlu2 %368 }
 0x418   :  { %v371_v27 = vadd.f32 %v369_v23, %v365_v1  ;;  %v518_v1 = vrot.slane %v1011_v58, 2 }
 0x41a   :  { %799 = vtanh.f32 %v371_v27 }
 0x420   :  { %v800_v29 = vpop.eup %799 }
 0x421   :  { %v1076_v33 = vmul.f32 %v800_v29, %v364_v28  ;;  %v519_v28 = vrot.slane %v1027_v0, 2 }
 0x423   :  { %v380_v34 = vpack.c.bf16 %v1076_v33, %v1076_v33 }
 0x425   :  { %382 = vrot.lane.b32.xlu2 %v380_v34, %s898_s3 }
 0x47f   :  { %v383_v35 = vpop.permute.xlu2 %382 }
 0x480   :  { %751 = vmatmul.msk.bf16.vlgmr.msra.gmra.mxu0 %vm192_vm3, %v383_v35  ;;  %752 = vmatmul.msk.bf16.vlgmr.msra.gmra.mxu1 %vm192_vm3, %v383_v35 }
 0x481   :  { %653 = vmatpush.bf16.msra.mxu0 %v930_v7  ;;  %666 = vmatpush.bf16.msra.mxu1 %v932_v8  ;;  %v385_v8 = vrot.slane %v1023_v63, 6 }
 0x485   :  { %654 = vmatpush.bf16.msra.mxu0 %v942_v17  ;;  %667 = vmatpush.bf16.msra.mxu1 %v944_v20 }
 0x489   :  { %655 = vmatpush.bf16.msra.mxu0 %v951_v25  ;;  %668 = vmatpush.bf16.msra.mxu1 %v954_v26 }
 0x48d   :  { %656 = vmatpush.bf16.msra.mxu0 %v959_v31  ;;  %669 = vmatpush.bf16.msra.mxu1 %v962_v32 }
 0x4fd   :  { %v400_v37 = vpop.f32.mrf.mxu0  ;;  %v413_v38 = vpop.f32.mrf.mxu1 }
 0x4fe   :  { %v401_v39 = vadd.f32 %v400_v37, %v384_v36  ;;  %v414_v17 = vadd.f32 %v413_v38, %v385_v8 }
 0x500   :  { %v417_v7 = vmul.f32 0.5, %v401_v39  ;;  %v422_v32 = vmul.f32 0.5, %v414_v17 }
 0x502   :  { %801 = vtanh.f32 %v417_v7 }
 0x503   :  { %803 = vtanh.f32 %v414_v17 }
 0x504   :  { %805 = vtanh.f32 %v422_v32 }
 0x505   :  { %v402_v40 = vpop.f32.mrf.mxu0  ;;  %v415_v20 = vpop.f32.mrf.mxu1 }
 0x508   :  { %v802_v25 = vpop.eup %801 }
 0x509   :  { %v419_v41 = vmul.f32 0.5, %v802_v25  ;;  %v804_v42 = vpop.eup %803 }
 0x50a   :  { %v806_v44 = vpop.eup %805 }
 0x50b   :  { %v420_v26 = vadd.f32 0.5, %v419_v41  ;;  %v424_v63 = vmul.f32 0.5, %v806_v44 }
 0x50d   :  { %v427_v31 = vmul.f32 %v804_v42, %v420_v26  ;;  %v426_v59 = vmul.f32 %v420_v26, %v371_v27  ;;  %v425_v46 = vadd.f32 0.5, %v424_v63 }
 0x50f   :  { %429 = vrot.lane.b32.xlu0 %v427_v31, %s898_s3 }
 0x581   :  { %v430_v43 = vpop.permute.xlu0 %429 }
 0x582   :  { %v432_v45 = vadd.f32 %v430_v43, %v426_v59  ;;  %v581_v43 = vrot.slane %v1007_v56, 4 }
 0x584   :  { %807 = vtanh.f32 %v432_v45 }
 0x58a   :  { %v808_v47 = vpop.eup %807 }
 0x58b   :  { %v1094_v48 = vmul.f32 %v808_v47, %v425_v46  ;;  %v582_v47 = vrot.slane %v1019_v61, 4 }
 0x58d   :  { %v441_v49 = vpack.c.bf16 %v1094_v48, %v1094_v48 }
 0x58f   :  { %451 = vrot.lane.b32.xlu1 %v441_v49, %s898_s3 }
 0x601   :  { %v452_v50 = vpop.permute.xlu1 %451 }
 0x602   :  { %753 = vmatmul.msk.bf16.vlgmr.msra.gmra.mxu2 %vm192_vm3, %v452_v50  ;;  %754 = vmatmul.msk.bf16.vlgmr.msra.gmra.mxu3 %vm192_vm3, %v452_v50 }
 0x685   :  { %v465_v51 = vpop.f32.mrf.mxu2  ;;  %v478_v52 = vpop.f32.mrf.mxu3 }
 0x686   :  { %v466_v53 = vadd.f32 %v465_v51, %v1007_v56  ;;  %v479_v55 = vadd.f32 %v478_v52, %v1019_v61 }
 0x688   :  { %v482_v54 = vmul.f32 0.5, %v466_v53  ;;  %v487_v10 = vmul.f32 0.5, %v479_v55 }
 0x68a   :  { %809 = vtanh.f32 %v482_v54 }
 0x68b   :  { %811 = vtanh.f32 %v479_v55 }
 0x68c   :  { %813 = vtanh.f32 %v487_v10 }
 0x68d   :  { %v467_v57 = vpop.f32.mrf.mxu2  ;;  %v480_v62 = vpop.f32.mrf.mxu3 }
 0x690   :  { %v810_v2 = vpop.eup %809 }
 0x691   :  { %v484_v3 = vmul.f32 0.5, %v810_v2  ;;  %v812_v5 = vpop.eup %811 }
 0x692   :  { %v814_v13 = vpop.eup %813 }
 0x693   :  { %v485_v4 = vadd.f32 0.5, %v484_v3  ;;  %v489_v15 = vmul.f32 0.5, %v814_v13 }
 0x695   :  { %v492_v6 = vmul.f32 %v812_v5, %v485_v4  ;;  %v491_v11 = vmul.f32 %v485_v4, %v432_v45  ;;  %v490_v16 = vadd.f32 0.5, %v489_v15  ;;  %v642_v15 = vrot.slane %v1011_v58, 6 }
 0x697   :  { %494 = vrot.lane.b32.xlu2 %v492_v6, %s898_s3 }
 0x6f1   :  { %v495_v12 = vpop.permute.xlu2 %494 }
 0x6f2   :  { %v497_v14 = vadd.f32 %v495_v12, %v491_v11 }
 0x6f4   :  { %815 = vtanh.f32 %v497_v14 }
 0x6fa   :  { %v816_v18 = vpop.eup %815 }
 0x6fb   :  { %v1104_v19 = vmul.f32 %v816_v18, %v490_v16 }
 0x6fd   :  { %v506_v21 = vpack.c.bf16 %v1104_v19, %v1104_v19 }
 0x6ff   :  { %514 = vrot.lane.b32.xlu0 %v506_v21, %s898_s3 }
 0x771   :  { %v515_v22 = vpop.permute.xlu0 %514 }
 0x772   :  { %755 = vmatmul.msk.bf16.vlgmr.msrb.gmra.mxu0 %vm192_vm3, %v515_v22  ;;  %756 = vmatmul.msk.bf16.vlgmr.msrb.gmra.mxu1 %vm192_vm3, %v515_v22  ;;  %v643_v22 = vrot.slane %v1027_v0, 6 }
 0x7ef   :  { %v534_v23 = vpop.f32.mrf.mxu0  ;;  %v547_v24 = vpop.f32.mrf.mxu1 }
 0x7f0   :  { %v535_v27 = vadd.f32 %v534_v23, %v518_v1  ;;  %v548_v29 = vadd.f32 %v547_v24, %v519_v28 }
 0x7f2   :  { %v551_v9 = vmul.f32 0.5, %v535_v27  ;;  %v556_v8 = vmul.f32 0.5, %v548_v29 }
 0x7f4   :  { %817 = vtanh.f32 %v551_v9 }
 0x7f5   :  { %819 = vtanh.f32 %v548_v29 }
 0x7f6   :  { %821 = vtanh.f32 %v556_v8 }
 0x7f7   :  { %v536_v34 = vpop.f32.mrf.mxu0  ;;  %v549_v35 = vpop.f32.mrf.mxu1 }
 0x7fa   :  { %v818_v36 = vpop.eup %817 }
 0x7fb   :  { %v553_v37 = vmul.f32 0.5, %v818_v36  ;;  %v820_v39 = vpop.eup %819 }
 0x7fc   :  { %v822_v20 = vpop.eup %821 }
 0x7fd   :  { %v554_v38 = vadd.f32 0.5, %v553_v37  ;;  %v558_v41 = vmul.f32 0.5, %v822_v20 }
 0x7ff   :  { %v561_v7 = vmul.f32 %v820_v39, %v554_v38  ;;  %v560_v17 = vmul.f32 %v554_v38, %v497_v14  ;;  %v559_v26 = vadd.f32 0.5, %v558_v41 }
 0x801   :  { %563 = vrot.lane.b32.xlu1 %v561_v7, %s898_s3 }
 0x873   :  { %v564_v40 = vpop.permute.xlu1 %563 }
 0x874   :  { %v566_v25 = vadd.f32 %v564_v40, %v560_v17 }
 0x876   :  { %823 = vtanh.f32 %v566_v25 }
 0x87c   :  { %v824_v42 = vpop.eup %823 }
 0x87d   :  { %v1114_v31 = vmul.f32 %v824_v42, %v559_v26 }
 0x87f   :  { %v575_v32 = vpack.c.bf16 %v1114_v31, %v1114_v31 }
 0x881   :  { %577 = vrot.lane.b32.xlu2 %v575_v32, %s898_s3 }
 0x8db   :  { %v578_v59 = vpop.permute.xlu2 %577 }
 0x8dc   :  { %757 = vmatmul.msk.bf16.vlgmr.msrb.gmra.mxu2 %vm192_vm3, %v578_v59  ;;  %758 = vmatmul.msk.bf16.vlgmr.msrb.gmra.mxu3 %vm192_vm3, %v578_v59 }
 0x95f   :  { %v597_v44 = vpop.f32.mrf.mxu2  ;;  %v610_v45 = vpop.f32.mrf.mxu3 }
 0x960   :  { %v598_v63 = vadd.f32 %v597_v44, %v581_v43  ;;  %v611_v49 = vadd.f32 %v610_v45, %v582_v47 }
 0x962   :  { %v614_v46 = vmul.f32 0.5, %v598_v63  ;;  %v619_v56 = vmul.f32 0.5, %v611_v49 }
 0x964   :  { %825 = vtanh.f32 %v614_v46 }
 0x965   :  { %827 = vtanh.f32 %v611_v49 }
 0x966   :  { %829 = vtanh.f32 %v619_v56 }
 0x967   :  { %v599_v50 = vpop.f32.mrf.mxu2  ;;  %v612_v51 = vpop.f32.mrf.mxu3 }
 0x96a   :  { %v826_v52 = vpop.eup %825 }
 0x96b   :  { %v616_v53 = vmul.f32 0.5, %v826_v52  ;;  %v828_v55 = vpop.eup %827 }
 0x96c   :  { %v830_v2 = vpop.eup %829 }
 0x96d   :  { %v617_v54 = vadd.f32 0.5, %v616_v53  ;;  %v621_v4 = vmul.f32 0.5, %v830_v2 }
 0x96f   :  { %v624_v57 = vmul.f32 %v828_v55, %v617_v54  ;;  %v623_v61 = vmul.f32 %v617_v54, %v566_v25  ;;  %v622_v5 = vadd.f32 0.5, %v621_v4 }
 0x971   :  { %626 = vrot.lane.b32.xlu0 %v624_v57, %s898_s3 }
 0x979   :  { %241 = vrot.lane.b32.xlu0 %v1040_v30, %s898_s3 }
 0x981   :  { %436 = vrot.lane.b32.xlu0 %v1094_v48, %s898_s3 }
 0x9e3   :  { %v627_v62 = vpop.permute.xlu0 %626 }
 0x9e4   :  { %v629_v3 = vadd.f32 %v627_v62, %v623_v61 }
 0x9e6   :  { %831 = vtanh.f32 %v629_v3 }
 0x9eb   :  { %v242_v6 = vpop.permute.xlu0 %241 }
 0x9ec   :  { %v832_v10 = vpop.eup %831  ;;  %245 = vst.msk [vmem:[%s1212_s4] sm:$0x3] %vm244_vm4, %v242_v6 }
 0x9ed   :  { %247 = vst.msk [vmem:[%s1212_s4 + $0xe] sm:$0x3] %vm246_vm5, %v242_v6  ;;  %v631_v30 = vmul.f32 %v832_v10, %v622_v5 }
 0x9ef   :  { %633 = vrot.lane.b32.xlu0 %v631_v30, %s898_s3  ;;  %v638_v48 = vpack.c.bf16 %v631_v30, %v631_v30 }
 0x9f1   :  { %640 = vrot.lane.b32.xlu1 %v638_v48, %s898_s3 }
 0x9f3   :  { %v437_v11 = vpop.permute.xlu0 %436 }
 0x9f4   :  { %439 = vst.msk [vmem:[%s1212_s4 + $0x6] sm:$0x3] %vm244_vm4, %v437_v11 }
 0x9f5   :  { %440 = vst.msk [vmem:[%s1212_s4 + $0x8] sm:$0x3] %vm246_vm5, %v437_v11 }
 0x9f9   :  { %312 = vrot.lane.b32.xlu1 %v1058_v60, %s898_s3 }
 0xa01   :  { %501 = vrot.lane.b32.xlu1 %v1104_v19, %s898_s3 }
 0xa61   :  { %v634_v14 = vpop.permute.xlu0 %633 }
 0xa63   :  { %v641_v12 = vpop.permute.xlu1 %640 }
 0xa64   :  { %759 = vmatmul.msk.bf16.vlgmr.msra.gmra.mxu0 %vm192_vm3, %v641_v12  ;;  %760 = vmatmul.msk.bf16.vlgmr.msra.gmra.mxu1 %vm192_vm3, %v641_v12 }
 0xa6b   :  { %v313_v13 = vpop.permute.xlu1 %312 }
 0xa6c   :  { %315 = vst.msk [vmem:[%s1212_s4 + $0x2] sm:$0x3] %vm244_vm4, %v313_v13 }
 0xa6d   :  { %316 = vst.msk [vmem:[%s1212_s4 + $0xc] sm:$0x3] %vm246_vm5, %v313_v13 }
 0xa6e   :  { %636 = vst.msk [vmem:[%s1212_s4 + $0xc] sm:$0x3] %vm244_vm4, %v634_v14 }
 0xa6f   :  { %637 = vst.msk [vmem:[%s1212_s4 + $0x2] sm:$0x3] %vm246_vm5, %v634_v14 }
 0xa73   :  { %v502_v60 = vpop.permute.xlu1 %501 }
 0xa74   :  { %504 = vst.msk [vmem:[%s1212_s4 + $0x8] sm:$0x3] %vm244_vm4, %v502_v60 }
 0xa75   :  { %505 = vst.msk [vmem:[%s1212_s4 + $0x6] sm:$0x3] %vm246_vm5, %v502_v60 }
 0xae1   :  { %v658_v16 = vpop.f32.mrf.mxu0  ;;  %v671_v18 = vpop.f32.mrf.mxu1 }
 0xae2   :  { %v659_v19 = vadd.f32 %v658_v16, %v642_v15  ;;  %v672_v1 = vadd.f32 %v671_v18, %v643_v22 }
 0xae4   :  { %v675_v21 = vmul.f32 0.5, %v659_v19  ;;  %v680_v58 = vmul.f32 0.5, %v672_v1 }
 0xae6   :  { %833 = vtanh.f32 %v675_v21 }
 0xae7   :  { %835 = vtanh.f32 %v672_v1 }
 0xae8   :  { %837 = vtanh.f32 %v680_v58 }
 0xae9   :  { %v660_v23 = vpop.f32.mrf.mxu0  ;;  %v673_v24 = vpop.f32.mrf.mxu1 }
 0xaec   :  { %v834_v27 = vpop.eup %833 }
 0xaed   :  { %v677_v9 = vmul.f32 0.5, %v834_v27  ;;  %v836_v29 = vpop.eup %835 }
 0xaee   :  { %v838_v36 = vpop.eup %837 }
 0xaef   :  { %v678_v28 = vadd.f32 0.5, %v677_v9  ;;  %v682_v38 = vmul.f32 0.5, %v838_v36 }
 0xaf1   :  { %v685_v34 = vmul.f32 %v836_v29, %v678_v28  ;;  %v684_v0 = vmul.f32 %v678_v28, %v629_v3  ;;  %v683_v39 = vadd.f32 0.5, %v682_v38 }
 0xaf3   :  { %687 = vrot.lane.b32.xlu2 %v685_v34, %s898_s3 }
 0xafb   :  { %375 = vrot.lane.b32.xlu2 %v1076_v33, %s898_s3 }
 0xb03   :  { %570 = vrot.lane.b32.xlu2 %v1114_v31, %s898_s3 }
 0xb4d   :  { %v688_v35 = vpop.permute.xlu2 %687 }
 0xb4e   :  { %v690_v37 = vadd.f32 %v688_v35, %v684_v0 }
 0xb50   :  { %839 = vtanh.f32 %v690_v37 }
 0xb55   :  { %v376_v7 = vpop.permute.xlu2 %375 }
 0xb56   :  { %v840_v8 = vpop.eup %839  ;;  %378 = vst.msk [vmem:[%s1212_s4 + $0x4] sm:$0x3] %vm244_vm4, %v376_v7 }
 0xb57   :  { %379 = vst.msk [vmem:[%s1212_s4 + $0xa] sm:$0x3] %vm246_vm5, %v376_v7  ;;  %v692_v33 = vmul.f32 %v840_v8, %v683_v39 }
 0xb59   :  { %694 = vrot.lane.b32.xlu1 %v692_v33, %s898_s3 }
 0xb5d   :  { %v571_v17 = vpop.permute.xlu2 %570 }
 0xb5e   :  { %573 = vst.msk [vmem:[%s1212_s4 + $0xa] sm:$0x3] %vm244_vm4, %v571_v17 }
 0xb5f   :  { %574 = vst.msk [vmem:[%s1212_s4 + $0x4] sm:$0x3] %vm246_vm5, %v571_v17 }
 0xbcb   :  { %v695_v40 = vpop.permute.xlu1 %694 }
 0xbcc   :  { %697 = vst.msk [vmem:[%s1212_s4 + $0xe] sm:$0x3] %vm244_vm4, %v695_v40 }
 0xbcd   :  { %698 = vst.msk [vmem:[%s1212_s4] sm:$0x3] %vm246_vm5, %v695_v40 }
 0xbce   :  { %703 = vsyncpa [#allocation3], 1 }
 0xbcf   :  { %704 = vsyncpa [#allocation5], 1 }

// kernel: _lambda_.5
= control target key start
LH: loop header
LB: loop body
LE: loop exit
PB: predicated region body
PF: predicated region fallthrough
CT: control target
= control target key end

     0   :  { %11 = vsyncpa [#allocation4], 0  ;;  %s1384_s0 = inlined_call_operand.vmem [shape: f32[16,64], index: 0, kind: input, shape index: {}]   ;;  %s1385_s1 = inlined_call_operand.vmem [shape: bf16[64,256], index: 1, kind: input, shape index: {}]   ;;  %s1386_s2 = inlined_call_operand.hbm [shape: bf16[64,256], index: 2, kind: input, shape index: {}]   ;;  %s1387_s3 = inlined_call_operand.vmem [shape: f32[1,256], index: 3, kind: input, shape index: {}]   ;;  %s1388_s4 = inlined_call_operand.hbm [shape: bf16[64,8], index: 4, kind: input, shape index: {}]   ;;  %s1389_s5 = inlined_call_operand.vmem [shape: f32[1,8], index: 5, kind: input, shape index: {}]   ;;  %s1390_s6 = inlined_call_operand.vmem [shape: f32[16,8], index: 6, kind: output, shape index: {}]  }
   0x1   :  { %s21_s23 = sshll.u32 %s1386_s2, 4  ;;  %s22_s23 = int_to_ptr.hbm [resolvable:$true] %s21_s23 }
   0x2   :  { %12 = vsyncpa [#allocation6], 0  ;;  %s1046_s24 = smov [#allocation3]   ;;  %s36_s28 = sshll.u32 %s1388_s4, 4  ;;  %s37_s28 = int_to_ptr.hbm [resolvable:$true] %s36_s28 }
   0x3   :  { %s23_s25 = sshll.u32 %s1046_s24, 4  ;;  %s1047_s29 = smov 128   ;;  %s24_s25 = int_to_ptr.vmem [resolvable:$true] %s23_s25 }
   0x4   :  { %s1048_s30 = smov 8   ;;  %s1049_s7 = smov [#allocation5]  }
   0x5   :  { %29 = dma.hbm_to_vmem [thread:$0]  %s22_s23, 1024, %s24_s25, [#allocation4], %s1047_s29, %s1047_s29, %s1048_s30  }
   0x6   :  { %s38_s8 = sshll.u32 %s1049_s7, 4  ;;  %s1050_s9 = smov 64   ;;  %s39_s8 = int_to_ptr.vmem [resolvable:$true] %s38_s8 }
   0x7   :  { %s1051_s10 = smov 4  }
   0x8   :  { %44 = dma.hbm_to_vmem [thread:$0]  %s37_s28, 512, %s39_s8, [#allocation6], %s1050_s9, %s1050_s9, %s1051_s10  }
   0x9   :  { %1042 = dma.done.wait [#allocation4], 1024  }
   0xa   :  { %1043 = vsyncadd [#allocation4], 4294966272 }
   0xb   :  { %1044 = dma.done.wait [#allocation6], 512  }
   0xc   :  { %1045 = vsyncadd [#allocation6], 4294966784  ;;  %v831_v0 = vld [vmem:[%s1385_s1 + $0x30] sm:$0xf]  ;;  %v909_v1 = vld [vmem:[%s1385_s1 + $0x34] sm:$0xf0]  ;;  %v153_v52 = vlaneseq }
   0xd   :  { %v908_v2 = vld [vmem:[%s1385_s1 + $0x34] sm:$0xf]  ;;  %v832_v3 = vor.u32 %v909_v1, %v831_v0  ;;  %v833_v4 = vld [vmem:[%s1385_s1 + $0x38] sm:$0xf0]  ;;  %v865_v5 = vld [vmem:[#allocation3 + $0x30] sm:$0xf] }
   0xe   :  { %v917_v6 = vld [vmem:[#allocation3 + $0x34] sm:$0xf0]  ;;  %v836_v7 = vor.u32 %v908_v2, %v833_v4  ;;  %v823_v9 = vld [vmem:[%s1385_s1 + $0x20] sm:$0xf]  ;;  %v906_v11 = vld [vmem:[%s1385_s1 + $0x24] sm:$0xf] }
   0xf   :  { %v1108_v8 = vor.u32 %v917_v6, %v865_v5  ;;  %v907_v10 = vld [vmem:[%s1385_s1 + $0x24] sm:$0xf0]  ;;  %121 = vmatpush.bf16.msra.mxu0 %v832_v3  ;;  %v825_v13 = vld [vmem:[%s1385_s1 + $0x28] sm:$0xf0]  ;;  %v857_v14 = vld [vmem:[#allocation3 + $0x20] sm:$0xf] }
  0x10   :  { %v824_v12 = vor.u32 %v907_v10, %v823_v9  ;;  %v915_v15 = vld [vmem:[#allocation3 + $0x24] sm:$0xf0]  ;;  %135 = vmatpush.bf16.msra.mxu1 %v836_v7  ;;  %v828_v16 = vor.u32 %v906_v11, %v825_v13  ;;  %v916_v18 = vld [vmem:[#allocation3 + $0x34] sm:$0xf]  ;;  %v867_v19 = vld [vmem:[#allocation3 + $0x38] sm:$0xf0] }
  0x11   :  { %241 = vmatpush.bf16.msra.mxu2 %v1108_v8  ;;  %v1123_v17 = vor.u32 %v915_v15, %v857_v14  ;;  %v815_v20 = vld [vmem:[%s1385_s1 + $0x10] sm:$0xf]  ;;  %v1128_v21 = vor.u32 %v916_v18, %v867_v19  ;;  %v905_v22 = vld [vmem:[%s1385_s1 + $0x14] sm:$0xf0]  ;;  %v904_v23 = vld [vmem:[%s1385_s1 + $0x14] sm:$0xf] }
  0x12   :  { %v817_v24 = vld [vmem:[%s1385_s1 + $0x18] sm:$0xf0]  ;;  %v849_v25 = vld [vmem:[#allocation3 + $0x10] sm:$0xf]  ;;  %v913_v26 = vld [vmem:[#allocation3 + $0x14] sm:$0xf0]  ;;  %v816_v28 = vor.u32 %v905_v22, %v815_v20 }
  0x13   :  { %v914_v27 = vld [vmem:[#allocation3 + $0x24] sm:$0xf]  ;;  %122 = vmatpush.bf16.msra.mxu0 %v824_v12  ;;  %254 = vmatpush.bf16.msra.mxu3 %v1128_v21  ;;  %v859_v29 = vld [vmem:[#allocation3 + $0x28] sm:$0xf0]  ;;  %v807_v30 = vld [vmem:[%s1385_s1] sm:$0xf]  ;;  %v820_v32 = vor.u32 %v904_v23, %v817_v24  ;;  %v1147_v33 = vor.u32 %v913_v26, %v849_v25 }
  0x14   :  { %v903_v31 = vld [vmem:[%s1385_s1 + $0x4] sm:$0xf0]  ;;  %136 = vmatpush.bf16.msra.mxu1 %v828_v16  ;;  %v1149_v34 = vor.u32 %v914_v27, %v859_v29  ;;  %v902_v35 = vld [vmem:[%s1385_s1 + $0x4] sm:$0xf]  ;;  %v809_v36 = vld [vmem:[%s1385_s1 + $0x8] sm:$0xf0] }
  0x15   :  { %242 = vmatpush.bf16.msra.mxu2 %v1123_v17  ;;  %v841_v37 = vld [vmem:[#allocation3] sm:$0xf]  ;;  %v911_v38 = vld [vmem:[#allocation3 + $0x4] sm:$0xf0]  ;;  %v912_v39 = vld [vmem:[#allocation3 + $0x14] sm:$0xf]  ;;  %v808_v41 = vor.u32 %v903_v31, %v807_v30  ;;  %v812_v45 = vor.u32 %v902_v35, %v809_v36 }
  0x16   :  { %v851_v40 = vld [vmem:[#allocation3 + $0x18] sm:$0xf0]  ;;  %v56_v43 = vld [vmem:[%s1384_s0] sm:$0xff]  ;;  %v1167_v46 = vor.u32 %v911_v38, %v841_v37  ;;  %v910_v47 = vld [vmem:[#allocation3 + $0x4] sm:$0xf]  ;;  %vm113_vm0 = vcmask 523264  }
  0x17   :  { %123 = vmatpush.bf16.msra.mxu0 %v816_v28  ;;  %255 = vmatpush.bf16.msra.mxu3 %v1149_v34  ;;  %v1158_v42 = vor.u32 %v912_v39, %v851_v40  ;;  %v57_v44 = vld [vmem:[%s1384_s0 + $0x8] sm:$0xff]  ;;  %v843_v48 = vld [vmem:[#allocation3 + $0x8] sm:$0xf0]  ;;  %v1052_v51 = vmov 0   ;;  %v154_v53 = vand.u32 127, %v153_v52  ;;  %vm285_vm3 = vcmask 254976  }
  0x18   :  { %137 = vmatpush.bf16.msra.mxu1 %v820_v32  ;;  %v58_v49 = vpack.c.bf16 %v57_v44, %v56_v43  ;;  %v1171_v50 = vor.u32 %v910_v47, %v843_v48  ;;  %v67_v54 = vld [vmem:[%s1387_s3] sm:$0x3]  ;;  %vm287_vm4 = vcmask 517376   ;;  %vm796_vm5 = vcmask 64512  }
  0x19   :  { %243 = vmatpush.bf16.msra.mxu2 %v1147_v33  ;;  %v70_v56 = vperm.slane %v67_v54, 1  ;;  %v155_v57 = vadd.s32 128, %v154_v53  ;;  %v69_v58 = vperm.slane %v67_v54, 0  ;;  %v160_v61 = vand.u32 63, %v154_v53 }
  0x1b   :  { %124 = vmatpush.bf16.msra.mxu0 %v808_v41  ;;  %256 = vmatpush.bf16.msra.mxu3 %v1158_v42  ;;  %v167_v62 = vand.u32 63, %v155_v57  ;;  %vm1215_vm2 = vcmp.lt.s32.totalorder %v160_v61, 32 }
  0x1c   :  { %138 = vmatpush.bf16.msra.mxu1 %v812_v45 }
  0x1d   :  { %244 = vmatpush.bf16.msra.mxu2 %v1167_v46  ;;  %vm1211_vm1 = vcmp.lt.s32.totalorder %v167_v62, 32 }
  0x1e   :  { %837 = vmatmul.msk.bf16.vlgmr.msra.gmra.mxu0 %vm113_vm0, %v58_v49 }
  0x1f   :  { %312 = vmatpush.bf16.msrb.mxu0 %v1108_v8  ;;  %838 = vmatmul.msk.bf16.vlgmr.msra.gmra.mxu1 %vm113_vm0, %v58_v49 }
  0x20   :  { %325 = vmatpush.bf16.msrb.mxu1 %v1128_v21  ;;  %245 = vmatmul.bf16.vlgmr.msra.gmra.mxu2 %v1052_v51 }
  0x21   :  { %375 = vmatpush.bf16.msrb.mxu2 %v1108_v8  ;;  %257 = vmatpush.bf16.msra.mxu3 %v1171_v50 }
  0x23   :  { %313 = vmatpush.bf16.msrb.mxu0 %v1123_v17 }
  0x24   :  { %326 = vmatpush.bf16.msrb.mxu1 %v1149_v34  ;;  %258 = vmatmul.bf16.vlgmr.msra.gmra.mxu3 %v1052_v51 }
  0x25   :  { %388 = vmatpush.bf16.msrb.mxu3 %v1128_v21  ;;  %376 = vmatpush.bf16.msrb.mxu2 %v1123_v17 }
  0x27   :  { %314 = vmatpush.bf16.msrb.mxu0 %v1147_v33 }
  0x28   :  { %327 = vmatpush.bf16.msrb.mxu1 %v1158_v42 }
  0x29   :  { %389 = vmatpush.bf16.msrb.mxu3 %v1149_v34  ;;  %377 = vmatpush.bf16.msrb.mxu2 %v1147_v33 }
  0x2b   :  { %315 = vmatpush.bf16.msrb.mxu0 %v1167_v46 }
  0x2c   :  { %328 = vmatpush.bf16.msrb.mxu1 %v1171_v50 }
  0x2d   :  { %390 = vmatpush.bf16.msrb.mxu3 %v1158_v42  ;;  %378 = vmatpush.bf16.msrb.mxu2 %v1167_v46 }
  0x2f   :  { %436 = vmatpush.bf16.msra.mxu0 %v1108_v8 }
  0x30   :  { %449 = vmatpush.bf16.msra.mxu1 %v1128_v21 }
  0x31   :  { %501 = vmatpush.bf16.msra.mxu2 %v1108_v8  ;;  %391 = vmatpush.bf16.msrb.mxu3 %v1171_v50 }
  0x33   :  { %437 = vmatpush.bf16.msra.mxu0 %v1123_v17 }
  0x34   :  { %450 = vmatpush.bf16.msra.mxu1 %v1149_v34 }
  0x35   :  { %514 = vmatpush.bf16.msra.mxu3 %v1128_v21  ;;  %502 = vmatpush.bf16.msra.mxu2 %v1123_v17 }
  0x37   :  { %438 = vmatpush.bf16.msra.mxu0 %v1147_v33 }
  0x38   :  { %451 = vmatpush.bf16.msra.mxu1 %v1158_v42 }
  0x39   :  { %515 = vmatpush.bf16.msra.mxu3 %v1149_v34  ;;  %503 = vmatpush.bf16.msra.mxu2 %v1147_v33 }
  0x3b   :  { %439 = vmatpush.bf16.msra.mxu0 %v1167_v46 }
  0x3c   :  { %452 = vmatpush.bf16.msra.mxu1 %v1171_v50 }
  0x3d   :  { %516 = vmatpush.bf16.msra.mxu3 %v1158_v42  ;;  %504 = vmatpush.bf16.msra.mxu2 %v1167_v46 }
  0x41   :  { %517 = vmatpush.bf16.msra.mxu3 %v1171_v50 }
  0x9b   :  { %v126_v55 = vpop.f32.mrf.mxu0 }
  0x9c   :  { %v140_v59 = vpop.f32.mrf.mxu1  ;;  %v127_v63 = vadd.f32 %v126_v55, %v69_v58 }
  0x9d   :  { %v141_v60 = vadd.f32 %v140_v59, %v70_v56 }
  0x9e   :  { %v485_v7 = vrot.slane %v127_v63, 6  ;;  %v548_v9 = vrot.slane %v127_v63, 2 }
  0x9f   :  { %v486_v4 = vrot.slane %v141_v60, 6  ;;  %v549_v10 = vrot.slane %v141_v60, 2 }
  0xa3   :  { %v246_v0 = vpop.f32.mrf.mxu2  ;;  %v128_v1 = vpop.f32.mrf.mxu0 }
  0xa4   :  { %v129_v5 = vadd.f32 %v128_v1, %v69_v58  ;;  %v142_v6 = vpop.f32.mrf.mxu1 }
  0xa5   :  { %v143_v11 = vadd.f32 %v142_v6, %v70_v56 }
  0xa6   :  { %v188_v12 = vrot.slane %v129_v5, 6  ;;  %v290_v14 = vrot.slane %v129_v5, 2  ;;  %v1221_v15 = vsel %vm1215_vm2, %v129_v5, %v485_v7  ;;  %v1225_v16 = vsel %vm1215_vm2, %v129_v5, %v548_v9 }
  0xa7   :  { %v259_v13 = vpop.f32.mrf.mxu3  ;;  %v189_v18 = vrot.slane %v143_v11, 6  ;;  %v291_v19 = vrot.slane %v143_v11, 2  ;;  %v1229_v20 = vsel %vm1211_vm1, %v143_v11, %v486_v4  ;;  %v1241_v24 = vsel %vm1211_vm1, %v143_v11, %v549_v10 }
  0xa8   :  { %v1233_v22 = vsel %vm1215_vm2, %v127_v63, %v188_v12  ;;  %v1237_v23 = vsel %vm1215_vm2, %v127_v63, %v290_v14 }
  0xa9   :  { %v247_v25 = vadd.f32 %v246_v0, %v1233_v22  ;;  %v1246_v26 = vsel %vm1211_vm1, %v141_v60, %v291_v19  ;;  %v1250_v27 = vsel %vm1211_vm1, %v141_v60, %v189_v18  ;;  %v301_v53 = vrot.slane %v1237_v23, 2 }
  0xaa   :  { %v260_v30 = vadd.f32 %v259_v13, %v1250_v27  ;;  %v302_v58 = vrot.slane %v1246_v26, 2  ;;  %v364_v18 = vrot.slane %v1233_v22, 4 }
  0xab   :  { %v248_v28 = vpop.f32.mrf.mxu2  ;;  %v263_v29 = vmul.f32 0.5, %v247_v25 }
  0xac   :  { %v268_v39 = vmul.f32 0.5, %v260_v30 }
  0xad   :  { %930 = vtanh.f32 %v263_v29 }
  0xae   :  { %932 = vtanh.f32 %v260_v30  ;;  %v365_v30 = vrot.slane %v1250_v27, 4 }
  0xaf   :  { %v261_v31 = vpop.f32.mrf.mxu3  ;;  %934 = vtanh.f32 %v268_v39 }
  0xb3   :  { %v931_v32 = vpop.eup %930 }
  0xb4   :  { %v265_v35 = vmul.f32 0.5, %v931_v32  ;;  %v933_v37 = vpop.eup %932 }
  0xb5   :  { %v935_v43 = vpop.eup %934 }
  0xb6   :  { %v266_v36 = vadd.f32 0.5, %v265_v35  ;;  %v270_v45 = vmul.f32 0.5, %v935_v43 }
  0xb8   :  { %v273_v38 = vmul.f32 %v933_v37, %v266_v36  ;;  %v272_v40 = vmul.f32 0.0, %v266_v36  ;;  %v271_v47 = vadd.f32 0.5, %v270_v45 }
  0xba   :  { %275 = vrot.lane.b32.xlu0 %v273_v38, %s1050_s9 }
 0x12c   :  { %v276_v41 = vpop.permute.xlu0 %275 }
 0x12d   :  { %v278_v44 = vadd.f32 %v276_v41, %v272_v40 }
 0x12f   :  { %936 = vtanh.f32 %v278_v44 }
 0x135   :  { %v937_v48 = vpop.eup %936 }
 0x136   :  { %v1254_v49 = vmul.f32 %v937_v48, %v271_v47 }
 0x138   :  { %v289_v51 = vpack.c.bf16 %v1254_v49, %v1254_v49 }
 0x13a   :  { %297 = vrot.lane.b32.xlu0 %v289_v51, %s1050_s9 }
 0x1ac   :  { %v298_v52 = vpop.permute.xlu0 %297 }
 0x1ad   :  { %871 = vmatmul.msk.bf16.vlgmr.msrb.gmra.mxu0 %vm113_vm0, %v298_v52  ;;  %872 = vmatmul.msk.bf16.vlgmr.msrb.gmra.mxu1 %vm113_vm0, %v298_v52 }
 0x1ae   :  { %570 = vmatpush.bf16.msrb.mxu0 %v1108_v8  ;;  %583 = vmatpush.bf16.msrb.mxu1 %v1128_v21 }
 0x1b2   :  { %571 = vmatpush.bf16.msrb.mxu0 %v1123_v17  ;;  %584 = vmatpush.bf16.msrb.mxu1 %v1149_v34 }
 0x1b6   :  { %572 = vmatpush.bf16.msrb.mxu0 %v1147_v33  ;;  %585 = vmatpush.bf16.msrb.mxu1 %v1158_v42 }
 0x1ba   :  { %573 = vmatpush.bf16.msrb.mxu0 %v1167_v46  ;;  %586 = vmatpush.bf16.msrb.mxu1 %v1171_v50 }
 0x22a   :  { %v317_v54 = vpop.f32.mrf.mxu0  ;;  %v330_v55 = vpop.f32.mrf.mxu1 }
 0x22b   :  { %v318_v56 = vadd.f32 %v317_v54, %v301_v53  ;;  %v331_v59 = vadd.f32 %v330_v55, %v302_v58  ;;  %v425_v54 = vrot.slane %v1237_v23, 6 }
 0x22d   :  { %v334_v57 = vmul.f32 0.5, %v318_v56  ;;  %v339_v3 = vmul.f32 0.5, %v331_v59 }
 0x22f   :  { %938 = vtanh.f32 %v334_v57 }
 0x230   :  { %940 = vtanh.f32 %v331_v59 }
 0x231   :  { %942 = vtanh.f32 %v339_v3 }
 0x232   :  { %v319_v60 = vpop.f32.mrf.mxu0  ;;  %v332_v61 = vpop.f32.mrf.mxu1 }
 0x235   :  { %v939_v62 = vpop.eup %938 }
 0x236   :  { %v336_v63 = vmul.f32 0.5, %v939_v62  ;;  %v941_v1 = vpop.eup %940 }
 0x237   :  { %v943_v6 = vpop.eup %942 }
 0x238   :  { %v337_v0 = vadd.f32 0.5, %v336_v63  ;;  %v341_v9 = vmul.f32 0.5, %v943_v6 }
 0x23a   :  { %v344_v2 = vmul.f32 %v941_v1, %v337_v0  ;;  %v343_v4 = vmul.f32 %v337_v0, %v278_v44  ;;  %v342_v10 = vadd.f32 0.5, %v341_v9 }
 0x23c   :  { %346 = vrot.lane.b32.xlu1 %v344_v2, %s1050_s9 }
 0x2ae   :  { %v347_v5 = vpop.permute.xlu1 %346 }
 0x2af   :  { %v349_v7 = vadd.f32 %v347_v5, %v343_v4 }
 0x2b1   :  { %944 = vtanh.f32 %v349_v7 }
 0x2b7   :  { %v945_v11 = vpop.eup %944 }
 0x2b8   :  { %v1272_v12 = vmul.f32 %v945_v11, %v342_v10 }
 0x2ba   :  { %v358_v13 = vpack.c.bf16 %v1272_v12, %v1272_v12 }
 0x2bc   :  { %360 = vrot.lane.b32.xlu1 %v358_v13, %s1050_s9 }
 0x32e   :  { %v361_v14 = vpop.permute.xlu1 %360 }
 0x32f   :  { %873 = vmatmul.msk.bf16.vlgmr.msrb.gmra.mxu2 %vm113_vm0, %v361_v14  ;;  %874 = vmatmul.msk.bf16.vlgmr.msrb.gmra.mxu3 %vm113_vm0, %v361_v14 }
 0x330   :  { %633 = vmatpush.bf16.msrb.mxu2 %v1108_v8  ;;  %646 = vmatpush.bf16.msrb.mxu3 %v1128_v21 }
 0x334   :  { %634 = vmatpush.bf16.msrb.mxu2 %v1123_v17  ;;  %647 = vmatpush.bf16.msrb.mxu3 %v1149_v34 }
 0x338   :  { %635 = vmatpush.bf16.msrb.mxu2 %v1147_v33  ;;  %648 = vmatpush.bf16.msrb.mxu3 %v1158_v42 }
 0x33c   :  { %636 = vmatpush.bf16.msrb.mxu2 %v1167_v46  ;;  %649 = vmatpush.bf16.msrb.mxu3 %v1171_v50 }
 0x3b2   :  { %v380_v19 = vpop.f32.mrf.mxu2  ;;  %v393_v25 = vpop.f32.mrf.mxu3 }
 0x3b3   :  { %v381_v28 = vadd.f32 %v380_v19, %v364_v18  ;;  %v394_v31 = vadd.f32 %v393_v25, %v365_v30 }
 0x3b5   :  { %v397_v29 = vmul.f32 0.5, %v381_v28  ;;  %v402_v41 = vmul.f32 0.5, %v394_v31 }
 0x3b7   :  { %946 = vtanh.f32 %v397_v29 }
 0x3b8   :  { %948 = vtanh.f32 %v394_v31 }
 0x3b9   :  { %950 = vtanh.f32 %v402_v41 }
 0x3ba   :  { %v382_v32 = vpop.f32.mrf.mxu2  ;;  %v395_v35 = vpop.f32.mrf.mxu3 }
 0x3bd   :  { %v947_v36 = vpop.eup %946 }
 0x3be   :  { %v399_v37 = vmul.f32 0.5, %v947_v36  ;;  %v949_v39 = vpop.eup %948 }
 0x3bf   :  { %v951_v44 = vpop.eup %950 }
 0x3c0   :  { %v400_v38 = vadd.f32 0.5, %v399_v37  ;;  %v404_v27 = vmul.f32 0.5, %v951_v44 }
 0x3c2   :  { %v407_v40 = vmul.f32 %v949_v39, %v400_v38  ;;  %v406_v22 = vmul.f32 %v400_v38, %v349_v7  ;;  %v405_v47 = vadd.f32 0.5, %v404_v27 }
 0x3c4   :  { %409 = vrot.lane.b32.xlu2 %v407_v40, %s1050_s9 }
 0x41e   :  { %v410_v43 = vpop.permute.xlu2 %409 }
 0x41f   :  { %v412_v45 = vadd.f32 %v410_v43, %v406_v22  ;;  %v559_v22 = vrot.slane %v1225_v16, 2 }
 0x421   :  { %952 = vtanh.f32 %v412_v45 }
 0x427   :  { %v953_v48 = vpop.eup %952 }
 0x428   :  { %v1290_v51 = vmul.f32 %v953_v48, %v405_v47  ;;  %v560_v47 = vrot.slane %v1241_v24, 2 }
 0x42a   :  { %v421_v52 = vpack.c.bf16 %v1290_v51, %v1290_v51 }
 0x42c   :  { %423 = vrot.lane.b32.xlu2 %v421_v52, %s1050_s9 }
 0x486   :  { %v424_v53 = vpop.permute.xlu2 %423 }
 0x487   :  { %875 = vmatmul.msk.bf16.vlgmr.msra.gmra.mxu0 %vm113_vm0, %v424_v53  ;;  %876 = vmatmul.msk.bf16.vlgmr.msra.gmra.mxu1 %vm113_vm0, %v424_v53 }
 0x488   :  { %694 = vmatpush.bf16.msra.mxu0 %v1108_v8  ;;  %707 = vmatpush.bf16.msra.mxu1 %v1128_v21  ;;  %v426_v21 = vrot.slane %v1246_v26, 6 }
 0x48c   :  { %695 = vmatpush.bf16.msra.mxu0 %v1123_v17  ;;  %708 = vmatpush.bf16.msra.mxu1 %v1149_v34 }
 0x490   :  { %696 = vmatpush.bf16.msra.mxu0 %v1147_v33  ;;  %709 = vmatpush.bf16.msra.mxu1 %v1158_v42 }
 0x494   :  { %697 = vmatpush.bf16.msra.mxu0 %v1167_v46  ;;  %710 = vmatpush.bf16.msra.mxu1 %v1171_v50 }
 0x504   :  { %v441_v55 = vpop.f32.mrf.mxu0  ;;  %v454_v56 = vpop.f32.mrf.mxu1 }
 0x505   :  { %v442_v57 = vadd.f32 %v441_v55, %v425_v54  ;;  %v455_v17 = vadd.f32 %v454_v56, %v426_v21 }
 0x507   :  { %v458_v8 = vmul.f32 0.5, %v442_v57  ;;  %v463_v50 = vmul.f32 0.5, %v455_v17 }
 0x509   :  { %954 = vtanh.f32 %v458_v8 }
 0x50a   :  { %956 = vtanh.f32 %v455_v17 }
 0x50b   :  { %958 = vtanh.f32 %v463_v50 }
 0x50c   :  { %v443_v58 = vpop.f32.mrf.mxu0  ;;  %v456_v34 = vpop.f32.mrf.mxu1 }
 0x50f   :  { %v955_v33 = vpop.eup %954 }
 0x510   :  { %v460_v59 = vmul.f32 0.5, %v955_v33  ;;  %v957_v60 = vpop.eup %956 }
 0x511   :  { %v959_v62 = vpop.eup %958 }
 0x512   :  { %v461_v42 = vadd.f32 0.5, %v460_v59  ;;  %v465_v26 = vmul.f32 0.5, %v959_v62 }
 0x514   :  { %v468_v46 = vmul.f32 %v957_v60, %v461_v42  ;;  %v467_v23 = vmul.f32 %v461_v42, %v412_v45  ;;  %v466_v0 = vadd.f32 0.5, %v465_v26 }
 0x516   :  { %470 = vrot.lane.b32.xlu0 %v468_v46, %s1050_s9 }
 0x588   :  { %v471_v61 = vpop.permute.xlu0 %470 }
 0x589   :  { %v473_v63 = vadd.f32 %v471_v61, %v467_v23  ;;  %v622_v61 = vrot.slane %v1221_v15, 4 }
 0x58b   :  { %960 = vtanh.f32 %v473_v63 }
 0x591   :  { %v961_v1 = vpop.eup %960 }
 0x592   :  { %v1308_v2 = vmul.f32 %v961_v1, %v466_v0  ;;  %v623_v1 = vrot.slane %v1229_v20, 4 }
 0x594   :  { %v482_v3 = vpack.c.bf16 %v1308_v2, %v1308_v2 }
 0x596   :  { %492 = vrot.lane.b32.xlu1 %v482_v3, %s1050_s9 }
 0x608   :  { %v493_v4 = vpop.permute.xlu1 %492 }
 0x609   :  { %877 = vmatmul.msk.bf16.vlgmr.msra.gmra.mxu2 %vm113_vm0, %v493_v4  ;;  %878 = vmatmul.msk.bf16.vlgmr.msra.gmra.mxu3 %vm113_vm0, %v493_v4 }
 0x68c   :  { %v506_v5 = vpop.f32.mrf.mxu2  ;;  %v519_v6 = vpop.f32.mrf.mxu3 }
 0x68d   :  { %v507_v7 = vadd.f32 %v506_v5, %v1221_v15  ;;  %v520_v10 = vadd.f32 %v519_v6, %v1229_v20 }
 0x68f   :  { %v523_v9 = vmul.f32 0.5, %v507_v7  ;;  %v528_v29 = vmul.f32 0.5, %v520_v10 }
 0x691   :  { %962 = vtanh.f32 %v523_v9 }
 0x692   :  { %964 = vtanh.f32 %v520_v10 }
 0x693   :  { %966 = vtanh.f32 %v528_v29 }
 0x694   :  { %v508_v11 = vpop.f32.mrf.mxu2  ;;  %v521_v13 = vpop.f32.mrf.mxu3 }
 0x697   :  { %v963_v14 = vpop.eup %962 }
 0x698   :  { %v525_v18 = vmul.f32 0.5, %v963_v14  ;;  %v965_v25 = vpop.eup %964 }
 0x699   :  { %v967_v32 = vpop.eup %966 }
 0x69a   :  { %v526_v19 = vadd.f32 0.5, %v525_v18  ;;  %v530_v36 = vmul.f32 0.5, %v967_v32 }
 0x69c   :  { %v533_v28 = vmul.f32 %v965_v25, %v526_v19  ;;  %v532_v30 = vmul.f32 %v526_v19, %v473_v63  ;;  %v531_v37 = vadd.f32 0.5, %v530_v36 }
 0x69e   :  { %535 = vrot.lane.b32.xlu2 %v533_v28, %s1050_s9 }
 0x6f8   :  { %v536_v31 = vpop.permute.xlu2 %535 }
 0x6f9   :  { %v538_v35 = vadd.f32 %v536_v31, %v532_v30 }
 0x6fb   :  { %968 = vtanh.f32 %v538_v35 }
 0x701   :  { %v969_v38 = vpop.eup %968 }
 0x702   :  { %v1318_v39 = vmul.f32 %v969_v38, %v531_v37 }
 0x704   :  { %v547_v40 = vpack.c.bf16 %v1318_v39, %v1318_v39 }
 0x706   :  { %555 = vrot.lane.b32.xlu0 %v547_v40, %s1050_s9 }
 0x778   :  { %v556_v41 = vpop.permute.xlu0 %555 }
 0x779   :  { %879 = vmatmul.msk.bf16.vlgmr.msrb.gmra.mxu0 %vm113_vm0, %v556_v41  ;;  %880 = vmatmul.msk.bf16.vlgmr.msrb.gmra.mxu1 %vm113_vm0, %v556_v41  ;;  %v684_v41 = vrot.slane %v1241_v24, 6  ;;  %v920_v24 = vld [vmem:[#allocation5 + $0x10] sm:$0xff] }
 0x7f6   :  { %v575_v43 = vpop.f32.mrf.mxu0  ;;  %v588_v44 = vpop.f32.mrf.mxu1 }
 0x7f7   :  { %v576_v45 = vadd.f32 %v575_v43, %v559_v22  ;;  %v589_v48 = vadd.f32 %v588_v44, %v560_v47 }
 0x7f9   :  { %v592_v27 = vmul.f32 0.5, %v576_v45  ;;  %v597_v21 = vmul.f32 0.5, %v589_v48 }
 0x7fb   :  { %970 = vtanh.f32 %v592_v27 }
 0x7fc   :  { %972 = vtanh.f32 %v589_v48 }
 0x7fd   :  { %974 = vtanh.f32 %v597_v21 }
 0x7fe   :  { %v577_v52 = vpop.f32.mrf.mxu0  ;;  %v590_v53 = vpop.f32.mrf.mxu1 }
 0x801   :  { %v971_v54 = vpop.eup %970 }
 0x802   :  { %v594_v55 = vmul.f32 0.5, %v971_v54  ;;  %v973_v57 = vpop.eup %972 }
 0x803   :  { %v975_v34 = vpop.eup %974 }
 0x804   :  { %v595_v56 = vadd.f32 0.5, %v594_v55  ;;  %v599_v59 = vmul.f32 0.5, %v975_v34 }
 0x806   :  { %v602_v8 = vmul.f32 %v973_v57, %v595_v56  ;;  %v601_v17 = vmul.f32 %v595_v56, %v538_v35  ;;  %v600_v42 = vadd.f32 0.5, %v599_v59  ;;  %v918_v59 = vld [vmem:[#allocation5] sm:$0xff] }
 0x808   :  { %604 = vrot.lane.b32.xlu1 %v602_v8, %s1050_s9 }
 0x87a   :  { %v605_v58 = vpop.permute.xlu1 %604 }
 0x87b   :  { %v607_v33 = vadd.f32 %v605_v58, %v601_v17 }
 0x87d   :  { %976 = vtanh.f32 %v607_v33 }
 0x883   :  { %v977_v60 = vpop.eup %976 }
 0x884   :  { %v1328_v46 = vmul.f32 %v977_v60, %v600_v42 }
 0x886   :  { %v616_v50 = vpack.c.bf16 %v1328_v46, %v1328_v46 }
 0x888   :  { %618 = vrot.lane.b32.xlu2 %v616_v50, %s1050_s9 }
 0x8e2   :  { %v619_v23 = vpop.permute.xlu2 %618 }
 0x8e3   :  { %881 = vmatmul.msk.bf16.vlgmr.msrb.gmra.mxu2 %vm113_vm0, %v619_v23  ;;  %882 = vmatmul.msk.bf16.vlgmr.msrb.gmra.mxu3 %vm113_vm0, %v619_v23  ;;  %v929_v23 = vld [vmem:[%s1389_s5] ss:$0 sm:$0xff] }
 0x966   :  { %v638_v62 = vpop.f32.mrf.mxu2  ;;  %v651_v63 = vpop.f32.mrf.mxu3 }
 0x967   :  { %v639_v26 = vadd.f32 %v638_v62, %v622_v61  ;;  %v652_v3 = vadd.f32 %v651_v63, %v623_v1 }
 0x969   :  { %v655_v0 = vmul.f32 0.5, %v639_v26  ;;  %v660_v15 = vmul.f32 0.5, %v652_v3 }
 0x96b   :  { %978 = vtanh.f32 %v655_v0 }
 0x96c   :  { %980 = vtanh.f32 %v652_v3 }
 0x96d   :  { %982 = vtanh.f32 %v660_v15 }
 0x96e   :  { %v640_v4 = vpop.f32.mrf.mxu2  ;;  %v653_v5 = vpop.f32.mrf.mxu3 }
 0x971   :  { %v979_v6 = vpop.eup %978 }
 0x972   :  { %v657_v7 = vmul.f32 0.5, %v979_v6  ;;  %v981_v10 = vpop.eup %980 }
 0x973   :  { %v983_v14 = vpop.eup %982 }
 0x974   :  { %v658_v9 = vadd.f32 0.5, %v657_v7  ;;  %v662_v19 = vmul.f32 0.5, %v983_v14 }
 0x976   :  { %v665_v11 = vmul.f32 %v981_v10, %v658_v9  ;;  %v664_v20 = vmul.f32 %v658_v9, %v607_v33  ;;  %v663_v28 = vadd.f32 0.5, %v662_v19  ;;  %v919_v33 = vld [vmem:[#allocation5 + $0x8] sm:$0xff] }
 0x978   :  { %667 = vrot.lane.b32.xlu0 %v665_v11, %s1050_s9 }
 0x980   :  { %282 = vrot.lane.b32.xlu0 %v1254_v49, %s1050_s9 }
 0x988   :  { %477 = vrot.lane.b32.xlu0 %v1308_v2, %s1050_s9 }
 0x9ea   :  { %v668_v13 = vpop.permute.xlu0 %667 }
 0x9eb   :  { %v670_v18 = vadd.f32 %v668_v13, %v664_v20 }
 0x9ed   :  { %984 = vtanh.f32 %v670_v18 }
 0x9f2   :  { %v283_v25 = vpop.permute.xlu0 %282 }
 0x9f3   :  { %v985_v29 = vpop.eup %984  ;;  %286 = vst.msk [vmem:[#allocation2] sm:$0x3] %vm285_vm3, %v283_v25 }
 0x9f4   :  { %288 = vst.msk [vmem:[#allocation2 + $0xe] sm:$0x3] %vm287_vm4, %v283_v25  ;;  %v672_v49 = vmul.f32 %v985_v29, %v663_v28 }
 0x9f6   :  { %674 = vrot.lane.b32.xlu0 %v672_v49, %s1050_s9  ;;  %v679_v2 = vpack.c.bf16 %v672_v49, %v672_v49 }
 0x9f8   :  { %681 = vrot.lane.b32.xlu1 %v679_v2, %s1050_s9 }
 0x9fa   :  { %v478_v30 = vpop.permute.xlu0 %477 }
 0x9fb   :  { %480 = vst.msk [vmem:[#allocation2 + $0x6] sm:$0x3] %vm285_vm3, %v478_v30 }
 0x9fc   :  { %481 = vst.msk [vmem:[#allocation2 + $0x8] sm:$0x3] %vm287_vm4, %v478_v30 }
 0xa00   :  { %353 = vrot.lane.b32.xlu1 %v1272_v12, %s1050_s9  ;;  %v683_v12 = vrot.slane %v1225_v16, 6  ;;  %v921_v16 = vld [vmem:[#allocation5 + $0x18] sm:$0xff] }
 0xa01   :  { %786 = vmatpush.bf16.msra.mxu2 %v921_v16 }
 0xa05   :  { %787 = vmatpush.bf16.msra.mxu2 %v920_v24 }
 0xa08   :  { %542 = vrot.lane.b32.xlu1 %v1318_v39, %s1050_s9 }
 0xa09   :  { %788 = vmatpush.bf16.msra.mxu2 %v919_v33 }
 0xa0d   :  { %789 = vmatpush.bf16.msra.mxu2 %v918_v59 }
 0xa68   :  { %v675_v35 = vpop.permute.xlu0 %674 }
 0xa6a   :  { %v682_v31 = vpop.permute.xlu1 %681 }
 0xa6b   :  { %883 = vmatmul.msk.bf16.vlgmr.msra.gmra.mxu0 %vm113_vm0, %v682_v31  ;;  %884 = vmatmul.msk.bf16.vlgmr.msra.gmra.mxu1 %vm113_vm0, %v682_v31 }
 0xa72   :  { %v354_v32 = vpop.permute.xlu1 %353 }
 0xa73   :  { %356 = vst.msk [vmem:[#allocation2 + $0x2] sm:$0x3] %vm285_vm3, %v354_v32 }
 0xa74   :  { %357 = vst.msk [vmem:[#allocation2 + $0xc] sm:$0x3] %vm287_vm4, %v354_v32 }
 0xa75   :  { %677 = vst.msk [vmem:[#allocation2 + $0xc] sm:$0x3] %vm285_vm3, %v675_v35 }
 0xa76   :  { %678 = vst.msk [vmem:[#allocation2 + $0x2] sm:$0x3] %vm287_vm4, %v675_v35 }
 0xa7a   :  { %v543_v36 = vpop.permute.xlu1 %542 }
 0xa7b   :  { %545 = vst.msk [vmem:[#allocation2 + $0x8] sm:$0x3] %vm285_vm3, %v543_v36 }
 0xa7c   :  { %546 = vst.msk [vmem:[#allocation2 + $0x6] sm:$0x3] %vm287_vm4, %v543_v36 }
 0xae8   :  { %v699_v37 = vpop.f32.mrf.mxu0  ;;  %v712_v38 = vpop.f32.mrf.mxu1 }
 0xae9   :  { %v700_v39 = vadd.f32 %v699_v37, %v683_v12  ;;  %v713_v22 = vadd.f32 %v712_v38, %v684_v41 }
 0xaeb   :  { %v716_v40 = vmul.f32 0.5, %v700_v39  ;;  %v721_v53 = vmul.f32 0.5, %v713_v22 }
 0xaed   :  { %986 = vtanh.f32 %v716_v40 }
 0xaee   :  { %988 = vtanh.f32 %v713_v22 }
 0xaef   :  { %990 = vtanh.f32 %v721_v53 }
 0xaf0   :  { %v701_v43 = vpop.f32.mrf.mxu0  ;;  %v714_v44 = vpop.f32.mrf.mxu1 }
 0xaf3   :  { %v987_v45 = vpop.eup %986 }
 0xaf4   :  { %v718_v27 = vmul.f32 0.5, %v987_v45  ;;  %v989_v48 = vpop.eup %988 }
 0xaf5   :  { %v991_v56 = vpop.eup %990 }
 0xaf6   :  { %v719_v47 = vadd.f32 0.5, %v718_v27  ;;  %v723_v8 = vmul.f32 0.5, %v991_v56 }
 0xaf8   :  { %v726_v52 = vmul.f32 %v989_v48, %v719_v47  ;;  %v725_v54 = vmul.f32 %v719_v47, %v670_v18  ;;  %v724_v17 = vadd.f32 0.5, %v723_v8 }
 0xafa   :  { %728 = vrot.lane.b32.xlu2 %v726_v52, %s1050_s9 }
 0xb02   :  { %416 = vrot.lane.b32.xlu2 %v1290_v51, %s1050_s9 }
 0xb0a   :  { %611 = vrot.lane.b32.xlu2 %v1328_v46, %s1050_s9 }
 0xb54   :  { %v729_v55 = vpop.permute.xlu2 %728 }
 0xb55   :  { %v731_v57 = vadd.f32 %v729_v55, %v725_v54 }
 0xb57   :  { %992 = vtanh.f32 %v731_v57 }
 0xb5c   :  { %v417_v21 = vpop.permute.xlu2 %416 }
 0xb5d   :  { %v993_v58 = vpop.eup %992  ;;  %419 = vst.msk [vmem:[#allocation2 + $0x4] sm:$0x3] %vm285_vm3, %v417_v21 }
 0xb5e   :  { %420 = vst.msk [vmem:[#allocation2 + $0xa] sm:$0x3] %vm287_vm4, %v417_v21  ;;  %v733_v51 = vmul.f32 %v993_v58, %v724_v17 }
 0xb60   :  { %735 = vrot.lane.b32.xlu1 %v733_v51, %s1050_s9 }
 0xb64   :  { %v612_v34 = vpop.permute.xlu2 %611 }
 0xb65   :  { %614 = vst.msk [vmem:[#allocation2 + $0xa] sm:$0x3] %vm285_vm3, %v612_v34 }
 0xb66   :  { %615 = vst.msk [vmem:[#allocation2 + $0x4] sm:$0x3] %vm287_vm4, %v612_v34 }
 0xbd2   :  { %v736_v42 = vpop.permute.xlu1 %735 }
 0xbd3   :  { %738 = vst.msk [vmem:[#allocation2 + $0xe] sm:$0x3] %vm285_vm3, %v736_v42 }
 0xbd4   :  { %739 = vst.msk [vmem:[#allocation2] sm:$0x3] %vm287_vm4, %v736_v42 }
 0xbda   :  { %v741_v60 = vld [vmem:[#allocation2 + $0x8] sm:$0xff] }
 0xbdb   :  { %v740_v46 = vld [vmem:[#allocation2] sm:$0xff] }
 0xbdc   :  { %v742_v50 = vpack.c.bf16 %v741_v60, %v740_v46 }
 0xbde   :  { %901 = vmatmul.msk.bf16.vlgmr.msra.gmra.mxu2 %vm113_vm0, %v742_v50 }
 0xc61   :  { %v791_v61 = vpop.f32.mrf.mxu2 }
 0xc62   :  { %v792_v62 = vadd.f32 %v929_v23, %v791_v61 }
 0xc64   :  { %797 = vst.msk [vmem:[%s1390_s6] sm:$0xff] %vm796_vm5, %v792_v62 }
 0xc69   :  { %v793_v63 = vpop.f32.mrf.mxu2 }
 0xc6a   :  { %v794_v26 = vadd.f32 %v929_v23, %v793_v63 }
 0xc6c   :  { %798 = vst.msk [vmem:[%s1390_s6 + $0x8] sm:$0xff] %vm796_vm5, %v794_v26 }
 0xc6d   :  { %803 = vsyncpa [#allocation4], 1 }
 0xc6e   :  { %804 = vsyncpa [#allocation6], 1 }

</bundles_post_ra>
